<compile_context>
chip_gen: v7x
topology: tpu7x:2x2x1
jax: 0.10.0
libtpu: 0.0.40
codegen_flags: <defaults>
</compile_context>

<pallas_src>
import jax
import jax.numpy as jnp
from jax.experimental import pallas as pl
from jax.experimental.pallas import tpu as pltpu


def _round_up(n: int, m: int) -> int:
    return ((n + m - 1) // m) * m


def _make_lstm_kernel(num_layers: int, Hp: int, T: int):
    """Build the kernel body (closure over static sizes)."""

    def kernel(x_ref, *refs):
        # refs = [w_ih0, w_hh0, b0, ..., w_fc, b_fc, out_ref, seq_ref, proj_ref]
        w_ih = [refs[3 * l + 0] for l in range(num_layers)]
        w_hh = [refs[3 * l + 1] for l in range(num_layers)]
        bias = [refs[3 * l + 2] for l in range(num_layers)]
        wfc_ref, bfc_ref, out_ref, seq_ref, proj_ref = refs[3 * num_layers:]

        BB = x_ref.shape[1]                 # padded batch block (multiple of 8)
        mxu_dtype = w_ih[0].dtype

        h_top = None
        for l in range(num_layers):
            # ---- time-parallel part: input projection for ALL steps at once ----
            # One big (T*BB, in) @ (in, 4Hp) MXU matmul per layer; bias folded in.
            if l == 0:
                below = x_ref[...].reshape(T * BB, -1).astype(mxu_dtype)
            else:
                below = seq_ref[...].reshape(T * BB, Hp).astype(mxu_dtype)
            proj = jnp.dot(below, w_ih[l][...],
                           preferred_element_type=jnp.float32)
            proj_ref[...] = (proj + bias[l][...]).reshape(T, BB, 4 * Hp)

            w_hh_l = w_hh[l][...]           # (Hp, 4Hp), stays VMEM-resident
            last_layer = (l == num_layers - 1)

            # ---- serial part: only h @ W_hh on the critical path ----
            def step(t, carry, w=w_hh_l, last=last_layer):
                h, c = carry
                g = proj_ref[t] + jnp.dot(h.astype(mxu_dtype), w,
                                          preferred_element_type=jnp.float32)
                # PyTorch gate order: i, f, g, o; each gate is Hp lanes,
                # 128-aligned, so slicing is whole-tile (no masked selects).
                i = jax.nn.sigmoid(g[:, 0 * Hp:1 * Hp])
                f = jax.nn.sigmoid(g[:, 1 * Hp:2 * Hp])
                gg = jnp.tanh(g[:, 2 * Hp:3 * Hp])
                o = jax.nn.sigmoid(g[:, 3 * Hp:4 * Hp])
                c_new = f * c + i * gg
                h_new = o * jnp.tanh(c_new)
                if not last:
                    # Feed the next layer; inter-layer dropout of nn.LSTM is
                    # identity in eval mode.
                    seq_ref[t] = h_new
                return (h_new, c_new)

            zeros = jnp.zeros((BB, Hp), jnp.float32)
            h_top, _ = jax.lax.fori_loop(0, T, step, (zeros, zeros),
                                         unroll=True if T <= 16 else False)

        # Classifier head on the last hidden state of the top layer
        # (pre-FC dropout is identity in eval mode).
        logits = jnp.dot(h_top.astype(wfc_ref.dtype), wfc_ref[...],
                         preferred_element_type=jnp.float32) + bfc_ref[...]
        out_ref[...] = logits.astype(out_ref.dtype)

    return kernel


def multivariate_lstm_classifier(x, params, *, num_layers=2,
                                 mxu_dtype=jnp.bfloat16):
    """x: (batch, seq_len, input_size) float32 -> (batch, num_classes) float32."""
    B, T, F = x.shape
    H = params["w_hh0"].shape[1]
    C = params["w_fc"].shape[0]

    Hp = _round_up(H, 128)                 # lane-aligned gates
    Cp = _round_up(max(C, 128), 128)       # lane-dense (unmasked) output store
    BB = _round_up(max(B, 8), 8)           # sublane-dense batch
    if BB > 128:
        BB = _round_up(BB, 128)
        B_BLOCK = 128                      # >1 blocks -> "parallel" batch axis
    else:
        B_BLOCK = BB
    n_bblocks = BB // B_BLOCK

    # --- input prep: one small HBM rewrite (batch pad fused w/ time-major) ---
    x_p = jnp.zeros((T, BB, F), jnp.float32)
    x_p = x_p.at[:, :B, :].set(jnp.transpose(x.astype(jnp.float32), (1, 0, 2)))

    # --- weight prep: gate-blocked padding + transpose ---
    def pad_gates_t(w, in_dim, in_dim_p):
        # (4H, in_dim) -> (in_dim_p, 4*Hp); gate blocks [i,f,g,o], each Hp wide.
        w4 = w.reshape(4, H, in_dim)
        w4 = jnp.pad(w4, ((0, 0), (0, Hp - H), (0, in_dim_p - in_dim)))
        return jnp.transpose(w4, (2, 0, 1)).reshape(in_dim_p, 4 * Hp)

    flat_args = [x_p]
    in_specs = [pl.BlockSpec((T, B_BLOCK, F), lambda b: (0, b, 0))]
    for l in range(num_layers):
        in_dim = F if l == 0 else H
        in_dim_p = F if l == 0 else Hp
        w_ih_t = pad_gates_t(params[f"w_ih{l}"], in_dim, in_dim_p)
        w_hh_t = pad_gates_t(params[f"w_hh{l}"], H, Hp)
        b4 = (params[f"b_ih{l}"] + params[f"b_hh{l}"]).reshape(4, H)
        b_p = jnp.pad(b4, ((0, 0), (0, Hp - H))).reshape(1, 4 * Hp)
        flat_args += [w_ih_t.astype(mxu_dtype), w_hh_t.astype(mxu_dtype),
                      b_p.astype(jnp.float32)]
        in_specs += [
            pl.BlockSpec((in_dim_p, 4 * Hp), lambda b: (0, 0)),
            pl.BlockSpec((Hp, 4 * Hp), lambda b: (0, 0)),
            pl.BlockSpec((1, 4 * Hp), lambda b: (0, 0)),
        ]
    w_fc_p = jnp.pad(params["w_fc"], ((0, Cp - C), (0, Hp - H))).T   # (Hp, Cp)
    b_fc_p = jnp.pad(params["b_fc"], (0, Cp - C)).reshape(1, Cp)
    flat_args += [w_fc_p.astype(mxu_dtype), b_fc_p.astype(jnp.float32)]
    in_specs += [pl.BlockSpec((Hp, Cp), lambda b: (0, 0)),
                 pl.BlockSpec((1, Cp), lambda b: (0, 0))]

    kernel = _make_lstm_kernel(num_layers, Hp, T)

    out = pl.pallas_call(
        kernel,
        out_shape=jax.ShapeDtypeStruct((BB, Cp), jnp.float32),
        grid_spec=pltpu.PrefetchScalarGridSpec(
            num_scalar_prefetch=0,
            grid=(n_bblocks,),                       # batch blocks only
            in_specs=in_specs,
            out_specs=pl.BlockSpec((B_BLOCK, Cp), lambda b: (b, 0)),
            scratch_shapes=[
                pltpu.VMEM((T, B_BLOCK, Hp), jnp.float32),       # seq_ref
                pltpu.VMEM((T, B_BLOCK, 4 * Hp), jnp.float32),   # proj_ref
            ],
        ),
        compiler_params=pltpu.CompilerParams(
            # Batch blocks are independent -> megacore-parallel on v7x.
            dimension_semantics=("parallel",)),
    )(*flat_args)

    return out[:B, :C]


def init_params(key, input_size, hidden_size, num_classes, num_layers=2):
    """Deterministic PyTorch-style init: U(-1/sqrt(H), 1/sqrt(H))."""
    H = hidden_size
    bound = 1.0 / float(H) ** 0.5
    names_shapes = []
    for l in range(num_layers):
        in_l = input_size if l == 0 else H
        names_shapes += [(f"w_ih{l}", (4 * H, in_l)), (f"w_hh{l}", (4 * H, H)),
                         (f"b_ih{l}", (4 * H,)), (f"b_hh{l}", (4 * H,))]
    names_shapes += [("w_fc", (num_classes, H)), ("b_fc", (num_classes,))]
    params = {}
    keys = jax.random.split(key, len(names_shapes))
    for k, (name, shape) in zip(keys, names_shapes):
        params[name] = jax.random.uniform(
            k, shape, dtype=jnp.float32, minval=-bound, maxval=bound)
    return params


def _reference_forward(x, params, num_layers=2, mxu_dtype=jnp.float32):
    """Pure-JAX reference (lax.scan LSTM).  mxu_dtype=bf16 mirrors the kernel's
    MXU input precision (f32 accumulate); mxu_dtype=f32 is exact PyTorch math."""
    H = params["w_hh0"].shape[1]

    def mm(a, b):
        return jnp.dot(a.astype(mxu_dtype), b.astype(mxu_dtype),
                       preferred_element_type=jnp.float32)

    def cell(x_in, h, c, w_ih, w_hh, b):
        gates = mm(x_in, w_ih.T) + mm(h, w_hh.T) + b
        i = jax.nn.sigmoid(gates[:, 0 * H:1 * H])
        f = jax.nn.sigmoid(gates[:, 1 * H:2 * H])
        g = jnp.tanh(gates[:, 2 * H:3 * H])
        o = jax.nn.sigmoid(gates[:, 3 * H:4 * H])
        c_new = f * c + i * g
        return o * jnp.tanh(c_new), c_new

    B = x.shape[0]
    hs = [jnp.zeros((B, H), jnp.float32) for _ in range(num_layers)]
    cs = [jnp.zeros((B, H), jnp.float32) for _ in range(num_layers)]

    def step(carry, x_t):
        hs, cs = carry
        inp = x_t
        new_h, new_c = [], []
        for l in range(num_layers):
            b = params[f"b_ih{l}"] + params[f"b_hh{l}"]
            h, c = cell(inp, hs[l], cs[l],
                        params[f"w_ih{l}"], params[f"w_hh{l}"], b)
            new_h.append(h)
            new_c.append(c)
            inp = h
        return (new_h, new_c), None

    (hs, cs), _ = jax.lax.scan(step, (hs, cs), jnp.transpose(x, (1, 0, 2)))
    return mm(hs[-1], params["w_fc"].T) + params["b_fc"]


if __name__ == "__main__":
    # Small, module-consistent shapes.
    batch, seq_len = 2, 8
    input_size, hidden_size, num_layers, num_classes = 4, 32, 2, 3

    key = jax.random.PRNGKey(0)
    kx, kp = jax.random.split(key)
    x = jax.random.normal(kx, (batch, seq_len, input_size), dtype=jnp.float32)
    params = init_params(kp, input_size, hidden_size, num_classes, num_layers)

    logits = multivariate_lstm_classifier(
        x, params, num_layers=num_layers, mxu_dtype=jnp.bfloat16)
    logits = jax.block_until_ready(logits)
    assert logits.shape == (batch, num_classes)

    # Tight check vs. a reference with matching MXU input precision (bf16 in,
    # f32 accumulate), and a loose check vs. the pure-f32 PyTorch-equivalent.
    ref_matched = _reference_forward(x, params, num_layers, jnp.bfloat16)
    ref_f32 = _reference_forward(x, params, num_layers, jnp.float32)
    assert jnp.allclose(logits, ref_matched, atol=2e-3, rtol=2e-3), (
        logits, ref_matched)
    assert jnp.allclose(logits, ref_f32, atol=3e-2, rtol=3e-2), (logits, ref_f32)

    print("KERNEL_OK")
</pallas_src>

<mosaic_0001>
module attributes {stable_mosaic.version = 11 : i64} {
  func.func @kernel(%arg0: i32, %arg1: memref<8x8x4xf32, #tpu.memory_space<vmem>>, %arg2: memref<4x512xbf16, #tpu.memory_space<vmem>>, %arg3: memref<128x512xbf16, #tpu.memory_space<vmem>>, %arg4: memref<1x512xf32, #tpu.memory_space<vmem>>, %arg5: memref<128x512xbf16, #tpu.memory_space<vmem>>, %arg6: memref<128x512xbf16, #tpu.memory_space<vmem>>, %arg7: memref<1x512xf32, #tpu.memory_space<vmem>>, %arg8: memref<128x128xbf16, #tpu.memory_space<vmem>>, %arg9: memref<1x128xf32, #tpu.memory_space<vmem>>, %arg10: memref<8x128xf32, #tpu.memory_space<vmem>>, %arg11: memref<8x8x128xf32, #tpu.memory_space<vmem>>, %arg12: memref<8x8x512xf32, #tpu.memory_space<vmem>>) attributes {dimension_semantics = [#tpu.dimension_semantics<parallel>], iteration_bounds = array<i64: 1>, scalar_prefetch = 0 : i64, scratch_operands = 2 : i64, tpu.core_type = #tpu.core_type<tc>, window_params = [{transform_indices = @transform_0, window_bounds = array<i64: 8, 8, 4>}, {pipeline_mode = #tpu.pipeline_mode<synchronous>, transform_indices = @transform_1, window_bounds = array<i64: 4, 512>}, {pipeline_mode = #tpu.pipeline_mode<synchronous>, transform_indices = @transform_2, window_bounds = array<i64: 128, 512>}, {pipeline_mode = #tpu.pipeline_mode<synchronous>, transform_indices = @transform_3, window_bounds = array<i64: 1, 512>}, {pipeline_mode = #tpu.pipeline_mode<synchronous>, transform_indices = @transform_4, window_bounds = array<i64: 128, 512>}, {pipeline_mode = #tpu.pipeline_mode<synchronous>, transform_indices = @transform_5, window_bounds = array<i64: 128, 512>}, {pipeline_mode = #tpu.pipeline_mode<synchronous>, transform_indices = @transform_6, window_bounds = array<i64: 1, 512>}, {pipeline_mode = #tpu.pipeline_mode<synchronous>, transform_indices = @transform_7, window_bounds = array<i64: 128, 128>}, {pipeline_mode = #tpu.pipeline_mode<synchronous>, transform_indices = @transform_8, window_bounds = array<i64: 1, 128>}, {transform_indices = @transform_9, window_bounds = array<i64: 8, 128>}]} {
    %c0 = arith.constant 0 : index
    %c0_0 = arith.constant 0 : index
    %c0_1 = arith.constant 0 : index
    %0 = vector.load %arg1[%c0, %c0_0, %c0_1] : memref<8x8x4xf32, #tpu.memory_space<vmem>>, vector<8x8x4xf32>
    %1 = vector.shape_cast %0 : vector<8x8x4xf32> to vector<64x4xf32>
    %2 = arith.truncf %1 : vector<64x4xf32> to vector<64x4xbf16>
    %c0_2 = arith.constant 0 : index
    %c0_3 = arith.constant 0 : index
    %3 = vector.load %arg2[%c0_2, %c0_3] : memref<4x512xbf16, #tpu.memory_space<vmem>>, vector<4x512xbf16>
    %cst = arith.constant dense<0.000000e+00> : vector<64x512xf32>
    %4 = tpu.matmul %2, %3, %cst {dimension_numbers = #tpu.dot_dimension_numbers<[1], [0], [0], [1], [0, 0, 1, 1], [], []>} : vector<64x4xbf16>, vector<4x512xbf16>, vector<64x512xf32> -> vector<64x512xf32>
    %c0_4 = arith.constant 0 : index
    %c0_5 = arith.constant 0 : index
    %5 = vector.load %arg4[%c0_4, %c0_5] : memref<1x512xf32, #tpu.memory_space<vmem>>, vector<1x512xf32>
    %6 = vector.broadcast %5 : vector<1x512xf32> to vector<64x512xf32>
    %7 = arith.addf %4, %6 : vector<64x512xf32>
    %8 = vector.shape_cast %7 : vector<64x512xf32> to vector<8x8x512xf32>
    %c0_6 = arith.constant 0 : index
    %c0_7 = arith.constant 0 : index
    %c0_8 = arith.constant 0 : index
    %9 = vector.load %arg12[%c0_6, %c0_7, %c0_8] : memref<8x8x512xf32, #tpu.memory_space<vmem>>, vector<8x8x512xf32>
    tpu.vector_store %arg12[%c0_6, %c0_7, %c0_8], %8 {strides = array<i32>} : memref<8x8x512xf32, #tpu.memory_space<vmem>>, vector<8x8x512xf32>,
    %c0_9 = arith.constant 0 : index
    %c0_10 = arith.constant 0 : index
    %10 = vector.load %arg3[%c0_9, %c0_10] : memref<128x512xbf16, #tpu.memory_space<vmem>>, vector<128x512xbf16>
    %cst_11 = arith.constant 0.000000e+00 : f32
    %11 = vector.broadcast %cst_11 : f32 to vector<8x128xf32>
    %c0_i32 = arith.constant 0 : i32
    %12 = arith.index_cast %c0_i32 : i32 to index
    %c0_12 = arith.constant 0 : index
    %c0_13 = arith.constant 0 : index
    %13 = vector.load %arg12[%12, %c0_12, %c0_13] : memref<8x8x512xf32, #tpu.memory_space<vmem>>, vector<1x8x512xf32>
    %14 = vector.shape_cast %13 : vector<1x8x512xf32> to vector<8x512xf32>
    %15 = arith.truncf %11 : vector<8x128xf32> to vector<8x128xbf16>
    %cst_14 = arith.constant dense<0.000000e+00> : vector<8x512xf32>
    %16 = tpu.matmul %15, %10, %cst_14 {dimension_numbers = #tpu.dot_dimension_numbers<[1], [0], [0], [1], [0, 0, 1, 1], [], []>} : vector<8x128xbf16>, vector<128x512xbf16>, vector<8x512xf32> -> vector<8x512xf32>
    %17 = arith.addf %14, %16 : vector<8x512xf32>
    %18 = vector.extract_strided_slice %17 {offsets = [0, 0], sizes = [8, 128], strides = [1, 1]} : vector<8x512xf32> to vector<8x128xf32>
    %19 = arith.negf %18 : vector<8x128xf32>
    %20 = math.exp %19 : vector<8x128xf32>
    %cst_15 = arith.constant 1.000000e+00 : f32
    %21 = vector.broadcast %cst_15 : f32 to vector<8x128xf32>
    %22 = arith.addf %21, %20 : vector<8x128xf32>
    %23 = arith.divf %21, %22 : vector<8x128xf32>
    %24 = vector.extract_strided_slice %17 {offsets = [0, 128], sizes = [8, 128], strides = [1, 1]} : vector<8x512xf32> to vector<8x128xf32>
    %25 = arith.negf %24 : vector<8x128xf32>
    %26 = math.exp %25 : vector<8x128xf32>
    %cst_16 = arith.constant 1.000000e+00 : f32
    %27 = vector.broadcast %cst_16 : f32 to vector<8x128xf32>
    %28 = arith.addf %27, %26 : vector<8x128xf32>
    %29 = arith.divf %27, %28 : vector<8x128xf32>
    %30 = vector.extract_strided_slice %17 {offsets = [0, 256], sizes = [8, 128], strides = [1, 1]} : vector<8x512xf32> to vector<8x128xf32>
    %31 = math.tanh %30 : vector<8x128xf32>
    %32 = vector.extract_strided_slice %17 {offsets = [0, 384], sizes = [8, 128], strides = [1, 1]} : vector<8x512xf32> to vector<8x128xf32>
    %33 = arith.negf %32 : vector<8x128xf32>
    %34 = math.exp %33 : vector<8x128xf32>
    %cst_17 = arith.constant 1.000000e+00 : f32
    %35 = vector.broadcast %cst_17 : f32 to vector<8x128xf32>
    %36 = arith.addf %35, %34 : vector<8x128xf32>
    %37 = arith.divf %35, %36 : vector<8x128xf32>
    %38 = arith.mulf %29, %11 : vector<8x128xf32>
    %39 = arith.mulf %23, %31 : vector<8x128xf32>
    %40 = arith.addf %38, %39 : vector<8x128xf32>
    %41 = math.tanh %40 : vector<8x128xf32>
    %42 = arith.mulf %37, %41 : vector<8x128xf32>
    %43 = arith.index_cast %c0_i32 : i32 to index
    %c0_18 = arith.constant 0 : index
    %c0_19 = arith.constant 0 : index
    %44 = vector.load %arg11[%43, %c0_18, %c0_19] : memref<8x8x128xf32, #tpu.memory_space<vmem>>, vector<1x8x128xf32>
    %45 = vector.shape_cast %44 : vector<1x8x128xf32> to vector<8x128xf32>
    %46 = vector.shape_cast %42 : vector<8x128xf32> to vector<1x8x128xf32>
    tpu.vector_store %arg11[%43, %c0_18, %c0_19], %46 {strides = array<i32>} : memref<8x8x128xf32, #tpu.memory_space<vmem>>, vector<1x8x128xf32>,
    %c1_i32 = arith.constant 1 : i32
    %47 = arith.index_cast %c1_i32 : i32 to index
    %c0_20 = arith.constant 0 : index
    %c0_21 = arith.constant 0 : index
    %48 = vector.load %arg12[%47, %c0_20, %c0_21] : memref<8x8x512xf32, #tpu.memory_space<vmem>>, vector<1x8x512xf32>
    %49 = vector.shape_cast %48 : vector<1x8x512xf32> to vector<8x512xf32>
    %50 = arith.truncf %42 : vector<8x128xf32> to vector<8x128xbf16>
    %cst_22 = arith.constant dense<0.000000e+00> : vector<8x512xf32>
    %51 = tpu.matmul %50, %10, %cst_22 {dimension_numbers = #tpu.dot_dimension_numbers<[1], [0], [0], [1], [0, 0, 1, 1], [], []>} : vector<8x128xbf16>, vector<128x512xbf16>, vector<8x512xf32> -> vector<8x512xf32>
    %52 = arith.addf %49, %51 : vector<8x512xf32>
    %53 = vector.extract_strided_slice %52 {offsets = [0, 0], sizes = [8, 128], strides = [1, 1]} : vector<8x512xf32> to vector<8x128xf32>
    %54 = arith.negf %53 : vector<8x128xf32>
    %55 = math.exp %54 : vector<8x128xf32>
    %cst_23 = arith.constant 1.000000e+00 : f32
    %56 = vector.broadcast %cst_23 : f32 to vector<8x128xf32>
    %57 = arith.addf %56, %55 : vector<8x128xf32>
    %58 = arith.divf %56, %57 : vector<8x128xf32>
    %59 = vector.extract_strided_slice %52 {offsets = [0, 128], sizes = [8, 128], strides = [1, 1]} : vector<8x512xf32> to vector<8x128xf32>
    %60 = arith.negf %59 : vector<8x128xf32>
    %61 = math.exp %60 : vector<8x128xf32>
    %cst_24 = arith.constant 1.000000e+00 : f32
    %62 = vector.broadcast %cst_24 : f32 to vector<8x128xf32>
    %63 = arith.addf %62, %61 : vector<8x128xf32>
    %64 = arith.divf %62, %63 : vector<8x128xf32>
    %65 = vector.extract_strided_slice %52 {offsets = [0, 256], sizes = [8, 128], strides = [1, 1]} : vector<8x512xf32> to vector<8x128xf32>
    %66 = math.tanh %65 : vector<8x128xf32>
    %67 = vector.extract_strided_slice %52 {offsets = [0, 384], sizes = [8, 128], strides = [1, 1]} : vector<8x512xf32> to vector<8x128xf32>
    %68 = arith.negf %67 : vector<8x128xf32>
    %69 = math.exp %68 : vector<8x128xf32>
    %cst_25 = arith.constant 1.000000e+00 : f32
    %70 = vector.broadcast %cst_25 : f32 to vector<8x128xf32>
    %71 = arith.addf %70, %69 : vector<8x128xf32>
    %72 = arith.divf %70, %71 : vector<8x128xf32>
    %73 = arith.mulf %64, %40 : vector<8x128xf32>
    %74 = arith.mulf %58, %66 : vector<8x128xf32>
    %75 = arith.addf %73, %74 : vector<8x128xf32>
    %76 = math.tanh %75 : vector<8x128xf32>
    %77 = arith.mulf %72, %76 : vector<8x128xf32>
    %78 = arith.index_cast %c1_i32 : i32 to index
    %c0_26 = arith.constant 0 : index
    %c0_27 = arith.constant 0 : index
    %79 = vector.load %arg11[%78, %c0_26, %c0_27] : memref<8x8x128xf32, #tpu.memory_space<vmem>>, vector<1x8x128xf32>
    %80 = vector.shape_cast %79 : vector<1x8x128xf32> to vector<8x128xf32>
    %81 = vector.shape_cast %77 : vector<8x128xf32> to vector<1x8x128xf32>
    tpu.vector_store %arg11[%78, %c0_26, %c0_27], %81 {strides = array<i32>} : memref<8x8x128xf32, #tpu.memory_space<vmem>>, vector<1x8x128xf32>,
    %c2_i32 = arith.constant 2 : i32
    %82 = arith.index_cast %c2_i32 : i32 to index
    %c0_28 = arith.constant 0 : index
    %c0_29 = arith.constant 0 : index
    %83 = vector.load %arg12[%82, %c0_28, %c0_29] : memref<8x8x512xf32, #tpu.memory_space<vmem>>, vector<1x8x512xf32>
    %84 = vector.shape_cast %83 : vector<1x8x512xf32> to vector<8x512xf32>
    %85 = arith.truncf %77 : vector<8x128xf32> to vector<8x128xbf16>
    %cst_30 = arith.constant dense<0.000000e+00> : vector<8x512xf32>
    %86 = tpu.matmul %85, %10, %cst_30 {dimension_numbers = #tpu.dot_dimension_numbers<[1], [0], [0], [1], [0, 0, 1, 1], [], []>} : vector<8x128xbf16>, vector<128x512xbf16>, vector<8x512xf32> -> vector<8x512xf32>
    %87 = arith.addf %84, %86 : vector<8x512xf32>
    %88 = vector.extract_strided_slice %87 {offsets = [0, 0], sizes = [8, 128], strides = [1, 1]} : vector<8x512xf32> to vector<8x128xf32>
    %89 = arith.negf %88 : vector<8x128xf32>
    %90 = math.exp %89 : vector<8x128xf32>
    %cst_31 = arith.constant 1.000000e+00 : f32
    %91 = vector.broadcast %cst_31 : f32 to vector<8x128xf32>
    %92 = arith.addf %91, %90 : vector<8x128xf32>
    %93 = arith.divf %91, %92 : vector<8x128xf32>
    %94 = vector.extract_strided_slice %87 {offsets = [0, 128], sizes = [8, 128], strides = [1, 1]} : vector<8x512xf32> to vector<8x128xf32>
    %95 = arith.negf %94 : vector<8x128xf32>
    %96 = math.exp %95 : vector<8x128xf32>
    %cst_32 = arith.constant 1.000000e+00 : f32
    %97 = vector.broadcast %cst_32 : f32 to vector<8x128xf32>
    %98 = arith.addf %97, %96 : vector<8x128xf32>
    %99 = arith.divf %97, %98 : vector<8x128xf32>
    %100 = vector.extract_strided_slice %87 {offsets = [0, 256], sizes = [8, 128], strides = [1, 1]} : vector<8x512xf32> to vector<8x128xf32>
    %101 = math.tanh %100 : vector<8x128xf32>
    %102 = vector.extract_strided_slice %87 {offsets = [0, 384], sizes = [8, 128], strides = [1, 1]} : vector<8x512xf32> to vector<8x128xf32>
    %103 = arith.negf %102 : vector<8x128xf32>
    %104 = math.exp %103 : vector<8x128xf32>
    %cst_33 = arith.constant 1.000000e+00 : f32
    %105 = vector.broadcast %cst_33 : f32 to vector<8x128xf32>
    %106 = arith.addf %105, %104 : vector<8x128xf32>
    %107 = arith.divf %105, %106 : vector<8x128xf32>
    %108 = arith.mulf %99, %75 : vector<8x128xf32>
    %109 = arith.mulf %93, %101 : vector<8x128xf32>
    %110 = arith.addf %108, %109 : vector<8x128xf32>
    %111 = math.tanh %110 : vector<8x128xf32>
    %112 = arith.mulf %107, %111 : vector<8x128xf32>
    %113 = arith.index_cast %c2_i32 : i32 to index
    %c0_34 = arith.constant 0 : index
    %c0_35 = arith.constant 0 : index
    %114 = vector.load %arg11[%113, %c0_34, %c0_35] : memref<8x8x128xf32, #tpu.memory_space<vmem>>, vector<1x8x128xf32>
    %115 = vector.shape_cast %114 : vector<1x8x128xf32> to vector<8x128xf32>
    %116 = vector.shape_cast %112 : vector<8x128xf32> to vector<1x8x128xf32>
    tpu.vector_store %arg11[%113, %c0_34, %c0_35], %116 {strides = array<i32>} : memref<8x8x128xf32, #tpu.memory_space<vmem>>, vector<1x8x128xf32>,
    %c3_i32 = arith.constant 3 : i32
    %117 = arith.index_cast %c3_i32 : i32 to index
    %c0_36 = arith.constant 0 : index
    %c0_37 = arith.constant 0 : index
    %118 = vector.load %arg12[%117, %c0_36, %c0_37] : memref<8x8x512xf32, #tpu.memory_space<vmem>>, vector<1x8x512xf32>
    %119 = vector.shape_cast %118 : vector<1x8x512xf32> to vector<8x512xf32>
    %120 = arith.truncf %112 : vector<8x128xf32> to vector<8x128xbf16>
    %cst_38 = arith.constant dense<0.000000e+00> : vector<8x512xf32>
    %121 = tpu.matmul %120, %10, %cst_38 {dimension_numbers = #tpu.dot_dimension_numbers<[1], [0], [0], [1], [0, 0, 1, 1], [], []>} : vector<8x128xbf16>, vector<128x512xbf16>, vector<8x512xf32> -> vector<8x512xf32>
    %122 = arith.addf %119, %121 : vector<8x512xf32>
    %123 = vector.extract_strided_slice %122 {offsets = [0, 0], sizes = [8, 128], strides = [1, 1]} : vector<8x512xf32> to vector<8x128xf32>
    %124 = arith.negf %123 : vector<8x128xf32>
    %125 = math.exp %124 : vector<8x128xf32>
    %cst_39 = arith.constant 1.000000e+00 : f32
    %126 = vector.broadcast %cst_39 : f32 to vector<8x128xf32>
    %127 = arith.addf %126, %125 : vector<8x128xf32>
    %128 = arith.divf %126, %127 : vector<8x128xf32>
    %129 = vector.extract_strided_slice %122 {offsets = [0, 128], sizes = [8, 128], strides = [1, 1]} : vector<8x512xf32> to vector<8x128xf32>
    %130 = arith.negf %129 : vector<8x128xf32>
    %131 = math.exp %130 : vector<8x128xf32>
    %cst_40 = arith.constant 1.000000e+00 : f32
    %132 = vector.broadcast %cst_40 : f32 to vector<8x128xf32>
    %133 = arith.addf %132, %131 : vector<8x128xf32>
    %134 = arith.divf %132, %133 : vector<8x128xf32>
    %135 = vector.extract_strided_slice %122 {offsets = [0, 256], sizes = [8, 128], strides = [1, 1]} : vector<8x512xf32> to vector<8x128xf32>
    %136 = math.tanh %135 : vector<8x128xf32>
    %137 = vector.extract_strided_slice %122 {offsets = [0, 384], sizes = [8, 128], strides = [1, 1]} : vector<8x512xf32> to vector<8x128xf32>
    %138 = arith.negf %137 : vector<8x128xf32>
    %139 = math.exp %138 : vector<8x128xf32>
    %cst_41 = arith.constant 1.000000e+00 : f32
    %140 = vector.broadcast %cst_41 : f32 to vector<8x128xf32>
    %141 = arith.addf %140, %139 : vector<8x128xf32>
    %142 = arith.divf %140, %141 : vector<8x128xf32>
    %143 = arith.mulf %134, %110 : vector<8x128xf32>
    %144 = arith.mulf %128, %136 : vector<8x128xf32>
    %145 = arith.addf %143, %144 : vector<8x128xf32>
    %146 = math.tanh %145 : vector<8x128xf32>
    %147 = arith.mulf %142, %146 : vector<8x128xf32>
    %148 = arith.index_cast %c3_i32 : i32 to index
    %c0_42 = arith.constant 0 : index
    %c0_43 = arith.constant 0 : index
    %149 = vector.load %arg11[%148, %c0_42, %c0_43] : memref<8x8x128xf32, #tpu.memory_space<vmem>>, vector<1x8x128xf32>
    %150 = vector.shape_cast %149 : vector<1x8x128xf32> to vector<8x128xf32>
    %151 = vector.shape_cast %147 : vector<8x128xf32> to vector<1x8x128xf32>
    tpu.vector_store %arg11[%148, %c0_42, %c0_43], %151 {strides = array<i32>} : memref<8x8x128xf32, #tpu.memory_space<vmem>>, vector<1x8x128xf32>,
    %c4_i32 = arith.constant 4 : i32
    %152 = arith.index_cast %c4_i32 : i32 to index
    %c0_44 = arith.constant 0 : index
    %c0_45 = arith.constant 0 : index
    %153 = vector.load %arg12[%152, %c0_44, %c0_45] : memref<8x8x512xf32, #tpu.memory_space<vmem>>, vector<1x8x512xf32>
    %154 = vector.shape_cast %153 : vector<1x8x512xf32> to vector<8x512xf32>
    %155 = arith.truncf %147 : vector<8x128xf32> to vector<8x128xbf16>
    %cst_46 = arith.constant dense<0.000000e+00> : vector<8x512xf32>
    %156 = tpu.matmul %155, %10, %cst_46 {dimension_numbers = #tpu.dot_dimension_numbers<[1], [0], [0], [1], [0, 0, 1, 1], [], []>} : vector<8x128xbf16>, vector<128x512xbf16>, vector<8x512xf32> -> vector<8x512xf32>
    %157 = arith.addf %154, %156 : vector<8x512xf32>
    %158 = vector.extract_strided_slice %157 {offsets = [0, 0], sizes = [8, 128], strides = [1, 1]} : vector<8x512xf32> to vector<8x128xf32>
    %159 = arith.negf %158 : vector<8x128xf32>
    %160 = math.exp %159 : vector<8x128xf32>
    %cst_47 = arith.constant 1.000000e+00 : f32
    %161 = vector.broadcast %cst_47 : f32 to vector<8x128xf32>
    %162 = arith.addf %161, %160 : vector<8x128xf32>
    %163 = arith.divf %161, %162 : vector<8x128xf32>
    %164 = vector.extract_strided_slice %157 {offsets = [0, 128], sizes = [8, 128], strides = [1, 1]} : vector<8x512xf32> to vector<8x128xf32>
    %165 = arith.negf %164 : vector<8x128xf32>
    %166 = math.exp %165 : vector<8x128xf32>
    %cst_48 = arith.constant 1.000000e+00 : f32
    %167 = vector.broadcast %cst_48 : f32 to vector<8x128xf32>
    %168 = arith.addf %167, %166 : vector<8x128xf32>
    %169 = arith.divf %167, %168 : vector<8x128xf32>
    %170 = vector.extract_strided_slice %157 {offsets = [0, 256], sizes = [8, 128], strides = [1, 1]} : vector<8x512xf32> to vector<8x128xf32>
    %171 = math.tanh %170 : vector<8x128xf32>
    %172 = vector.extract_strided_slice %157 {offsets = [0, 384], sizes = [8, 128], strides = [1, 1]} : vector<8x512xf32> to vector<8x128xf32>
    %173 = arith.negf %172 : vector<8x128xf32>
    %174 = math.exp %173 : vector<8x128xf32>
    %cst_49 = arith.constant 1.000000e+00 : f32
    %175 = vector.broadcast %cst_49 : f32 to vector<8x128xf32>
    %176 = arith.addf %175, %174 : vector<8x128xf32>
    %177 = arith.divf %175, %176 : vector<8x128xf32>
    %178 = arith.mulf %169, %145 : vector<8x128xf32>
    %179 = arith.mulf %163, %171 : vector<8x128xf32>
    %180 = arith.addf %178, %179 : vector<8x128xf32>
    %181 = math.tanh %180 : vector<8x128xf32>
    %182 = arith.mulf %177, %181 : vector<8x128xf32>
    %183 = arith.index_cast %c4_i32 : i32 to index
    %c0_50 = arith.constant 0 : index
    %c0_51 = arith.constant 0 : index
    %184 = vector.load %arg11[%183, %c0_50, %c0_51] : memref<8x8x128xf32, #tpu.memory_space<vmem>>, vector<1x8x128xf32>
    %185 = vector.shape_cast %184 : vector<1x8x128xf32> to vector<8x128xf32>
    %186 = vector.shape_cast %182 : vector<8x128xf32> to vector<1x8x128xf32>
    tpu.vector_store %arg11[%183, %c0_50, %c0_51], %186 {strides = array<i32>} : memref<8x8x128xf32, #tpu.memory_space<vmem>>, vector<1x8x128xf32>,
    %c5_i32 = arith.constant 5 : i32
    %187 = arith.index_cast %c5_i32 : i32 to index
    %c0_52 = arith.constant 0 : index
    %c0_53 = arith.constant 0 : index
    %188 = vector.load %arg12[%187, %c0_52, %c0_53] : memref<8x8x512xf32, #tpu.memory_space<vmem>>, vector<1x8x512xf32>
    %189 = vector.shape_cast %188 : vector<1x8x512xf32> to vector<8x512xf32>
    %190 = arith.truncf %182 : vector<8x128xf32> to vector<8x128xbf16>
    %cst_54 = arith.constant dense<0.000000e+00> : vector<8x512xf32>
    %191 = tpu.matmul %190, %10, %cst_54 {dimension_numbers = #tpu.dot_dimension_numbers<[1], [0], [0], [1], [0, 0, 1, 1], [], []>} : vector<8x128xbf16>, vector<128x512xbf16>, vector<8x512xf32> -> vector<8x512xf32>
    %192 = arith.addf %189, %191 : vector<8x512xf32>
    %193 = vector.extract_strided_slice %192 {offsets = [0, 0], sizes = [8, 128], strides = [1, 1]} : vector<8x512xf32> to vector<8x128xf32>
    %194 = arith.negf %193 : vector<8x128xf32>
    %195 = math.exp %194 : vector<8x128xf32>
    %cst_55 = arith.constant 1.000000e+00 : f32
    %196 = vector.broadcast %cst_55 : f32 to vector<8x128xf32>
    %197 = arith.addf %196, %195 : vector<8x128xf32>
    %198 = arith.divf %196, %197 : vector<8x128xf32>
    %199 = vector.extract_strided_slice %192 {offsets = [0, 128], sizes = [8, 128], strides = [1, 1]} : vector<8x512xf32> to vector<8x128xf32>
    %200 = arith.negf %199 : vector<8x128xf32>
    %201 = math.exp %200 : vector<8x128xf32>
    %cst_56 = arith.constant 1.000000e+00 : f32
    %202 = vector.broadcast %cst_56 : f32 to vector<8x128xf32>
    %203 = arith.addf %202, %201 : vector<8x128xf32>
    %204 = arith.divf %202, %203 : vector<8x128xf32>
    %205 = vector.extract_strided_slice %192 {offsets = [0, 256], sizes = [8, 128], strides = [1, 1]} : vector<8x512xf32> to vector<8x128xf32>
    %206 = math.tanh %205 : vector<8x128xf32>
    %207 = vector.extract_strided_slice %192 {offsets = [0, 384], sizes = [8, 128], strides = [1, 1]} : vector<8x512xf32> to vector<8x128xf32>
    %208 = arith.negf %207 : vector<8x128xf32>
    %209 = math.exp %208 : vector<8x128xf32>
    %cst_57 = arith.constant 1.000000e+00 : f32
    %210 = vector.broadcast %cst_57 : f32 to vector<8x128xf32>
    %211 = arith.addf %210, %209 : vector<8x128xf32>
    %212 = arith.divf %210, %211 : vector<8x128xf32>
    %213 = arith.mulf %204, %180 : vector<8x128xf32>
    %214 = arith.mulf %198, %206 : vector<8x128xf32>
    %215 = arith.addf %213, %214 : vector<8x128xf32>
    %216 = math.tanh %215 : vector<8x128xf32>
    %217 = arith.mulf %212, %216 : vector<8x128xf32>
    %218 = arith.index_cast %c5_i32 : i32 to index
    %c0_58 = arith.constant 0 : index
    %c0_59 = arith.constant 0 : index
    %219 = vector.load %arg11[%218, %c0_58, %c0_59] : memref<8x8x128xf32, #tpu.memory_space<vmem>>, vector<1x8x128xf32>
    %220 = vector.shape_cast %219 : vector<1x8x128xf32> to vector<8x128xf32>
    %221 = vector.shape_cast %217 : vector<8x128xf32> to vector<1x8x128xf32>
    tpu.vector_store %arg11[%218, %c0_58, %c0_59], %221 {strides = array<i32>} : memref<8x8x128xf32, #tpu.memory_space<vmem>>, vector<1x8x128xf32>,
    %c6_i32 = arith.constant 6 : i32
    %222 = arith.index_cast %c6_i32 : i32 to index
    %c0_60 = arith.constant 0 : index
    %c0_61 = arith.constant 0 : index
    %223 = vector.load %arg12[%222, %c0_60, %c0_61] : memref<8x8x512xf32, #tpu.memory_space<vmem>>, vector<1x8x512xf32>
    %224 = vector.shape_cast %223 : vector<1x8x512xf32> to vector<8x512xf32>
    %225 = arith.truncf %217 : vector<8x128xf32> to vector<8x128xbf16>
    %cst_62 = arith.constant dense<0.000000e+00> : vector<8x512xf32>
    %226 = tpu.matmul %225, %10, %cst_62 {dimension_numbers = #tpu.dot_dimension_numbers<[1], [0], [0], [1], [0, 0, 1, 1], [], []>} : vector<8x128xbf16>, vector<128x512xbf16>, vector<8x512xf32> -> vector<8x512xf32>
    %227 = arith.addf %224, %226 : vector<8x512xf32>
    %228 = vector.extract_strided_slice %227 {offsets = [0, 0], sizes = [8, 128], strides = [1, 1]} : vector<8x512xf32> to vector<8x128xf32>
    %229 = arith.negf %228 : vector<8x128xf32>
    %230 = math.exp %229 : vector<8x128xf32>
    %cst_63 = arith.constant 1.000000e+00 : f32
    %231 = vector.broadcast %cst_63 : f32 to vector<8x128xf32>
    %232 = arith.addf %231, %230 : vector<8x128xf32>
    %233 = arith.divf %231, %232 : vector<8x128xf32>
    %234 = vector.extract_strided_slice %227 {offsets = [0, 128], sizes = [8, 128], strides = [1, 1]} : vector<8x512xf32> to vector<8x128xf32>
    %235 = arith.negf %234 : vector<8x128xf32>
    %236 = math.exp %235 : vector<8x128xf32>
    %cst_64 = arith.constant 1.000000e+00 : f32
    %237 = vector.broadcast %cst_64 : f32 to vector<8x128xf32>
    %238 = arith.addf %237, %236 : vector<8x128xf32>
    %239 = arith.divf %237, %238 : vector<8x128xf32>
    %240 = vector.extract_strided_slice %227 {offsets = [0, 256], sizes = [8, 128], strides = [1, 1]} : vector<8x512xf32> to vector<8x128xf32>
    %241 = math.tanh %240 : vector<8x128xf32>
    %242 = vector.extract_strided_slice %227 {offsets = [0, 384], sizes = [8, 128], strides = [1, 1]} : vector<8x512xf32> to vector<8x128xf32>
    %243 = arith.negf %242 : vector<8x128xf32>
    %244 = math.exp %243 : vector<8x128xf32>
    %cst_65 = arith.constant 1.000000e+00 : f32
    %245 = vector.broadcast %cst_65 : f32 to vector<8x128xf32>
    %246 = arith.addf %245, %244 : vector<8x128xf32>
    %247 = arith.divf %245, %246 : vector<8x128xf32>
    %248 = arith.mulf %239, %215 : vector<8x128xf32>
    %249 = arith.mulf %233, %241 : vector<8x128xf32>
    %250 = arith.addf %248, %249 : vector<8x128xf32>
    %251 = math.tanh %250 : vector<8x128xf32>
    %252 = arith.mulf %247, %251 : vector<8x128xf32>
    %253 = arith.index_cast %c6_i32 : i32 to index
    %c0_66 = arith.constant 0 : index
    %c0_67 = arith.constant 0 : index
    %254 = vector.load %arg11[%253, %c0_66, %c0_67] : memref<8x8x128xf32, #tpu.memory_space<vmem>>, vector<1x8x128xf32>
    %255 = vector.shape_cast %254 : vector<1x8x128xf32> to vector<8x128xf32>
    %256 = vector.shape_cast %252 : vector<8x128xf32> to vector<1x8x128xf32>
    tpu.vector_store %arg11[%253, %c0_66, %c0_67], %256 {strides = array<i32>} : memref<8x8x128xf32, #tpu.memory_space<vmem>>, vector<1x8x128xf32>,
    %c7_i32 = arith.constant 7 : i32
    %257 = arith.index_cast %c7_i32 : i32 to index
    %c0_68 = arith.constant 0 : index
    %c0_69 = arith.constant 0 : index
    %258 = vector.load %arg12[%257, %c0_68, %c0_69] : memref<8x8x512xf32, #tpu.memory_space<vmem>>, vector<1x8x512xf32>
    %259 = vector.shape_cast %258 : vector<1x8x512xf32> to vector<8x512xf32>
    %260 = arith.truncf %252 : vector<8x128xf32> to vector<8x128xbf16>
    %cst_70 = arith.constant dense<0.000000e+00> : vector<8x512xf32>
    %261 = tpu.matmul %260, %10, %cst_70 {dimension_numbers = #tpu.dot_dimension_numbers<[1], [0], [0], [1], [0, 0, 1, 1], [], []>} : vector<8x128xbf16>, vector<128x512xbf16>, vector<8x512xf32> -> vector<8x512xf32>
    %262 = arith.addf %259, %261 : vector<8x512xf32>
    %263 = vector.extract_strided_slice %262 {offsets = [0, 0], sizes = [8, 128], strides = [1, 1]} : vector<8x512xf32> to vector<8x128xf32>
    %264 = arith.negf %263 : vector<8x128xf32>
    %265 = math.exp %264 : vector<8x128xf32>
    %cst_71 = arith.constant 1.000000e+00 : f32
    %266 = vector.broadcast %cst_71 : f32 to vector<8x128xf32>
    %267 = arith.addf %266, %265 : vector<8x128xf32>
    %268 = arith.divf %266, %267 : vector<8x128xf32>
    %269 = vector.extract_strided_slice %262 {offsets = [0, 128], sizes = [8, 128], strides = [1, 1]} : vector<8x512xf32> to vector<8x128xf32>
    %270 = arith.negf %269 : vector<8x128xf32>
    %271 = math.exp %270 : vector<8x128xf32>
    %cst_72 = arith.constant 1.000000e+00 : f32
    %272 = vector.broadcast %cst_72 : f32 to vector<8x128xf32>
    %273 = arith.addf %272, %271 : vector<8x128xf32>
    %274 = arith.divf %272, %273 : vector<8x128xf32>
    %275 = vector.extract_strided_slice %262 {offsets = [0, 256], sizes = [8, 128], strides = [1, 1]} : vector<8x512xf32> to vector<8x128xf32>
    %276 = math.tanh %275 : vector<8x128xf32>
    %277 = vector.extract_strided_slice %262 {offsets = [0, 384], sizes = [8, 128], strides = [1, 1]} : vector<8x512xf32> to vector<8x128xf32>
    %278 = arith.negf %277 : vector<8x128xf32>
    %279 = math.exp %278 : vector<8x128xf32>
    %cst_73 = arith.constant 1.000000e+00 : f32
    %280 = vector.broadcast %cst_73 : f32 to vector<8x128xf32>
    %281 = arith.addf %280, %279 : vector<8x128xf32>
    %282 = arith.divf %280, %281 : vector<8x128xf32>
    %283 = arith.mulf %274, %250 : vector<8x128xf32>
    %284 = arith.mulf %268, %276 : vector<8x128xf32>
    %285 = arith.addf %283, %284 : vector<8x128xf32>
    %286 = math.tanh %285 : vector<8x128xf32>
    %287 = arith.mulf %282, %286 : vector<8x128xf32>
    %288 = arith.index_cast %c7_i32 : i32 to index
    %c0_74 = arith.constant 0 : index
    %c0_75 = arith.constant 0 : index
    %289 = vector.load %arg11[%288, %c0_74, %c0_75] : memref<8x8x128xf32, #tpu.memory_space<vmem>>, vector<1x8x128xf32>
    %290 = vector.shape_cast %289 : vector<1x8x128xf32> to vector<8x128xf32>
    %291 = vector.shape_cast %287 : vector<8x128xf32> to vector<1x8x128xf32>
    tpu.vector_store %arg11[%288, %c0_74, %c0_75], %291 {strides = array<i32>} : memref<8x8x128xf32, #tpu.memory_space<vmem>>, vector<1x8x128xf32>,
    %c8_i32 = arith.constant 8 : i32
    %c0_76 = arith.constant 0 : index
    %c0_77 = arith.constant 0 : index
    %c0_78 = arith.constant 0 : index
    %292 = vector.load %arg11[%c0_76, %c0_77, %c0_78] : memref<8x8x128xf32, #tpu.memory_space<vmem>>, vector<8x8x128xf32>
    %293 = vector.shape_cast %292 : vector<8x8x128xf32> to vector<64x128xf32>
    %294 = arith.truncf %293 : vector<64x128xf32> to vector<64x128xbf16>
    %c0_79 = arith.constant 0 : index
    %c0_80 = arith.constant 0 : index
    %295 = vector.load %arg5[%c0_79, %c0_80] : memref<128x512xbf16, #tpu.memory_space<vmem>>, vector<128x512xbf16>
    %cst_81 = arith.constant dense<0.000000e+00> : vector<64x512xf32>
    %296 = tpu.matmul %294, %295, %cst_81 {dimension_numbers = #tpu.dot_dimension_numbers<[1], [0], [0], [1], [0, 0, 1, 1], [], []>} : vector<64x128xbf16>, vector<128x512xbf16>, vector<64x512xf32> -> vector<64x512xf32>
    %c0_82 = arith.constant 0 : index
    %c0_83 = arith.constant 0 : index
    %297 = vector.load %arg7[%c0_82, %c0_83] : memref<1x512xf32, #tpu.memory_space<vmem>>, vector<1x512xf32>
    %298 = vector.broadcast %297 : vector<1x512xf32> to vector<64x512xf32>
    %299 = arith.addf %296, %298 : vector<64x512xf32>
    %300 = vector.shape_cast %299 : vector<64x512xf32> to vector<8x8x512xf32>
    %c0_84 = arith.constant 0 : index
    %c0_85 = arith.constant 0 : index
    %c0_86 = arith.constant 0 : index
    %301 = vector.load %arg12[%c0_84, %c0_85, %c0_86] : memref<8x8x512xf32, #tpu.memory_space<vmem>>, vector<8x8x512xf32>
    tpu.vector_store %arg12[%c0_84, %c0_85, %c0_86], %300 {strides = array<i32>} : memref<8x8x512xf32, #tpu.memory_space<vmem>>, vector<8x8x512xf32>,
    %c0_87 = arith.constant 0 : index
    %c0_88 = arith.constant 0 : index
    %302 = vector.load %arg6[%c0_87, %c0_88] : memref<128x512xbf16, #tpu.memory_space<vmem>>, vector<128x512xbf16>
    %cst_89 = arith.constant 0.000000e+00 : f32
    %303 = vector.broadcast %cst_89 : f32 to vector<8x128xf32>
    %c0_i32_90 = arith.constant 0 : i32
    %304 = arith.index_cast %c0_i32_90 : i32 to index
    %c0_91 = arith.constant 0 : index
    %c0_92 = arith.constant 0 : index
    %305 = vector.load %arg12[%304, %c0_91, %c0_92] : memref<8x8x512xf32, #tpu.memory_space<vmem>>, vector<1x8x512xf32>
    %306 = vector.shape_cast %305 : vector<1x8x512xf32> to vector<8x512xf32>
    %307 = arith.truncf %303 : vector<8x128xf32> to vector<8x128xbf16>
    %cst_93 = arith.constant dense<0.000000e+00> : vector<8x512xf32>
    %308 = tpu.matmul %307, %302, %cst_93 {dimension_numbers = #tpu.dot_dimension_numbers<[1], [0], [0], [1], [0, 0, 1, 1], [], []>} : vector<8x128xbf16>, vector<128x512xbf16>, vector<8x512xf32> -> vector<8x512xf32>
    %309 = arith.addf %306, %308 : vector<8x512xf32>
    %310 = vector.extract_strided_slice %309 {offsets = [0, 0], sizes = [8, 128], strides = [1, 1]} : vector<8x512xf32> to vector<8x128xf32>
    %311 = arith.negf %310 : vector<8x128xf32>
    %312 = math.exp %311 : vector<8x128xf32>
    %cst_94 = arith.constant 1.000000e+00 : f32
    %313 = vector.broadcast %cst_94 : f32 to vector<8x128xf32>
    %314 = arith.addf %313, %312 : vector<8x128xf32>
    %315 = arith.divf %313, %314 : vector<8x128xf32>
    %316 = vector.extract_strided_slice %309 {offsets = [0, 128], sizes = [8, 128], strides = [1, 1]} : vector<8x512xf32> to vector<8x128xf32>
    %317 = arith.negf %316 : vector<8x128xf32>
    %318 = math.exp %317 : vector<8x128xf32>
    %cst_95 = arith.constant 1.000000e+00 : f32
    %319 = vector.broadcast %cst_95 : f32 to vector<8x128xf32>
    %320 = arith.addf %319, %318 : vector<8x128xf32>
    %321 = arith.divf %319, %320 : vector<8x128xf32>
    %322 = vector.extract_strided_slice %309 {offsets = [0, 256], sizes = [8, 128], strides = [1, 1]} : vector<8x512xf32> to vector<8x128xf32>
    %323 = math.tanh %322 : vector<8x128xf32>
    %324 = vector.extract_strided_slice %309 {offsets = [0, 384], sizes = [8, 128], strides = [1, 1]} : vector<8x512xf32> to vector<8x128xf32>
    %325 = arith.negf %324 : vector<8x128xf32>
    %326 = math.exp %325 : vector<8x128xf32>
    %cst_96 = arith.constant 1.000000e+00 : f32
    %327 = vector.broadcast %cst_96 : f32 to vector<8x128xf32>
    %328 = arith.addf %327, %326 : vector<8x128xf32>
    %329 = arith.divf %327, %328 : vector<8x128xf32>
    %330 = arith.mulf %321, %303 : vector<8x128xf32>
    %331 = arith.mulf %315, %323 : vector<8x128xf32>
    %332 = arith.addf %330, %331 : vector<8x128xf32>
    %333 = math.tanh %332 : vector<8x128xf32>
    %334 = arith.mulf %329, %333 : vector<8x128xf32>
    %c1_i32_97 = arith.constant 1 : i32
    %335 = arith.index_cast %c1_i32_97 : i32 to index
    %c0_98 = arith.constant 0 : index
    %c0_99 = arith.constant 0 : index
    %336 = vector.load %arg12[%335, %c0_98, %c0_99] : memref<8x8x512xf32, #tpu.memory_space<vmem>>, vector<1x8x512xf32>
    %337 = vector.shape_cast %336 : vector<1x8x512xf32> to vector<8x512xf32>
    %338 = arith.truncf %334 : vector<8x128xf32> to vector<8x128xbf16>
    %cst_100 = arith.constant dense<0.000000e+00> : vector<8x512xf32>
    %339 = tpu.matmul %338, %302, %cst_100 {dimension_numbers = #tpu.dot_dimension_numbers<[1], [0], [0], [1], [0, 0, 1, 1], [], []>} : vector<8x128xbf16>, vector<128x512xbf16>, vector<8x512xf32> -> vector<8x512xf32>
    %340 = arith.addf %337, %339 : vector<8x512xf32>
    %341 = vector.extract_strided_slice %340 {offsets = [0, 0], sizes = [8, 128], strides = [1, 1]} : vector<8x512xf32> to vector<8x128xf32>
    %342 = arith.negf %341 : vector<8x128xf32>
    %343 = math.exp %342 : vector<8x128xf32>
    %cst_101 = arith.constant 1.000000e+00 : f32
    %344 = vector.broadcast %cst_101 : f32 to vector<8x128xf32>
    %345 = arith.addf %344, %343 : vector<8x128xf32>
    %346 = arith.divf %344, %345 : vector<8x128xf32>
    %347 = vector.extract_strided_slice %340 {offsets = [0, 128], sizes = [8, 128], strides = [1, 1]} : vector<8x512xf32> to vector<8x128xf32>
    %348 = arith.negf %347 : vector<8x128xf32>
    %349 = math.exp %348 : vector<8x128xf32>
    %cst_102 = arith.constant 1.000000e+00 : f32
    %350 = vector.broadcast %cst_102 : f32 to vector<8x128xf32>
    %351 = arith.addf %350, %349 : vector<8x128xf32>
    %352 = arith.divf %350, %351 : vector<8x128xf32>
    %353 = vector.extract_strided_slice %340 {offsets = [0, 256], sizes = [8, 128], strides = [1, 1]} : vector<8x512xf32> to vector<8x128xf32>
    %354 = math.tanh %353 : vector<8x128xf32>
    %355 = vector.extract_strided_slice %340 {offsets = [0, 384], sizes = [8, 128], strides = [1, 1]} : vector<8x512xf32> to vector<8x128xf32>
    %356 = arith.negf %355 : vector<8x128xf32>
    %357 = math.exp %356 : vector<8x128xf32>
    %cst_103 = arith.constant 1.000000e+00 : f32
    %358 = vector.broadcast %cst_103 : f32 to vector<8x128xf32>
    %359 = arith.addf %358, %357 : vector<8x128xf32>
    %360 = arith.divf %358, %359 : vector<8x128xf32>
    %361 = arith.mulf %352, %332 : vector<8x128xf32>
    %362 = arith.mulf %346, %354 : vector<8x128xf32>
    %363 = arith.addf %361, %362 : vector<8x128xf32>
    %364 = math.tanh %363 : vector<8x128xf32>
    %365 = arith.mulf %360, %364 : vector<8x128xf32>
    %c2_i32_104 = arith.constant 2 : i32
    %366 = arith.index_cast %c2_i32_104 : i32 to index
    %c0_105 = arith.constant 0 : index
    %c0_106 = arith.constant 0 : index
    %367 = vector.load %arg12[%366, %c0_105, %c0_106] : memref<8x8x512xf32, #tpu.memory_space<vmem>>, vector<1x8x512xf32>
    %368 = vector.shape_cast %367 : vector<1x8x512xf32> to vector<8x512xf32>
    %369 = arith.truncf %365 : vector<8x128xf32> to vector<8x128xbf16>
    %cst_107 = arith.constant dense<0.000000e+00> : vector<8x512xf32>
    %370 = tpu.matmul %369, %302, %cst_107 {dimension_numbers = #tpu.dot_dimension_numbers<[1], [0], [0], [1], [0, 0, 1, 1], [], []>} : vector<8x128xbf16>, vector<128x512xbf16>, vector<8x512xf32> -> vector<8x512xf32>
    %371 = arith.addf %368, %370 : vector<8x512xf32>
    %372 = vector.extract_strided_slice %371 {offsets = [0, 0], sizes = [8, 128], strides = [1, 1]} : vector<8x512xf32> to vector<8x128xf32>
    %373 = arith.negf %372 : vector<8x128xf32>
    %374 = math.exp %373 : vector<8x128xf32>
    %cst_108 = arith.constant 1.000000e+00 : f32
    %375 = vector.broadcast %cst_108 : f32 to vector<8x128xf32>
    %376 = arith.addf %375, %374 : vector<8x128xf32>
    %377 = arith.divf %375, %376 : vector<8x128xf32>
    %378 = vector.extract_strided_slice %371 {offsets = [0, 128], sizes = [8, 128], strides = [1, 1]} : vector<8x512xf32> to vector<8x128xf32>
    %379 = arith.negf %378 : vector<8x128xf32>
    %380 = math.exp %379 : vector<8x128xf32>
    %cst_109 = arith.constant 1.000000e+00 : f32
    %381 = vector.broadcast %cst_109 : f32 to vector<8x128xf32>
    %382 = arith.addf %381, %380 : vector<8x128xf32>
    %383 = arith.divf %381, %382 : vector<8x128xf32>
    %384 = vector.extract_strided_slice %371 {offsets = [0, 256], sizes = [8, 128], strides = [1, 1]} : vector<8x512xf32> to vector<8x128xf32>
    %385 = math.tanh %384 : vector<8x128xf32>
    %386 = vector.extract_strided_slice %371 {offsets = [0, 384], sizes = [8, 128], strides = [1, 1]} : vector<8x512xf32> to vector<8x128xf32>
    %387 = arith.negf %386 : vector<8x128xf32>
    %388 = math.exp %387 : vector<8x128xf32>
    %cst_110 = arith.constant 1.000000e+00 : f32
    %389 = vector.broadcast %cst_110 : f32 to vector<8x128xf32>
    %390 = arith.addf %389, %388 : vector<8x128xf32>
    %391 = arith.divf %389, %390 : vector<8x128xf32>
    %392 = arith.mulf %383, %363 : vector<8x128xf32>
    %393 = arith.mulf %377, %385 : vector<8x128xf32>
    %394 = arith.addf %392, %393 : vector<8x128xf32>
    %395 = math.tanh %394 : vector<8x128xf32>
    %396 = arith.mulf %391, %395 : vector<8x128xf32>
    %c3_i32_111 = arith.constant 3 : i32
    %397 = arith.index_cast %c3_i32_111 : i32 to index
    %c0_112 = arith.constant 0 : index
    %c0_113 = arith.constant 0 : index
    %398 = vector.load %arg12[%397, %c0_112, %c0_113] : memref<8x8x512xf32, #tpu.memory_space<vmem>>, vector<1x8x512xf32>
    %399 = vector.shape_cast %398 : vector<1x8x512xf32> to vector<8x512xf32>
    %400 = arith.truncf %396 : vector<8x128xf32> to vector<8x128xbf16>
    %cst_114 = arith.constant dense<0.000000e+00> : vector<8x512xf32>
    %401 = tpu.matmul %400, %302, %cst_114 {dimension_numbers = #tpu.dot_dimension_numbers<[1], [0], [0], [1], [0, 0, 1, 1], [], []>} : vector<8x128xbf16>, vector<128x512xbf16>, vector<8x512xf32> -> vector<8x512xf32>
    %402 = arith.addf %399, %401 : vector<8x512xf32>
    %403 = vector.extract_strided_slice %402 {offsets = [0, 0], sizes = [8, 128], strides = [1, 1]} : vector<8x512xf32> to vector<8x128xf32>
    %404 = arith.negf %403 : vector<8x128xf32>
    %405 = math.exp %404 : vector<8x128xf32>
    %cst_115 = arith.constant 1.000000e+00 : f32
    %406 = vector.broadcast %cst_115 : f32 to vector<8x128xf32>
    %407 = arith.addf %406, %405 : vector<8x128xf32>
    %408 = arith.divf %406, %407 : vector<8x128xf32>
    %409 = vector.extract_strided_slice %402 {offsets = [0, 128], sizes = [8, 128], strides = [1, 1]} : vector<8x512xf32> to vector<8x128xf32>
    %410 = arith.negf %409 : vector<8x128xf32>
    %411 = math.exp %410 : vector<8x128xf32>
    %cst_116 = arith.constant 1.000000e+00 : f32
    %412 = vector.broadcast %cst_116 : f32 to vector<8x128xf32>
    %413 = arith.addf %412, %411 : vector<8x128xf32>
    %414 = arith.divf %412, %413 : vector<8x128xf32>
    %415 = vector.extract_strided_slice %402 {offsets = [0, 256], sizes = [8, 128], strides = [1, 1]} : vector<8x512xf32> to vector<8x128xf32>
    %416 = math.tanh %415 : vector<8x128xf32>
    %417 = vector.extract_strided_slice %402 {offsets = [0, 384], sizes = [8, 128], strides = [1, 1]} : vector<8x512xf32> to vector<8x128xf32>
    %418 = arith.negf %417 : vector<8x128xf32>
    %419 = math.exp %418 : vector<8x128xf32>
    %cst_117 = arith.constant 1.000000e+00 : f32
    %420 = vector.broadcast %cst_117 : f32 to vector<8x128xf32>
    %421 = arith.addf %420, %419 : vector<8x128xf32>
    %422 = arith.divf %420, %421 : vector<8x128xf32>
    %423 = arith.mulf %414, %394 : vector<8x128xf32>
    %424 = arith.mulf %408, %416 : vector<8x128xf32>
    %425 = arith.addf %423, %424 : vector<8x128xf32>
    %426 = math.tanh %425 : vector<8x128xf32>
    %427 = arith.mulf %422, %426 : vector<8x128xf32>
    %c4_i32_118 = arith.constant 4 : i32
    %428 = arith.index_cast %c4_i32_118 : i32 to index
    %c0_119 = arith.constant 0 : index
    %c0_120 = arith.constant 0 : index
    %429 = vector.load %arg12[%428, %c0_119, %c0_120] : memref<8x8x512xf32, #tpu.memory_space<vmem>>, vector<1x8x512xf32>
    %430 = vector.shape_cast %429 : vector<1x8x512xf32> to vector<8x512xf32>
    %431 = arith.truncf %427 : vector<8x128xf32> to vector<8x128xbf16>
    %cst_121 = arith.constant dense<0.000000e+00> : vector<8x512xf32>
    %432 = tpu.matmul %431, %302, %cst_121 {dimension_numbers = #tpu.dot_dimension_numbers<[1], [0], [0], [1], [0, 0, 1, 1], [], []>} : vector<8x128xbf16>, vector<128x512xbf16>, vector<8x512xf32> -> vector<8x512xf32>
    %433 = arith.addf %430, %432 : vector<8x512xf32>
    %434 = vector.extract_strided_slice %433 {offsets = [0, 0], sizes = [8, 128], strides = [1, 1]} : vector<8x512xf32> to vector<8x128xf32>
    %435 = arith.negf %434 : vector<8x128xf32>
    %436 = math.exp %435 : vector<8x128xf32>
    %cst_122 = arith.constant 1.000000e+00 : f32
    %437 = vector.broadcast %cst_122 : f32 to vector<8x128xf32>
    %438 = arith.addf %437, %436 : vector<8x128xf32>
    %439 = arith.divf %437, %438 : vector<8x128xf32>
    %440 = vector.extract_strided_slice %433 {offsets = [0, 128], sizes = [8, 128], strides = [1, 1]} : vector<8x512xf32> to vector<8x128xf32>
    %441 = arith.negf %440 : vector<8x128xf32>
    %442 = math.exp %441 : vector<8x128xf32>
    %cst_123 = arith.constant 1.000000e+00 : f32
    %443 = vector.broadcast %cst_123 : f32 to vector<8x128xf32>
    %444 = arith.addf %443, %442 : vector<8x128xf32>
    %445 = arith.divf %443, %444 : vector<8x128xf32>
    %446 = vector.extract_strided_slice %433 {offsets = [0, 256], sizes = [8, 128], strides = [1, 1]} : vector<8x512xf32> to vector<8x128xf32>
    %447 = math.tanh %446 : vector<8x128xf32>
    %448 = vector.extract_strided_slice %433 {offsets = [0, 384], sizes = [8, 128], strides = [1, 1]} : vector<8x512xf32> to vector<8x128xf32>
    %449 = arith.negf %448 : vector<8x128xf32>
    %450 = math.exp %449 : vector<8x128xf32>
    %cst_124 = arith.constant 1.000000e+00 : f32
    %451 = vector.broadcast %cst_124 : f32 to vector<8x128xf32>
    %452 = arith.addf %451, %450 : vector<8x128xf32>
    %453 = arith.divf %451, %452 : vector<8x128xf32>
    %454 = arith.mulf %445, %425 : vector<8x128xf32>
    %455 = arith.mulf %439, %447 : vector<8x128xf32>
    %456 = arith.addf %454, %455 : vector<8x128xf32>
    %457 = math.tanh %456 : vector<8x128xf32>
    %458 = arith.mulf %453, %457 : vector<8x128xf32>
    %c5_i32_125 = arith.constant 5 : i32
    %459 = arith.index_cast %c5_i32_125 : i32 to index
    %c0_126 = arith.constant 0 : index
    %c0_127 = arith.constant 0 : index
    %460 = vector.load %arg12[%459, %c0_126, %c0_127] : memref<8x8x512xf32, #tpu.memory_space<vmem>>, vector<1x8x512xf32>
    %461 = vector.shape_cast %460 : vector<1x8x512xf32> to vector<8x512xf32>
    %462 = arith.truncf %458 : vector<8x128xf32> to vector<8x128xbf16>
    %cst_128 = arith.constant dense<0.000000e+00> : vector<8x512xf32>
    %463 = tpu.matmul %462, %302, %cst_128 {dimension_numbers = #tpu.dot_dimension_numbers<[1], [0], [0], [1], [0, 0, 1, 1], [], []>} : vector<8x128xbf16>, vector<128x512xbf16>, vector<8x512xf32> -> vector<8x512xf32>
    %464 = arith.addf %461, %463 : vector<8x512xf32>
    %465 = vector.extract_strided_slice %464 {offsets = [0, 0], sizes = [8, 128], strides = [1, 1]} : vector<8x512xf32> to vector<8x128xf32>
    %466 = arith.negf %465 : vector<8x128xf32>
    %467 = math.exp %466 : vector<8x128xf32>
    %cst_129 = arith.constant 1.000000e+00 : f32
    %468 = vector.broadcast %cst_129 : f32 to vector<8x128xf32>
    %469 = arith.addf %468, %467 : vector<8x128xf32>
    %470 = arith.divf %468, %469 : vector<8x128xf32>
    %471 = vector.extract_strided_slice %464 {offsets = [0, 128], sizes = [8, 128], strides = [1, 1]} : vector<8x512xf32> to vector<8x128xf32>
    %472 = arith.negf %471 : vector<8x128xf32>
    %473 = math.exp %472 : vector<8x128xf32>
    %cst_130 = arith.constant 1.000000e+00 : f32
    %474 = vector.broadcast %cst_130 : f32 to vector<8x128xf32>
    %475 = arith.addf %474, %473 : vector<8x128xf32>
    %476 = arith.divf %474, %475 : vector<8x128xf32>
    %477 = vector.extract_strided_slice %464 {offsets = [0, 256], sizes = [8, 128], strides = [1, 1]} : vector<8x512xf32> to vector<8x128xf32>
    %478 = math.tanh %477 : vector<8x128xf32>
    %479 = vector.extract_strided_slice %464 {offsets = [0, 384], sizes = [8, 128], strides = [1, 1]} : vector<8x512xf32> to vector<8x128xf32>
    %480 = arith.negf %479 : vector<8x128xf32>
    %481 = math.exp %480 : vector<8x128xf32>
    %cst_131 = arith.constant 1.000000e+00 : f32
    %482 = vector.broadcast %cst_131 : f32 to vector<8x128xf32>
    %483 = arith.addf %482, %481 : vector<8x128xf32>
    %484 = arith.divf %482, %483 : vector<8x128xf32>
    %485 = arith.mulf %476, %456 : vector<8x128xf32>
    %486 = arith.mulf %470, %478 : vector<8x128xf32>
    %487 = arith.addf %485, %486 : vector<8x128xf32>
    %488 = math.tanh %487 : vector<8x128xf32>
    %489 = arith.mulf %484, %488 : vector<8x128xf32>
    %c6_i32_132 = arith.constant 6 : i32
    %490 = arith.index_cast %c6_i32_132 : i32 to index
    %c0_133 = arith.constant 0 : index
    %c0_134 = arith.constant 0 : index
    %491 = vector.load %arg12[%490, %c0_133, %c0_134] : memref<8x8x512xf32, #tpu.memory_space<vmem>>, vector<1x8x512xf32>
    %492 = vector.shape_cast %491 : vector<1x8x512xf32> to vector<8x512xf32>
    %493 = arith.truncf %489 : vector<8x128xf32> to vector<8x128xbf16>
    %cst_135 = arith.constant dense<0.000000e+00> : vector<8x512xf32>
    %494 = tpu.matmul %493, %302, %cst_135 {dimension_numbers = #tpu.dot_dimension_numbers<[1], [0], [0], [1], [0, 0, 1, 1], [], []>} : vector<8x128xbf16>, vector<128x512xbf16>, vector<8x512xf32> -> vector<8x512xf32>
    %495 = arith.addf %492, %494 : vector<8x512xf32>
    %496 = vector.extract_strided_slice %495 {offsets = [0, 0], sizes = [8, 128], strides = [1, 1]} : vector<8x512xf32> to vector<8x128xf32>
    %497 = arith.negf %496 : vector<8x128xf32>
    %498 = math.exp %497 : vector<8x128xf32>
    %cst_136 = arith.constant 1.000000e+00 : f32
    %499 = vector.broadcast %cst_136 : f32 to vector<8x128xf32>
    %500 = arith.addf %499, %498 : vector<8x128xf32>
    %501 = arith.divf %499, %500 : vector<8x128xf32>
    %502 = vector.extract_strided_slice %495 {offsets = [0, 128], sizes = [8, 128], strides = [1, 1]} : vector<8x512xf32> to vector<8x128xf32>
    %503 = arith.negf %502 : vector<8x128xf32>
    %504 = math.exp %503 : vector<8x128xf32>
    %cst_137 = arith.constant 1.000000e+00 : f32
    %505 = vector.broadcast %cst_137 : f32 to vector<8x128xf32>
    %506 = arith.addf %505, %504 : vector<8x128xf32>
    %507 = arith.divf %505, %506 : vector<8x128xf32>
    %508 = vector.extract_strided_slice %495 {offsets = [0, 256], sizes = [8, 128], strides = [1, 1]} : vector<8x512xf32> to vector<8x128xf32>
    %509 = math.tanh %508 : vector<8x128xf32>
    %510 = vector.extract_strided_slice %495 {offsets = [0, 384], sizes = [8, 128], strides = [1, 1]} : vector<8x512xf32> to vector<8x128xf32>
    %511 = arith.negf %510 : vector<8x128xf32>
    %512 = math.exp %511 : vector<8x128xf32>
    %cst_138 = arith.constant 1.000000e+00 : f32
    %513 = vector.broadcast %cst_138 : f32 to vector<8x128xf32>
    %514 = arith.addf %513, %512 : vector<8x128xf32>
    %515 = arith.divf %513, %514 : vector<8x128xf32>
    %516 = arith.mulf %507, %487 : vector<8x128xf32>
    %517 = arith.mulf %501, %509 : vector<8x128xf32>
    %518 = arith.addf %516, %517 : vector<8x128xf32>
    %519 = math.tanh %518 : vector<8x128xf32>
    %520 = arith.mulf %515, %519 : vector<8x128xf32>
    %c7_i32_139 = arith.constant 7 : i32
    %521 = arith.index_cast %c7_i32_139 : i32 to index
    %c0_140 = arith.constant 0 : index
    %c0_141 = arith.constant 0 : index
    %522 = vector.load %arg12[%521, %c0_140, %c0_141] : memref<8x8x512xf32, #tpu.memory_space<vmem>>, vector<1x8x512xf32>
    %523 = vector.shape_cast %522 : vector<1x8x512xf32> to vector<8x512xf32>
    %524 = arith.truncf %520 : vector<8x128xf32> to vector<8x128xbf16>
    %cst_142 = arith.constant dense<0.000000e+00> : vector<8x512xf32>
    %525 = tpu.matmul %524, %302, %cst_142 {dimension_numbers = #tpu.dot_dimension_numbers<[1], [0], [0], [1], [0, 0, 1, 1], [], []>} : vector<8x128xbf16>, vector<128x512xbf16>, vector<8x512xf32> -> vector<8x512xf32>
    %526 = arith.addf %523, %525 : vector<8x512xf32>
    %527 = vector.extract_strided_slice %526 {offsets = [0, 0], sizes = [8, 128], strides = [1, 1]} : vector<8x512xf32> to vector<8x128xf32>
    %528 = arith.negf %527 : vector<8x128xf32>
    %529 = math.exp %528 : vector<8x128xf32>
    %cst_143 = arith.constant 1.000000e+00 : f32
    %530 = vector.broadcast %cst_143 : f32 to vector<8x128xf32>
    %531 = arith.addf %530, %529 : vector<8x128xf32>
    %532 = arith.divf %530, %531 : vector<8x128xf32>
    %533 = vector.extract_strided_slice %526 {offsets = [0, 128], sizes = [8, 128], strides = [1, 1]} : vector<8x512xf32> to vector<8x128xf32>
    %534 = arith.negf %533 : vector<8x128xf32>
    %535 = math.exp %534 : vector<8x128xf32>
    %cst_144 = arith.constant 1.000000e+00 : f32
    %536 = vector.broadcast %cst_144 : f32 to vector<8x128xf32>
    %537 = arith.addf %536, %535 : vector<8x128xf32>
    %538 = arith.divf %536, %537 : vector<8x128xf32>
    %539 = vector.extract_strided_slice %526 {offsets = [0, 256], sizes = [8, 128], strides = [1, 1]} : vector<8x512xf32> to vector<8x128xf32>
    %540 = math.tanh %539 : vector<8x128xf32>
    %541 = vector.extract_strided_slice %526 {offsets = [0, 384], sizes = [8, 128], strides = [1, 1]} : vector<8x512xf32> to vector<8x128xf32>
    %542 = arith.negf %541 : vector<8x128xf32>
    %543 = math.exp %542 : vector<8x128xf32>
    %cst_145 = arith.constant 1.000000e+00 : f32
    %544 = vector.broadcast %cst_145 : f32 to vector<8x128xf32>
    %545 = arith.addf %544, %543 : vector<8x128xf32>
    %546 = arith.divf %544, %545 : vector<8x128xf32>
    %547 = arith.mulf %538, %518 : vector<8x128xf32>
    %548 = arith.mulf %532, %540 : vector<8x128xf32>
    %549 = arith.addf %547, %548 : vector<8x128xf32>
    %550 = math.tanh %549 : vector<8x128xf32>
    %551 = arith.mulf %546, %550 : vector<8x128xf32>
    %c8_i32_146 = arith.constant 8 : i32
    %552 = arith.truncf %551 : vector<8x128xf32> to vector<8x128xbf16>
    %c0_147 = arith.constant 0 : index
    %c0_148 = arith.constant 0 : index
    %553 = vector.load %arg8[%c0_147, %c0_148] : memref<128x128xbf16, #tpu.memory_space<vmem>>, vector<128x128xbf16>
    %cst_149 = arith.constant dense<0.000000e+00> : vector<8x128xf32>
    %554 = tpu.matmul %552, %553, %cst_149 {dimension_numbers = #tpu.dot_dimension_numbers<[1], [0], [0], [1], [0, 0, 1, 1], [], []>} : vector<8x128xbf16>, vector<128x128xbf16>, vector<8x128xf32> -> vector<8x128xf32>
    %c0_150 = arith.constant 0 : index
    %c0_151 = arith.constant 0 : index
    %555 = vector.load %arg9[%c0_150, %c0_151] : memref<1x128xf32, #tpu.memory_space<vmem>>, vector<1x128xf32>
    %556 = vector.broadcast %555 : vector<1x128xf32> to vector<8x128xf32>
    %557 = arith.addf %554, %556 : vector<8x128xf32>
    %c0_152 = arith.constant 0 : index
    %c0_153 = arith.constant 0 : index
    %558 = vector.load %arg10[%c0_152, %c0_153] : memref<8x128xf32, #tpu.memory_space<vmem>>, vector<8x128xf32>
    tpu.vector_store %arg10[%c0_152, %c0_153], %557 {strides = array<i32>} : memref<8x128xf32, #tpu.memory_space<vmem>>, vector<8x128xf32>,
    return
  }
  func.func @transform_0(%arg0: i32) -> (i32, i32, i32) {
    %c0_i32 = arith.constant 0 : i32
    %c0_i32_0 = arith.constant 0 : i32
    %c0_i32_1 = arith.constant 0 : i32
    return %c0_i32, %arg0, %c0_i32_0 : i32, i32, i32
  }
  func.func @transform_1(%arg0: i32) -> (i32, i32) {
    %c0_i32 = arith.constant 0 : i32
    %c0_i32_0 = arith.constant 0 : i32
    %c0_i32_1 = arith.constant 0 : i32
    return %c0_i32, %c0_i32_0 : i32, i32
  }
  func.func @transform_2(%arg0: i32) -> (i32, i32) {
    %c0_i32 = arith.constant 0 : i32
    %c0_i32_0 = arith.constant 0 : i32
    %c0_i32_1 = arith.constant 0 : i32
    return %c0_i32, %c0_i32_0 : i32, i32
  }
  func.func @transform_3(%arg0: i32) -> (i32, i32) {
    %c0_i32 = arith.constant 0 : i32
    %c0_i32_0 = arith.constant 0 : i32
    %c0_i32_1 = arith.constant 0 : i32
    return %c0_i32, %c0_i32_0 : i32, i32
  }
  func.func @transform_4(%arg0: i32) -> (i32, i32) {
    %c0_i32 = arith.constant 0 : i32
    %c0_i32_0 = arith.constant 0 : i32
    %c0_i32_1 = arith.constant 0 : i32
    return %c0_i32, %c0_i32_0 : i32, i32
  }
  func.func @transform_5(%arg0: i32) -> (i32, i32) {
    %c0_i32 = arith.constant 0 : i32
    %c0_i32_0 = arith.constant 0 : i32
    %c0_i32_1 = arith.constant 0 : i32
    return %c0_i32, %c0_i32_0 : i32, i32
  }
  func.func @transform_6(%arg0: i32) -> (i32, i32) {
    %c0_i32 = arith.constant 0 : i32
    %c0_i32_0 = arith.constant 0 : i32
    %c0_i32_1 = arith.constant 0 : i32
    return %c0_i32, %c0_i32_0 : i32, i32
  }
  func.func @transform_7(%arg0: i32) -> (i32, i32) {
    %c0_i32 = arith.constant 0 : i32
    %c0_i32_0 = arith.constant 0 : i32
    %c0_i32_1 = arith.constant 0 : i32
    return %c0_i32, %c0_i32_0 : i32, i32
  }
  func.func @transform_8(%arg0: i32) -> (i32, i32) {
    %c0_i32 = arith.constant 0 : i32
    %c0_i32_0 = arith.constant 0 : i32
    %c0_i32_1 = arith.constant 0 : i32
    return %c0_i32, %c0_i32_0 : i32, i32
  }
  func.func @transform_9(%arg0: i32) -> (i32, i32) {
    %c0_i32 = arith.constant 0 : i32
    %c0_i32_0 = arith.constant 0 : i32
    return %arg0, %c0_i32 : i32, i32
  }
}

</mosaic_0001>

<bundles_post_ra>
// kernel: tpu_custom_call.1
= control target key start
LH: loop header
LB: loop body
LE: loop exit
PB: predicated region body
PF: predicated region fallthrough
CT: control target
= control target key end

     0   :  { %14 = vsyncpa [#allocation5], 0  ;;  %s5258_s0 = inlined_call_operand.vmem [shape: f32[8,8,4], index: 0, kind: input, shape index: {}]   ;;  %s5259_s1 = inlined_call_operand.vmem [shape: bf16[4,512], index: 1, kind: input, shape index: {}]   ;;  %s5260_s2 = inlined_call_operand.hbm [shape: bf16[128,512], index: 2, kind: input, shape index: {}]   ;;  %s5261_s3 = inlined_call_operand.vmem [shape: f32[1,512], index: 3, kind: input, shape index: {}]   ;;  %s5262_s4 = inlined_call_operand.hbm [shape: bf16[128,512], index: 4, kind: input, shape index: {}]   ;;  %s5263_s5 = inlined_call_operand.hbm [shape: bf16[128,512], index: 5, kind: input, shape index: {}]   ;;  %s5264_s6 = inlined_call_operand.vmem [shape: f32[1,512], index: 6, kind: input, shape index: {}]   ;;  %s5265_s7 = inlined_call_operand.vmem [shape: bf16[128,128], index: 7, kind: input, shape index: {}]   ;;  %s5266_s8 = inlined_call_operand.vmem [shape: f32[1,128], index: 8, kind: input, shape index: {}]   ;;  %s5267_s9 = inlined_call_operand.hbm [shape: f32[8,128], index: 9, kind: output, shape index: {}]  }
   0x1   :  { %15 = vsyncpa [#allocation8], 0 }
   0x2   :  { %16 = vsyncpa [#allocation6], 0  ;;  %s3878_s30 = smov [#allocation7]   ;;  %s3879_s11 = smov [#allocation4]  }
   0x3   :  { %s40_s10 = sshll.u32 %s3878_s30, 4  ;;  %s26_s12 = sshll.u32 %s3879_s11, 4  ;;  %s41_s10 = int_to_ptr.vmem [resolvable:$true] %s40_s10  ;;  %s3938_s12 = int_to_ptr.vmem [resolvable:$true] %s26_s12 }
   0x4   :  { %s3784_s15 = scalar_lea.hbm %s5262_s4, 4096 }
   0x5   :  { %p3785_p0 = scmp.ne.s32.totalorder %s5262_s4, %s3784_s15  ;;  %p3788_p1 = scmp.lt.u32.totalorder %s3784_s15, %s5262_s4 }
   0x7   :  { %p3790_p2 = pnand %p3788_p1, %p3785_p0 }
   0x9   :  { %3793 = shalt.err (!%p3790_p2)
}
   0xa   :  { %s3794_s20 = scalar_lea.vmem %s41_s10, 4096  ;;  %p3799_p4 = scmp.lt.s32.totalorder %s41_s10, %s41_s10 }
   0xb   :  { %p3795_p3 = scmp.ne.s32.totalorder %s41_s10, %s3794_s20  ;;  %p3800_p5 = scmp.lt.s32.totalorder %s3794_s20, %s3794_s20 }
   0xd   :  { %p3801_p6 = por %p3800_p5, %p3799_p4 }
   0xf   :  { %p3802_p7 = pnand %p3801_p6, %p3795_p3 }
  0x11   :  { %3805 = shalt.err (!%p3802_p7)
}
  0x12   :  { %s3880_s21 = smov 256   ;;  %s3881_s22 = smov 16  }
  0x13   :  { %46 = dma.hbm_to_vmem [thread:$0]  %s5262_s4, 4096, %s41_s10, [#allocation8], %s3880_s21, %s3880_s21, %s3881_s22  }
  0x14   :  { %s3806_s27 = scalar_lea.hbm %s5260_s2, 4096 }
  0x15   :  { %p3807_p8 = scmp.ne.s32.totalorder %s5260_s2, %s3806_s27  ;;  %p3810_p9 = scmp.lt.u32.totalorder %s3806_s27, %s5260_s2 }
  0x17   :  { %p3812_p10 = pnand %p3810_p9, %p3807_p8 }
  0x19   :  { %3815 = shalt.err (!%p3812_p10)
}
  0x1a   :  { %s3816_s13 = scalar_lea.vmem %s3938_s12, 4096  ;;  %p3821_p12 = scmp.lt.s32.totalorder %s3938_s12, %s3938_s12 }
  0x1b   :  { %p3817_p11 = scmp.ne.s32.totalorder %s3938_s12, %s3816_s13  ;;  %p3822_p13 = scmp.lt.s32.totalorder %s3816_s13, %s3816_s13 }
  0x1d   :  { %p3823_p0 = por %p3822_p13, %p3821_p12 }
  0x1f   :  { %p3824_p1 = pnand %p3823_p0, %p3817_p11 }
  0x21   :  { %3827 = shalt.err (!%p3824_p1)
}
  0x22   :  { %32 = dma.hbm_to_vmem [thread:$0]  %s5260_s2, 4096, %s3938_s12, [#allocation5], %s3880_s21, %s3880_s21, %s3881_s22  }
  0x23   :  { %s3882_s14 = smov [#allocation9]   ;;  %s3828_s18 = scalar_lea.hbm %s5263_s5, 4096 }
  0x24   :  { %s52_s15 = sshll.u32 %s3882_s14, 4  ;;  %p3829_p2 = scmp.ne.s32.totalorder %s5263_s5, %s3828_s18  ;;  %s53_s15 = int_to_ptr.vmem [resolvable:$true] %s52_s15 }
  0x25   :  { %p3832_p3 = scmp.lt.u32.totalorder %s3828_s18, %s5263_s5 }
  0x27   :  { %p3834_p4 = pnand %p3832_p3, %p3829_p2 }
  0x29   :  { %3837 = shalt.err (!%p3834_p4)
}
  0x2a   :  { %s3838_s25 = scalar_lea.vmem %s53_s15, 4096  ;;  %p3843_p6 = scmp.lt.s32.totalorder %s53_s15, %s53_s15 }
  0x2b   :  { %p3839_p5 = scmp.ne.s32.totalorder %s53_s15, %s3838_s25  ;;  %p3844_p7 = scmp.lt.s32.totalorder %s3838_s25, %s3838_s25 }
  0x2d   :  { %p3845_p8 = por %p3844_p7, %p3843_p6 }
  0x2f   :  { %p3846_p9 = pnand %p3845_p8, %p3839_p5 }
  0x31   :  { %3849 = shalt.err (!%p3846_p9)
}
  0x32   :  { %58 = dma.hbm_to_vmem [thread:$0]  %s5263_s5, 4096, %s53_s15, [#allocation8], %s3880_s21, %s3880_s21, %s3881_s22  }
  0x33   :  { %3872 = dma.done.wait [#allocation5], 4096  }
  0x34   :  { %3873 = vsyncadd [#allocation5], 4294963200 }
  0x35   :  { %3874 = dma.done.wait [#allocation8], 8192  }
  0x36   :  { %3875 = vsyncadd [#allocation8], 4294959104  ;;  %v90_v0 = vlaneseq  ;;  %v3883_v1 = vmov 1983009808   ;;  %v5272_v3 = vmov 0   ;;  %v87_v7 = vld [vmem:[%s5259_s1] sm:$0xff] }
  0x37   :  { %v113_v2 = vunpack.c.l.s4 %v3883_v1  ;;  %186 = vmatprep.mubr.bf16.mxu0 %v5272_v3  ;;  %259 = vmatprep.mubr.bf16.mxu1 %v5272_v3  ;;  %vm141_vm0 = vcmask 1041408   ;;  %v111_v9 = vcombine.high %v87_v7, %v87_v7  ;;  %v75_v10 = vld [vmem:[%s5258_s0] sm:$0xff]  ;;  %v76_v11 = vld [vmem:[%s5258_s0 + $0x8] sm:$0xff]  ;;  %vm128_vm1 = vcmask 31744   ;;  %v77_v25 = vld [vmem:[%s5258_s0 + $0x10] sm:$0xff]  ;;  %s3887_s4 = smov [#allocation10]  }
  0x38   :  { %v3992_v4 = vshrl.u32 %v90_v0, 7  ;;  %v4005_v15 = vld [vmem:[#allocation4 + $0x4] ss:$16 sps:$4 sm:$0xff]   ;;  %v83_v18 = vpack.c.bf16 %v76_v11, %v75_v10  ;;  %v4009_v19 = vld [vmem:[#allocation4 + $0xc] ss:$16 sps:$4 sm:$0xff]   ;;  %vm3886_vm2 = vmmov 0  }
  0x39   :  { %v114_v5 = vunpack.c.0.s8 %v113_v2  ;;  %v4011_v20 = vld [vmem:[#allocation4] ss:$16 sps:$4 sm:$0xff]   ;;  %v4015_v21 = vld [vmem:[#allocation4 + $0x24] ss:$16 sps:$4 sm:$0xff]   ;;  %v4017_v22 = vld [vmem:[#allocation4 + $0x8] ss:$16 sps:$4 sm:$0xff]  }
  0x3a   :  { %5276 = vst [vmem:[#allocation14_spill] sm:$0xff] %v3992_v4  ;;  %v4021_v23 = vld [vmem:[#allocation4 + $0x20] ss:$16 sps:$4 sm:$0xff]   ;;  %v4023_v24 = vld [vmem:[#allocation4 + $0x2c] ss:$16 sps:$4 sm:$0xff]   ;;  %v5271_v59 = vsub.s32 0, %v3992_v4 }
  0x3b   :  { %v117_v6 = vsub.s32 %v114_v5, %v3992_v4  ;;  %v78_v26 = vld [vmem:[%s5258_s0 + $0x18] sm:$0xff]  ;;  %v4035_v27 = vld [vmem:[#allocation4 + $0x44] ss:$16 sps:$4 sm:$0xff]   ;;  %v4045_v31 = vld [vmem:[#allocation4 + $0x40] ss:$16 sps:$4 sm:$0xff]   ;;  %v5270_v60 = vsub.s32 2, %v3992_v4 }
  0x3c   :  { %v4038_v28 = vld [vmem:[#allocation4 + $0x28] ss:$16 sps:$4 sm:$0xff]   ;;  %v84_v29 = vpack.c.bf16 %v78_v26, %v77_v25  ;;  %v4042_v30 = vld [vmem:[#allocation4 + $0x4c] ss:$16 sps:$4 sm:$0xff]   ;;  %v4048_v32 = vld [vmem:[#allocation4 + $0x64] ss:$16 sps:$4 sm:$0xff]  }
  0x3d   :  { %v118_v8 = vrot.slane %v87_v7, %v117_v6  ;;  %v125_v14 = vrot.slane %v111_v9, %v117_v6  ;;  %v4051_v33 = vld [vmem:[#allocation4 + $0x48] ss:$16 sps:$4 sm:$0xff]   ;;  %v4055_v34 = vld [vmem:[#allocation4 + $0x6c] ss:$16 sps:$4 sm:$0xff]   ;;  %v4058_v35 = vld [vmem:[#allocation4 + $0x60] ss:$16 sps:$4 sm:$0xff]  }
  0x3e   :  { %v79_v36 = vld [vmem:[%s5258_s0 + $0x20] sm:$0xff]  ;;  %v80_v37 = vld [vmem:[%s5258_s0 + $0x28] sm:$0xff]  ;;  %v81_v47 = vld [vmem:[%s5258_s0 + $0x30] sm:$0xff]  ;;  %v5269_v62 = vsub.s32 1, %v3992_v4  ;;  %v5268_v63 = vsub.s32 3, %v3992_v4  ;;  %s3099_s10 = sshll.u32 %s3887_s4, 4  ;;  %s3100_s10 = int_to_ptr.vmem [resolvable:$true] %s3099_s10 }
  0x3f   :  { %v126_v12 = vcombine.high %v118_v8, %v118_v8  ;;  %v143_v13 = vsel %vm141_vm0, %v118_v8, 0  ;;  %v127_v16 = vcombine.high %v125_v14, %v125_v14  ;;  %v149_v17 = vsel %vm141_vm0, %v125_v14, 0  ;;  %v4069_v38 = vld [vmem:[#allocation4 + $0x84] ss:$16 sps:$4 sm:$0xff]   ;;  %v4072_v39 = vld [vmem:[#allocation4 + $0x68] ss:$16 sps:$4 sm:$0xff]   ;;  %p3855_p11 = scmp.lt.s32.totalorder %s3100_s10, %s3100_s10 }
  0x40   :  { %v85_v40 = vpack.c.bf16 %v80_v37, %v79_v36  ;;  %v4076_v41 = vld [vmem:[#allocation4 + $0x80] ss:$16 sps:$4 sm:$0xff]   ;;  %v4078_v42 = vld [vmem:[#allocation4 + $0x8c] ss:$16 sps:$4 sm:$0xff]   ;;  %v4081_v43 = vld [vmem:[#allocation4 + $0x88] ss:$16 sps:$4 sm:$0xff]  }
  0x41   :  { %3109 = vmatprep.subr.msk.bf16.mxu0 %vm141_vm0, %v126_v12  ;;  %3114 = vmatprep.subr.msk.bf16.mxu1 %vm141_vm0, %v127_v16  ;;  %v4083_v44 = vld [vmem:[#allocation4 + $0xa4] ss:$16 sps:$4 sm:$0xff]   ;;  %v4086_v45 = vld [vmem:[#allocation4 + $0xac] ss:$16 sps:$4 sm:$0xff]   ;;  %v4089_v46 = vld [vmem:[#allocation4 + $0xa0] ss:$16 sps:$4 sm:$0xff]  }
  0x42   :  { %155 = vmatpush1.bf16.msra.mxu0 %v143_v13  ;;  %228 = vmatpush1.bf16.msra.mxu1 %v149_v17  ;;  %v82_v48 = vld [vmem:[%s5258_s0 + $0x38] sm:$0xff]  ;;  %v4099_v49 = vld [vmem:[#allocation4 + $0xc4] ss:$16 sps:$4 sm:$0xff]   ;;  %v4111_v52 = vld [vmem:[#allocation4 + $0xc0] ss:$16 sps:$4 sm:$0xff]   ;;  %s3850_s14 = scalar_lea.vmem %s3100_s10, 128 }
  0x43   :  { %528 = vmatprep.subr.bf16.mxu0 %v4005_v15  ;;  %569 = vmatprep.subr.bf16.mxu1 %v4009_v19  ;;  %v4103_v50 = vld [vmem:[#allocation4 + $0xa8] ss:$16 sps:$4 sm:$0xff]   ;;  %v4107_v51 = vld [vmem:[#allocation4 + $0xcc] ss:$16 sps:$4 sm:$0xff]   ;;  %v86_v53 = vpack.c.bf16 %v82_v48, %v81_v47  ;;  %v4114_v54 = vld [vmem:[#allocation4 + $0xe4] ss:$16 sps:$4 sm:$0xff]   ;;  %p3851_p10 = scmp.ne.s32.totalorder %s3100_s10, %s3850_s14  ;;  %p3856_p12 = scmp.lt.s32.totalorder %s3850_s14, %s3850_s14 }
  0x44   :  { %v4117_v55 = vld [vmem:[#allocation4 + $0xc8] ss:$16 sps:$4 sm:$0xff]   ;;  %v4120_v56 = vld [vmem:[#allocation4 + $0xec] ss:$16 sps:$4 sm:$0xff]   ;;  %v4123_v57 = vld [vmem:[#allocation4 + $0xe0] ss:$16 sps:$4 sm:$0xff]  }
  0x45   :  { %3110 = vmatmul.mubr.msk.bf16.vlgmr.msra.gmra.mrb[0].mxu0 %vm128_vm1, %v83_v18  ;;  %3115 = vmatmul.mubr.msk.bf16.vlgmr.msra.gmra.mrb[0].mxu1 %vm128_vm1, %v83_v18  ;;  %v4129_v58 = vld [vmem:[#allocation4 + $0xe8] ss:$16 sps:$4 sm:$0xff]   ;;  %v88_v61 = vld [vmem:[%s5261_s3] sm:$0xf]  ;;  %p3857_p13 = por %p3856_p12, %p3855_p11 }
  0x46   :  { %529 = vmatpush1.bf16.msra.mxu0 %v4011_v20  ;;  %196 = vmatprep.mubr.bf16.mxu0 %v5272_v3  ;;  %v4187_v1 = vrot.slane %v88_v61, %v5271_v59  ;;  %v4193_v5 = vrot.slane %v88_v61, %v5270_v60  ;;  %v97_v6 = vrot.slane %v88_v61, %v5269_v62 }
  0x47   :  { %530 = vmatprep.subr.bf16.mxu0 %v4015_v21  ;;  %570 = vmatpush1.bf16.msra.mxu1 %v4017_v22  ;;  %v4199_v9 = vrot.slane %v88_v61, %v5268_v63  ;;  %p3858_p0 = pnand %p3857_p13, %p3851_p10 }
  0x48   :  { %269 = vmatprep.mubr.bf16.mxu1 %v5272_v3  ;;  %571 = vmatprep.subr.bf16.mxu1 %v4023_v24 }
  0x4a   :  { %531 = vmatpush1.bf16.msra.mxu0 %v4021_v23 }
  0x4b   :  { %532 = vmatprep.subr.bf16.mxu0 %v4035_v27  ;;  %572 = vmatpush1.bf16.msra.mxu1 %v4038_v28 }
  0x4c   :  { %573 = vmatprep.subr.bf16.mxu1 %v4042_v30 }
  0x4d   :  { %3111 = vmatmul.mubr.msk.bf16.gmra.mrb[4].mxu0 %vm128_vm1, %v84_v29  ;;  %3116 = vmatmul.mubr.msk.bf16.gmra.mrb[4].mxu1 %vm128_vm1, %v84_v29 }
  0x4e   :  { %533 = vmatpush1.bf16.msra.mxu0 %v4045_v31  ;;  %206 = vmatprep.mubr.bf16.mxu0 %v5272_v3 }
  0x4f   :  { %534 = vmatprep.subr.bf16.mxu0 %v4048_v32  ;;  %574 = vmatpush1.bf16.msra.mxu1 %v4051_v33 }
  0x50   :  { %279 = vmatprep.mubr.bf16.mxu1 %v5272_v3  ;;  %575 = vmatprep.subr.bf16.mxu1 %v4055_v34 }
  0x52   :  { %535 = vmatpush1.bf16.msra.mxu0 %v4058_v35 }
  0x53   :  { %536 = vmatprep.subr.bf16.mxu0 %v4069_v38  ;;  %576 = vmatpush1.bf16.msra.mxu1 %v4072_v39 }
  0x54   :  { %577 = vmatprep.subr.bf16.mxu1 %v4078_v42 }
  0x55   :  { %3112 = vmatmul.mubr.msk.bf16.gmra.mrb[8].mxu0 %vm128_vm1, %v85_v40  ;;  %3117 = vmatmul.mubr.msk.bf16.gmra.mrb[8].mxu1 %vm128_vm1, %v85_v40 }
  0x56   :  { %537 = vmatpush1.bf16.msra.mxu0 %v4076_v41  ;;  %216 = vmatprep.mubr.bf16.mxu0 %v5272_v3 }
  0x57   :  { %538 = vmatprep.subr.bf16.mxu0 %v4083_v44  ;;  %578 = vmatpush1.bf16.msra.mxu1 %v4081_v43 }
  0x58   :  { %289 = vmatprep.mubr.bf16.mxu1 %v5272_v3  ;;  %579 = vmatprep.subr.bf16.mxu1 %v4086_v45 }
  0x5a   :  { %539 = vmatpush1.bf16.msra.mxu0 %v4089_v46 }
  0x5b   :  { %540 = vmatprep.subr.bf16.mxu0 %v4099_v49  ;;  %580 = vmatpush1.bf16.msra.mxu1 %v4103_v50 }
  0x5c   :  { %581 = vmatprep.subr.bf16.mxu1 %v4107_v51 }
  0x5d   :  { %3113 = vmatmul.mubr.msk.bf16.gmra.mrb[12].mxu0 %vm128_vm1, %v86_v53  ;;  %3118 = vmatmul.mubr.msk.bf16.gmra.mrb[12].mxu1 %vm128_vm1, %v86_v53 }
  0x5e   :  { %541 = vmatpush1.bf16.msra.mxu0 %v4111_v52  ;;  %560 = vmatprep.mubr.bf16.mxu0 %v5272_v3 }
  0x5f   :  { %542 = vmatprep.subr.bf16.mxu0 %v4114_v54  ;;  %582 = vmatpush1.bf16.msra.mxu1 %v4117_v55 }
  0x60   :  { %601 = vmatprep.mubr.bf16.mxu1 %v5272_v3  ;;  %583 = vmatprep.subr.bf16.mxu1 %v4120_v56 }
  0x62   :  { %543 = vmatpush1.bf16.msra.mxu0 %v4123_v57 }
  0x63   :  { %645 = vmatprep.subr.bf16.mxu0 %v4005_v15  ;;  %584 = vmatpush1.bf16.msra.mxu1 %v4129_v58 }
  0x64   :  { %686 = vmatprep.subr.bf16.mxu1 %v4009_v19 }
  0x65   :  { %561 = vmatmul.mubr.bf16.vlgmr.msra.gmra.mrb[16].mxu0 %v5272_v3 }
  0x66   :  { %646 = vmatpush1.bf16.msra.mxu0 %v4011_v20  ;;  %677 = vmatprep.mubr.bf16.mxu0 %v5272_v3 }
  0x67   :  { %602 = vmatmul.mubr.bf16.vlgmr.msra.gmra.mrb[16].mxu1 %v5272_v3  ;;  %647 = vmatprep.subr.bf16.mxu0 %v4015_v21 }
  0x68   :  { %687 = vmatpush1.bf16.msra.mxu1 %v4017_v22  ;;  %718 = vmatprep.mubr.bf16.mxu1 %v5272_v3 }
  0x69   :  { %688 = vmatprep.subr.bf16.mxu1 %v4023_v24 }
  0x6a   :  { %648 = vmatpush1.bf16.msra.mxu0 %v4021_v23 }
  0x6b   :  { %649 = vmatprep.subr.bf16.mxu0 %v4035_v27 }
  0x6c   :  { %689 = vmatpush1.bf16.msra.mxu1 %v4038_v28 }
  0x6d   :  { %690 = vmatprep.subr.bf16.mxu1 %v4042_v30 }
  0x6e   :  { %650 = vmatpush1.bf16.msra.mxu0 %v4045_v31 }
  0x6f   :  { %651 = vmatprep.subr.bf16.mxu0 %v4048_v32 }
  0x70   :  { %691 = vmatpush1.bf16.msra.mxu1 %v4051_v33 }
  0x71   :  { %692 = vmatprep.subr.bf16.mxu1 %v4055_v34 }
  0x72   :  { %652 = vmatpush1.bf16.msra.mxu0 %v4058_v35 }
  0x73   :  { %653 = vmatprep.subr.bf16.mxu0 %v4069_v38 }
  0x74   :  { %693 = vmatpush1.bf16.msra.mxu1 %v4072_v39 }
  0x75   :  { %694 = vmatprep.subr.bf16.mxu1 %v4078_v42 }
  0x76   :  { %654 = vmatpush1.bf16.msra.mxu0 %v4076_v41 }
  0x77   :  { %655 = vmatprep.subr.bf16.mxu0 %v4083_v44 }
  0x78   :  { %695 = vmatpush1.bf16.msra.mxu1 %v4081_v43 }
  0x79   :  { %696 = vmatprep.subr.bf16.mxu1 %v4086_v45 }
  0x7a   :  { %656 = vmatpush1.bf16.msra.mxu0 %v4089_v46 }
  0x7b   :  { %657 = vmatprep.subr.bf16.mxu0 %v4099_v49 }
  0x7c   :  { %697 = vmatpush1.bf16.msra.mxu1 %v4103_v50 }
  0x7d   :  { %698 = vmatprep.subr.bf16.mxu1 %v4107_v51 }
  0x7e   :  { %658 = vmatpush1.bf16.msra.mxu0 %v4111_v52 }
  0x7f   :  { %659 = vmatprep.subr.bf16.mxu0 %v4114_v54 }
  0x80   :  { %699 = vmatpush1.bf16.msra.mxu1 %v4117_v55 }
  0x81   :  { %700 = vmatprep.subr.bf16.mxu1 %v4120_v56 }
  0x82   :  { %660 = vmatpush1.bf16.msra.mxu0 %v4123_v57 }
  0x83   :  { %763 = vmatprep.subr.bf16.mxu0 %v4005_v15 }
  0x84   :  { %701 = vmatpush1.bf16.msra.mxu1 %v4129_v58 }
  0x85   :  { %804 = vmatprep.subr.bf16.mxu1 %v4009_v19 }
 0x118   :  { %v4183_v0 = vpop.f32.mrb[0].mxu0  ;;  %v261_v8 = vpop.f32.mrb[0].mxu1 }
 0x119   :  { %v4189_v2 = vpop.f32.mrb[1].mxu0  ;;  %v263_v12 = vpop.f32.mrb[1].mxu1 }
 0x11a   :  { %v192_v7 = vpop.f32.mrb[2].mxu0  ;;  %v265_v14 = vpop.f32.mrb[2].mxu1 }
 0x11b   :  { %v4202_v10 = vadd.f32 %v192_v7, %v4187_v1  ;;  %v194_v11 = vpop.f32.mrb[3].mxu0  ;;  %v4207_v16 = vadd.f32 %v265_v14, %v4193_v5  ;;  %v267_v17 = vpop.f32.mrb[3].mxu1 }
 0x11c   :  { %v4204_v13 = vadd.f32 %v194_v11, %v97_v6  ;;  %v4210_v18 = vadd.f32 %v267_v17, %v4199_v9 }
 0x120   :  { %v198_v25 = vpop.f32.mrb[4].mxu0  ;;  %v271_v40 = vpop.f32.mrb[4].mxu1 }
 0x121   :  { %v4213_v26 = vadd.f32 %v198_v25, %v4187_v1  ;;  %v200_v29 = vpop.f32.mrb[5].mxu0  ;;  %v4221_v53 = vadd.f32 %v271_v40, %v4193_v5  ;;  %v273_v61 = vpop.f32.mrb[5].mxu1 }
 0x122   :  { %v4215_v36 = vadd.f32 %v200_v29, %v97_v6  ;;  %v202_v37 = vpop.f32.mrb[6].mxu0  ;;  %v4226_v11 = vadd.f32 %v273_v61, %v4199_v9  ;;  %v275_v14 = vpop.f32.mrb[6].mxu1 }
 0x123   :  { %v4218_v47 = vadd.f32 %v202_v37, %v4187_v1  ;;  %v204_v48 = vpop.f32.mrb[7].mxu0  ;;  %v4229_v17 = vadd.f32 %v275_v14, %v4193_v5  ;;  %v277_v25 = vpop.f32.mrb[7].mxu1 }
 0x124   :  { %v4223_v7 = vadd.f32 %v204_v48, %v97_v6  ;;  %5279 = vst [vmem:[#allocation17_spill] sm:$0xff] %v4226_v11  ;;  %v4232_v29 = vadd.f32 %v277_v25, %v4199_v9 }
 0x125   :  { %5277 = vst [vmem:[#allocation15_spill] sm:$0xff] %v4218_v47  ;;  %5280 = vst [vmem:[#allocation18_spill] sm:$0xff] %v4229_v17 }
 0x126   :  { %5278 = vst [vmem:[#allocation16_spill] sm:$0xff] %v4223_v7  ;;  %5281 = vst [vmem:[#allocation19_spill] sm:$0xff] %v4232_v29 }
 0x128   :  { %v208_v37 = vpop.f32.mrb[8].mxu0  ;;  %v281_v60 = vpop.f32.mrb[8].mxu1 }
 0x129   :  { %v4235_v63 = vadd.f32 %v208_v37, %v4187_v1  ;;  %v210_v40 = vpop.f32.mrb[9].mxu0  ;;  %v4243_v14 = vadd.f32 %v281_v60, %v4193_v5  ;;  %v283_v3 = vpop.f32.mrb[9].mxu1 }
 0x12a   :  { %v4237_v62 = vadd.f32 %v210_v40, %v97_v6  ;;  %v212_v48 = vpop.f32.mrb[10].mxu0  ;;  %v4248_v25 = vadd.f32 %v283_v3, %v4199_v9  ;;  %v285_v37 = vpop.f32.mrb[10].mxu1 }
 0x12b   :  { %5282 = vst [vmem:[#allocation20_spill] sm:$0xff] %v4235_v63  ;;  %v4240_v61 = vadd.f32 %v212_v48, %v4187_v1  ;;  %v214_v59 = vpop.f32.mrb[11].mxu0  ;;  %5285 = vst [vmem:[#allocation23_spill] sm:$0xff] %v4243_v14  ;;  %v4251_v63 = vadd.f32 %v285_v37, %v4193_v5  ;;  %v287_v40 = vpop.f32.mrb[11].mxu1 }
 0x12c   :  { %5283 = vst [vmem:[#allocation21_spill] sm:$0xff] %v4237_v62  ;;  %v4245_v4 = vadd.f32 %v214_v59, %v97_v6  ;;  %5287 = vst [vmem:[#allocation25_spill] sm:$0xff] %v4248_v25  ;;  %v4254_v62 = vadd.f32 %v287_v40, %v4199_v9 }
 0x12d   :  { %5284 = vst [vmem:[#allocation22_spill] sm:$0xff] %v4240_v61  ;;  %5288 = vst [vmem:[#allocation26_spill] sm:$0xff] %v4251_v63 }
 0x12e   :  { %5286 = vst [vmem:[#allocation24_spill] sm:$0xff] %v4245_v4  ;;  %5289 = vst [vmem:[#allocation27_spill] sm:$0xff] %v4254_v62 }
 0x130   :  { %v218_v48 = vpop.f32.mrb[12].mxu0  ;;  %v291_v4 = vpop.f32.mrb[12].mxu1 }
 0x131   :  { %v4257_v61 = vadd.f32 %v218_v48, %v4187_v1  ;;  %v220_v60 = vpop.f32.mrb[13].mxu0  ;;  %v4265_v37 = vadd.f32 %v291_v4, %v4193_v5  ;;  %v293_v63 = vpop.f32.mrb[13].mxu1  ;;  %v191_v4 = vadd.f32 %v4189_v2, %v97_v6 }
 0x132   :  { %v4259_v14 = vadd.f32 %v220_v60, %v97_v6  ;;  %v222_v59 = vpop.f32.mrb[14].mxu0  ;;  %v4270_v40 = vadd.f32 %v293_v63, %v4199_v9  ;;  %v295_v48 = vpop.f32.mrb[14].mxu1  ;;  %v264_v63 = vadd.f32 %v263_v12, %v4199_v9 }
 0x133   :  { %5290 = vst [vmem:[#allocation28_spill] sm:$0xff] %v4257_v61  ;;  %v4262_v3 = vadd.f32 %v222_v59, %v4187_v1  ;;  %v224_v25 = vpop.f32.mrb[15].mxu0  ;;  %5293 = vst [vmem:[#allocation31_spill] sm:$0xff] %v4265_v37  ;;  %v4273_v61 = vadd.f32 %v295_v48, %v4193_v5  ;;  %v297_v60 = vpop.f32.mrb[15].mxu1  ;;  %v189_v59 = vadd.f32 %v4183_v0, %v4187_v1 }
 0x134   :  { %5291 = vst [vmem:[#allocation29_spill] sm:$0xff] %v4259_v14  ;;  %v4267_v29 = vadd.f32 %v224_v25, %v97_v6  ;;  %5295 = vst [vmem:[#allocation33_spill] sm:$0xff] %v4270_v40  ;;  %v4276_v14 = vadd.f32 %v297_v60, %v4199_v9  ;;  %v262_v25 = vadd.f32 %v261_v8, %v4193_v5 }
 0x135   :  { %5292 = vst [vmem:[#allocation30_spill] sm:$0xff] %v4262_v3  ;;  %5296 = vst [vmem:[#allocation34_spill] sm:$0xff] %v4273_v61 }
 0x136   :  { %5294 = vst [vmem:[#allocation32_spill] sm:$0xff] %v4267_v29  ;;  %5297 = vst [vmem:[#allocation35_spill] sm:$0xff] %v4276_v14 }
 0x138   :  { %v562_v3 = vpop.f32.mrb[16].mxu0 }
 0x139   :  { %v610_v29 = vadd.f32 %v562_v3, %v189_v59  ;;  %v564_v37 = vpop.f32.mrb[17].mxu0 }
 0x13a   :  { %v611_v40 = vadd.f32 %v564_v37, %v191_v4  ;;  %v566_v62 = vpop.f32.mrb[18].mxu0  ;;  %v603_v48 = vpop.f32.mrb[16].mxu1 }
 0x13b   :  { %v3151_v61 = vmul.f32 -1.442695, %v610_v29  ;;  %v612_v7 = vadd.f32 %v603_v48, %v262_v25  ;;  %v567_v17 = vpop.f32.mrb[19].mxu0  ;;  %v605_v60 = vpop.f32.mrb[17].mxu1 }
 0x13c   :  { %v3152_v14 = vmul.f32 -1.442695, %v611_v40  ;;  %v613_v47 = vadd.f32 %v605_v60, %v264_v63  ;;  %v607_v11 = vpop.f32.mrb[18].mxu1  ;;  %v5298_v40 = vmov 0  }
 0x13d   :  { %3464 = vpow2.f32 %v3151_v61  ;;  %v608_v0 = vpop.f32.mrb[19].mxu1 }
 0x13e   :  { %3466 = vpow2.f32 %v3152_v14  ;;  %v3153_v1 = vmul.f32 -1.442695, %v613_v47 }
 0x140   :  { %3468 = vpow2.f32 %v3153_v1 }
 0x141   :  { %3470 = vtanh.f32 %v612_v7 }
 0x147   :  { %v3465_v2 = vpop.eup %3464 }
 0x148   :  { %v3467_v5 = vpop.eup %3466  ;;  %v617_v6 = vadd.f32 1.0, %v3465_v2 }
 0x149   :  { %v623_v8 = vadd.f32 1.0, %v3467_v5 }
 0x14a   :  { %3472 = vrcp.f32 %v617_v6  ;;  %v3469_v62 = vpop.eup %3468 }
 0x14b   :  { %3474 = vrcp.f32 %v623_v8  ;;  %v3471_v9 = vpop.eup %3470  ;;  %v630_v3 = vadd.f32 1.0, %v3469_v62 }
 0x14d   :  { %3476 = vrcp.f32 %v630_v3 }
 0x154   :  { %v3473_v12 = vpop.eup %3472 }
 0x155   :  { %v3475_v17 = vpop.eup %3474  ;;  %v634_v29 = vmul.f32 %v3473_v12, %v3471_v9 }
 0x156   :  { %v633_v37 = vmul.f32 0.0, %v3475_v17 }
 0x157   :  { %v3477_v47 = vpop.eup %3476 }
 0x158   :  { %v4283_v11 = vadd.f32 %v634_v29, %v633_v37 }
 0x15a   :  { %3478 = vtanh.f32 %v4283_v11 }
 0x164   :  { %v3479_v61 = vpop.eup %3478 }
 0x165   :  { %v4286_v14 = vmul.f32 %v3479_v61, %v3477_v47 }
 0x167   :  { %v644_v7 = vpack.c.bf16 %v4286_v14, %v4286_v14 }
 0x169   :  { %678 = vmatmul.mubr.bf16.vlgmr.msra.gmra.mrb[20].mxu0 %v644_v7  ;;  %719 = vmatmul.mubr.bf16.vlgmr.msra.gmra.mrb[20].mxu1 %v644_v7 }
 0x16a   :  { %764 = vmatpush1.bf16.msra.mxu0 %v4011_v20  ;;  %805 = vmatpush1.bf16.msra.mxu1 %v4017_v22 }
 0x16b   :  { %765 = vmatprep.subr.bf16.mxu0 %v4015_v21  ;;  %806 = vmatprep.subr.bf16.mxu1 %v4023_v24 }
 0x16c   :  { %795 = vmatprep.mubr.bf16.mxu0 %v5298_v40  ;;  %836 = vmatprep.mubr.bf16.mxu1 %v5298_v40 }
 0x16e   :  { %766 = vmatpush1.bf16.msra.mxu0 %v4021_v23  ;;  %807 = vmatpush1.bf16.msra.mxu1 %v4038_v28 }
 0x16f   :  { %767 = vmatprep.subr.bf16.mxu0 %v4035_v27  ;;  %808 = vmatprep.subr.bf16.mxu1 %v4042_v30 }
 0x172   :  { %768 = vmatpush1.bf16.msra.mxu0 %v4045_v31  ;;  %809 = vmatpush1.bf16.msra.mxu1 %v4051_v33 }
 0x173   :  { %769 = vmatprep.subr.bf16.mxu0 %v4048_v32  ;;  %810 = vmatprep.subr.bf16.mxu1 %v4055_v34 }
 0x176   :  { %770 = vmatpush1.bf16.msra.mxu0 %v4058_v35  ;;  %811 = vmatpush1.bf16.msra.mxu1 %v4072_v39 }
 0x177   :  { %771 = vmatprep.subr.bf16.mxu0 %v4069_v38  ;;  %812 = vmatprep.subr.bf16.mxu1 %v4078_v42 }
 0x17a   :  { %772 = vmatpush1.bf16.msra.mxu0 %v4076_v41  ;;  %813 = vmatpush1.bf16.msra.mxu1 %v4081_v43 }
 0x17b   :  { %773 = vmatprep.subr.bf16.mxu0 %v4083_v44  ;;  %814 = vmatprep.subr.bf16.mxu1 %v4086_v45 }
 0x17e   :  { %774 = vmatpush1.bf16.msra.mxu0 %v4089_v46  ;;  %815 = vmatpush1.bf16.msra.mxu1 %v4103_v50 }
 0x17f   :  { %775 = vmatprep.subr.bf16.mxu0 %v4099_v49  ;;  %816 = vmatprep.subr.bf16.mxu1 %v4107_v51 }
 0x182   :  { %776 = vmatpush1.bf16.msra.mxu0 %v4111_v52  ;;  %817 = vmatpush1.bf16.msra.mxu1 %v4117_v55 }
 0x183   :  { %777 = vmatprep.subr.bf16.mxu0 %v4114_v54  ;;  %818 = vmatprep.subr.bf16.mxu1 %v4120_v56 }
 0x186   :  { %778 = vmatpush1.bf16.msra.mxu0 %v4123_v57  ;;  %819 = vmatpush1.bf16.msra.mxu1 %v4129_v58 }
 0x187   :  { %881 = vmatprep.subr.bf16.mxu0 %v4005_v15  ;;  %922 = vmatprep.subr.bf16.mxu1 %v4009_v19 }
 0x23c   :  { %v679_v59 = vpop.f32.mrb[20].mxu0  ;;  %v720_v4 = vpop.f32.mrb[20].mxu1 }
 0x23d   :  { %v727_v25 = vadd.f32 %v679_v59, %v4202_v10  ;;  %v729_v63 = vadd.f32 %v720_v4, %v4207_v16  ;;  %v681_v48 = vpop.f32.mrb[21].mxu0  ;;  %v722_v60 = vpop.f32.mrb[21].mxu1 }
 0x23e   :  { %v728_v0 = vadd.f32 %v681_v48, %v4204_v13  ;;  %v730_v1 = vadd.f32 %v722_v60, %v4210_v18  ;;  %v683_v2 = vpop.f32.mrb[22].mxu0  ;;  %v724_v5 = vpop.f32.mrb[22].mxu1 }
 0x23f   :  { %v3154_v6 = vmul.f32 -1.442695, %v727_v25  ;;  %v684_v8 = vpop.f32.mrb[23].mxu0  ;;  %v725_v62 = vpop.f32.mrb[23].mxu1 }
 0x240   :  { %v3155_v9 = vmul.f32 -1.442695, %v728_v0  ;;  %v3156_v12 = vmul.f32 -1.442695, %v730_v1  ;;  %v5299_v8 = vld [vmem:[#allocation17_spill] sm:$0xff] }
 0x241   :  { %3480 = vpow2.f32 %v3154_v6 }
 0x242   :  { %3482 = vpow2.f32 %v3155_v9 }
 0x243   :  { %3484 = vpow2.f32 %v3156_v12 }
 0x244   :  { %3486 = vtanh.f32 %v729_v63 }
 0x24b   :  { %v3481_v17 = vpop.eup %3480 }
 0x24c   :  { %v3483_v29 = vpop.eup %3482  ;;  %v734_v10 = vadd.f32 1.0, %v3481_v17 }
 0x24d   :  { %v740_v16 = vadd.f32 1.0, %v3483_v29  ;;  %v3485_v13 = vpop.eup %3484 }
 0x24e   :  { %3488 = vrcp.f32 %v734_v10  ;;  %v3487_v3 = vpop.eup %3486  ;;  %v747_v61 = vadd.f32 1.0, %v3485_v13 }
 0x24f   :  { %3490 = vrcp.f32 %v740_v16 }
 0x250   :  { %3492 = vrcp.f32 %v747_v61 }
 0x258   :  { %v3489_v18 = vpop.eup %3488 }
 0x259   :  { %v3491_v37 = vpop.eup %3490  ;;  %v751_v47 = vmul.f32 %v3489_v18, %v3487_v3 }
 0x25a   :  { %v750_v7 = vmul.f32 %v3491_v37, %v4283_v11  ;;  %v3493_v4 = vpop.eup %3492 }
 0x25c   :  { %v4329_v59 = vadd.f32 %v751_v47, %v750_v7 }
 0x25e   :  { %3494 = vtanh.f32 %v4329_v59 }
 0x268   :  { %v3495_v25 = vpop.eup %3494 }
 0x269   :  { %v4332_v48 = vmul.f32 %v3495_v25, %v3493_v4 }
 0x26b   :  { %v762_v63 = vpack.c.bf16 %v4332_v48, %v4332_v48 }
 0x26d   :  { %796 = vmatmul.mubr.bf16.vlgmr.msra.gmra.mrb[24].mxu0 %v762_v63  ;;  %837 = vmatmul.mubr.bf16.vlgmr.msra.gmra.mrb[24].mxu1 %v762_v63 }
 0x26e   :  { %882 = vmatpush1.bf16.msra.mxu0 %v4011_v20  ;;  %923 = vmatpush1.bf16.msra.mxu1 %v4017_v22 }
 0x26f   :  { %883 = vmatprep.subr.bf16.mxu0 %v4015_v21  ;;  %924 = vmatprep.subr.bf16.mxu1 %v4023_v24 }
 0x270   :  { %913 = vmatprep.mubr.bf16.mxu0 %v5298_v40  ;;  %954 = vmatprep.mubr.bf16.mxu1 %v5298_v40 }
 0x272   :  { %884 = vmatpush1.bf16.msra.mxu0 %v4021_v23  ;;  %925 = vmatpush1.bf16.msra.mxu1 %v4038_v28 }
 0x273   :  { %885 = vmatprep.subr.bf16.mxu0 %v4035_v27  ;;  %926 = vmatprep.subr.bf16.mxu1 %v4042_v30 }
 0x276   :  { %886 = vmatpush1.bf16.msra.mxu0 %v4045_v31  ;;  %927 = vmatpush1.bf16.msra.mxu1 %v4051_v33 }
 0x277   :  { %887 = vmatprep.subr.bf16.mxu0 %v4048_v32  ;;  %928 = vmatprep.subr.bf16.mxu1 %v4055_v34 }
 0x27a   :  { %888 = vmatpush1.bf16.msra.mxu0 %v4058_v35  ;;  %929 = vmatpush1.bf16.msra.mxu1 %v4072_v39 }
 0x27b   :  { %889 = vmatprep.subr.bf16.mxu0 %v4069_v38  ;;  %930 = vmatprep.subr.bf16.mxu1 %v4078_v42 }
 0x27e   :  { %890 = vmatpush1.bf16.msra.mxu0 %v4076_v41  ;;  %931 = vmatpush1.bf16.msra.mxu1 %v4081_v43 }
 0x27f   :  { %891 = vmatprep.subr.bf16.mxu0 %v4083_v44  ;;  %932 = vmatprep.subr.bf16.mxu1 %v4086_v45 }
 0x282   :  { %892 = vmatpush1.bf16.msra.mxu0 %v4089_v46  ;;  %933 = vmatpush1.bf16.msra.mxu1 %v4103_v50 }
 0x283   :  { %893 = vmatprep.subr.bf16.mxu0 %v4099_v49  ;;  %934 = vmatprep.subr.bf16.mxu1 %v4107_v51 }
 0x286   :  { %894 = vmatpush1.bf16.msra.mxu0 %v4111_v52  ;;  %935 = vmatpush1.bf16.msra.mxu1 %v4117_v55 }
 0x287   :  { %895 = vmatprep.subr.bf16.mxu0 %v4114_v54  ;;  %936 = vmatprep.subr.bf16.mxu1 %v4120_v56 }
 0x28a   :  { %896 = vmatpush1.bf16.msra.mxu0 %v4123_v57  ;;  %937 = vmatpush1.bf16.msra.mxu1 %v4129_v58 }
 0x28b   :  { %999 = vmatprep.subr.bf16.mxu0 %v4005_v15  ;;  %1040 = vmatprep.subr.bf16.mxu1 %v4009_v19 }
 0x340   :  { %v797_v11 = vpop.f32.mrb[24].mxu0  ;;  %v838_v60 = vpop.f32.mrb[24].mxu1 }
 0x341   :  { %v845_v0 = vadd.f32 %v797_v11, %v4213_v26  ;;  %v847_v1 = vadd.f32 %v838_v60, %v4221_v53  ;;  %v799_v2 = vpop.f32.mrb[25].mxu0  ;;  %v840_v5 = vpop.f32.mrb[25].mxu1 }
 0x342   :  { %v846_v6 = vadd.f32 %v799_v2, %v4215_v36  ;;  %v848_v62 = vadd.f32 %v840_v5, %v5299_v8  ;;  %v801_v9 = vpop.f32.mrb[26].mxu0  ;;  %v842_v12 = vpop.f32.mrb[26].mxu1 }
 0x343   :  { %v3157_v17 = vmul.f32 -1.442695, %v845_v0  ;;  %v802_v29 = vpop.f32.mrb[27].mxu0  ;;  %v843_v10 = vpop.f32.mrb[27].mxu1 }
 0x344   :  { %v3158_v15 = vmul.f32 -1.442695, %v846_v6  ;;  %v3159_v19 = vmul.f32 -1.442695, %v848_v62 }
 0x345   :  { %3496 = vpow2.f32 %v3157_v17 }
 0x346   :  { %3498 = vpow2.f32 %v3158_v15 }
 0x347   :  { %3500 = vpow2.f32 %v3159_v19 }
 0x348   :  { %3502 = vtanh.f32 %v847_v1 }
 0x34f   :  { %v3497_v16 = vpop.eup %3496 }
 0x350   :  { %v3499_v13 = vpop.eup %3498  ;;  %v852_v26 = vadd.f32 1.0, %v3497_v16 }
 0x351   :  { %v858_v53 = vadd.f32 1.0, %v3499_v13  ;;  %v3501_v36 = vpop.eup %3500  ;;  %v4432_v13 = vld [vmem:[#allocation4] ss:$16 sps:$4 sm:$0xff]  }
 0x352   :  { %3504 = vrcp.f32 %v852_v26  ;;  %v3503_v3 = vpop.eup %3502  ;;  %v865_v61 = vadd.f32 1.0, %v3501_v36  ;;  %v4435_v26 = vld [vmem:[#allocation4 + $0x8] ss:$16 sps:$4 sm:$0xff]   ;;  %v4441_v36 = vld [vmem:[#allocation4 + $0x2c] ss:$16 sps:$4 sm:$0xff]  }
 0x353   :  { %3506 = vrcp.f32 %v858_v53  ;;  %v4438_v53 = vld [vmem:[#allocation4 + $0x24] ss:$16 sps:$4 sm:$0xff]  }
 0x354   :  { %3508 = vrcp.f32 %v865_v61  ;;  %v4458_v61 = vld [vmem:[#allocation4 + $0x40] ss:$16 sps:$4 sm:$0xff]  }
 0x35c   :  { %v3505_v18 = vpop.eup %3504 }
 0x35d   :  { %v3507_v37 = vpop.eup %3506  ;;  %v869_v47 = vmul.f32 %v3505_v18, %v3503_v3  ;;  %v4446_v3 = vld [vmem:[#allocation4 + $0x20] ss:$16 sps:$4 sm:$0xff]   ;;  %v4449_v18 = vld [vmem:[#allocation4 + $0x28] ss:$16 sps:$4 sm:$0xff]  }
 0x35e   :  { %v868_v7 = vmul.f32 %v3507_v37, %v4329_v59  ;;  %v3509_v25 = vpop.eup %3508  ;;  %v4452_v37 = vld [vmem:[#allocation4 + $0x44] ss:$16 sps:$4 sm:$0xff]  }
 0x360   :  { %v4375_v4 = vadd.f32 %v869_v47, %v868_v7  ;;  %v4455_v47 = vld [vmem:[#allocation4 + $0x4c] ss:$16 sps:$4 sm:$0xff]   ;;  %v4461_v7 = vld [vmem:[#allocation4 + $0x48] ss:$16 sps:$4 sm:$0xff]  }
 0x362   :  { %3510 = vtanh.f32 %v4375_v4 }
 0x36c   :  { %v3511_v63 = vpop.eup %3510 }
 0x36d   :  { %v4378_v11 = vmul.f32 %v3511_v63, %v3509_v25  ;;  %v4467_v25 = vld [vmem:[#allocation4 + $0x6c] ss:$16 sps:$4 sm:$0xff]   ;;  %v4470_v63 = vld [vmem:[#allocation4 + $0x60] ss:$16 sps:$4 sm:$0xff]  }
 0x36f   :  { %v880_v60 = vpack.c.bf16 %v4378_v11, %v4378_v11 }
 0x371   :  { %914 = vmatmul.mubr.bf16.vlgmr.msra.gmra.mrb[28].mxu0 %v880_v60  ;;  %955 = vmatmul.mubr.bf16.vlgmr.msra.gmra.mrb[28].mxu1 %v880_v60  ;;  %v4473_v60 = vld [vmem:[#allocation4 + $0x68] ss:$16 sps:$4 sm:$0xff]  }
 0x372   :  { %1000 = vmatpush1.bf16.msra.mxu0 %v4011_v20  ;;  %1041 = vmatpush1.bf16.msra.mxu1 %v4017_v22  ;;  %v4414_v20 = vld [vmem:[#allocation4 + $0x4] ss:$16 sps:$4 sm:$0xff]  }
 0x373   :  { %1001 = vmatprep.subr.bf16.mxu0 %v4015_v21  ;;  %1042 = vmatprep.subr.bf16.mxu1 %v4023_v24  ;;  %v4417_v21 = vld [vmem:[#allocation4 + $0xc] ss:$16 sps:$4 sm:$0xff]   ;;  %v5300_v24 = vld [vmem:[#allocation15_spill] sm:$0xff] }
 0x374   :  { %1031 = vmatprep.mubr.bf16.mxu0 %v5298_v40  ;;  %1072 = vmatprep.mubr.bf16.mxu1 %v5298_v40 }
 0x376   :  { %1002 = vmatpush1.bf16.msra.mxu0 %v4021_v23  ;;  %1043 = vmatpush1.bf16.msra.mxu1 %v4038_v28  ;;  %v5301_v28 = vld [vmem:[#allocation18_spill] sm:$0xff] }
 0x377   :  { %1003 = vmatprep.subr.bf16.mxu0 %v4035_v27  ;;  %1044 = vmatprep.subr.bf16.mxu1 %v4042_v30 }
 0x37a   :  { %1004 = vmatpush1.bf16.msra.mxu0 %v4045_v31  ;;  %1045 = vmatpush1.bf16.msra.mxu1 %v4051_v33  ;;  %v5302_v33 = vld [vmem:[#allocation16_spill] sm:$0xff] }
 0x37b   :  { %1005 = vmatprep.subr.bf16.mxu0 %v4048_v32  ;;  %1046 = vmatprep.subr.bf16.mxu1 %v4055_v34 }
 0x37e   :  { %1006 = vmatpush1.bf16.msra.mxu0 %v4058_v35  ;;  %1047 = vmatpush1.bf16.msra.mxu1 %v4072_v39  ;;  %v5303_v35 = vld [vmem:[#allocation19_spill] sm:$0xff] }
 0x37f   :  { %1007 = vmatprep.subr.bf16.mxu0 %v4069_v38  ;;  %1048 = vmatprep.subr.bf16.mxu1 %v4078_v42 }
 0x382   :  { %1008 = vmatpush1.bf16.msra.mxu0 %v4076_v41  ;;  %1049 = vmatpush1.bf16.msra.mxu1 %v4081_v43 }
 0x383   :  { %1009 = vmatprep.subr.bf16.mxu0 %v4083_v44  ;;  %1050 = vmatprep.subr.bf16.mxu1 %v4086_v45 }
 0x386   :  { %1010 = vmatpush1.bf16.msra.mxu0 %v4089_v46  ;;  %1051 = vmatpush1.bf16.msra.mxu1 %v4103_v50 }
 0x387   :  { %1011 = vmatprep.subr.bf16.mxu0 %v4099_v49  ;;  %1052 = vmatprep.subr.bf16.mxu1 %v4107_v51 }
 0x38a   :  { %1012 = vmatpush1.bf16.msra.mxu0 %v4111_v52  ;;  %1053 = vmatpush1.bf16.msra.mxu1 %v4117_v55 }
 0x38b   :  { %1013 = vmatprep.subr.bf16.mxu0 %v4114_v54  ;;  %1054 = vmatprep.subr.bf16.mxu1 %v4120_v56 }
 0x38e   :  { %1014 = vmatpush1.bf16.msra.mxu0 %v4123_v57  ;;  %1055 = vmatpush1.bf16.msra.mxu1 %v4129_v58 }
 0x38f   :  { %1117 = vmatprep.subr.bf16.mxu0 %v4414_v20  ;;  %1158 = vmatprep.subr.bf16.mxu1 %v4417_v21 }
 0x444   :  { %v915_v22 = vpop.f32.mrb[28].mxu0  ;;  %v956_v23 = vpop.f32.mrb[28].mxu1 }
 0x445   :  { %v963_v27 = vadd.f32 %v915_v22, %v5300_v24  ;;  %v965_v30 = vadd.f32 %v956_v23, %v5301_v28  ;;  %v917_v31 = vpop.f32.mrb[29].mxu0  ;;  %v958_v32 = vpop.f32.mrb[29].mxu1  ;;  %v4476_v22 = vld [vmem:[#allocation4 + $0x84] ss:$16 sps:$4 sm:$0xff]   ;;  %v4479_v23 = vld [vmem:[#allocation4 + $0x8c] ss:$16 sps:$4 sm:$0xff]  }
 0x446   :  { %v964_v34 = vadd.f32 %v917_v31, %v5302_v33  ;;  %v966_v38 = vadd.f32 %v958_v32, %v5303_v35  ;;  %v919_v39 = vpop.f32.mrb[30].mxu0  ;;  %v960_v41 = vpop.f32.mrb[30].mxu1  ;;  %v4482_v24 = vld [vmem:[#allocation4 + $0x80] ss:$16 sps:$4 sm:$0xff]   ;;  %v4488_v28 = vld [vmem:[#allocation4 + $0xa4] ss:$16 sps:$4 sm:$0xff]  }
 0x447   :  { %v3160_v42 = vmul.f32 -1.442695, %v963_v27  ;;  %v920_v43 = vpop.f32.mrb[31].mxu0  ;;  %v961_v44 = vpop.f32.mrb[31].mxu1  ;;  %v4485_v27 = vld [vmem:[#allocation4 + $0x88] ss:$16 sps:$4 sm:$0xff]  }
 0x448   :  { %v3161_v45 = vmul.f32 -1.442695, %v964_v34  ;;  %v3162_v46 = vmul.f32 -1.442695, %v966_v38  ;;  %v4494_v31 = vld [vmem:[#allocation4 + $0xa0] ss:$16 sps:$4 sm:$0xff]  }
 0x449   :  { %3512 = vpow2.f32 %v3160_v42  ;;  %v5304_v32 = vld [vmem:[#allocation20_spill] sm:$0xff]  ;;  %v5305_v33 = vld [vmem:[#allocation23_spill] sm:$0xff]  ;;  %v5306_v35 = vld [vmem:[#allocation21_spill] sm:$0xff] }
 0x44a   :  { %3514 = vpow2.f32 %v3161_v45  ;;  %v5307_v38 = vld [vmem:[#allocation25_spill] sm:$0xff] }
 0x44b   :  { %3516 = vpow2.f32 %v3162_v46 }
 0x44c   :  { %3518 = vtanh.f32 %v965_v30  ;;  %v4491_v30 = vld [vmem:[#allocation4 + $0xac] ss:$16 sps:$4 sm:$0xff]  }
 0x453   :  { %v3513_v59 = vpop.eup %3512 }
 0x454   :  { %v3515_v0 = vpop.eup %3514  ;;  %v970_v1 = vadd.f32 1.0, %v3513_v59 }
 0x455   :  { %v976_v2 = vadd.f32 1.0, %v3515_v0  ;;  %v3517_v5 = vpop.eup %3516 }
 0x456   :  { %3520 = vrcp.f32 %v970_v1  ;;  %v3519_v6 = vpop.eup %3518  ;;  %v983_v12 = vadd.f32 1.0, %v3517_v5 }
 0x457   :  { %3522 = vrcp.f32 %v976_v2 }
 0x458   :  { %3524 = vrcp.f32 %v983_v12 }
 0x460   :  { %v3521_v8 = vpop.eup %3520 }
 0x461   :  { %v3523_v62 = vpop.eup %3522  ;;  %v987_v9 = vmul.f32 %v3521_v8, %v3519_v6 }
 0x462   :  { %v986_v17 = vmul.f32 %v3523_v62, %v4375_v4  ;;  %v3525_v10 = vpop.eup %3524  ;;  %v4464_v4 = vld [vmem:[#allocation4 + $0x64] ss:$16 sps:$4 sm:$0xff]  }
 0x464   :  { %v4425_v29 = vadd.f32 %v987_v9, %v986_v17 }
 0x466   :  { %3526 = vtanh.f32 %v4425_v29 }
 0x470   :  { %v3527_v15 = vpop.eup %3526 }
 0x471   :  { %v4428_v19 = vmul.f32 %v3527_v15, %v3525_v10 }
 0x473   :  { %v998_v16 = vpack.c.bf16 %v4428_v19, %v4428_v19 }
 0x475   :  { %1032 = vmatmul.mubr.bf16.vlgmr.msra.gmra.mrb[32].mxu0 %v998_v16  ;;  %1073 = vmatmul.mubr.bf16.vlgmr.msra.gmra.mrb[32].mxu1 %v998_v16 }
 0x476   :  { %1118 = vmatpush1.bf16.msra.mxu0 %v4432_v13  ;;  %1159 = vmatpush1.bf16.msra.mxu1 %v4435_v26 }
 0x477   :  { %1119 = vmatprep.subr.bf16.mxu0 %v4438_v53  ;;  %1160 = vmatprep.subr.bf16.mxu1 %v4441_v36 }
 0x478   :  { %1149 = vmatprep.mubr.bf16.mxu0 %v5298_v40  ;;  %1190 = vmatprep.mubr.bf16.mxu1 %v5298_v40 }
 0x47a   :  { %1120 = vmatpush1.bf16.msra.mxu0 %v4446_v3  ;;  %1161 = vmatpush1.bf16.msra.mxu1 %v4449_v18 }
 0x47b   :  { %1121 = vmatprep.subr.bf16.mxu0 %v4452_v37  ;;  %1162 = vmatprep.subr.bf16.mxu1 %v4455_v47 }
 0x47e   :  { %1122 = vmatpush1.bf16.msra.mxu0 %v4458_v61  ;;  %1163 = vmatpush1.bf16.msra.mxu1 %v4461_v7 }
 0x47f   :  { %1123 = vmatprep.subr.bf16.mxu0 %v4464_v4  ;;  %1164 = vmatprep.subr.bf16.mxu1 %v4467_v25 }
 0x482   :  { %1124 = vmatpush1.bf16.msra.mxu0 %v4470_v63  ;;  %1165 = vmatpush1.bf16.msra.mxu1 %v4473_v60 }
 0x483   :  { %1125 = vmatprep.subr.bf16.mxu0 %v4476_v22  ;;  %1166 = vmatprep.subr.bf16.mxu1 %v4479_v23 }
 0x486   :  { %1126 = vmatpush1.bf16.msra.mxu0 %v4482_v24  ;;  %1167 = vmatpush1.bf16.msra.mxu1 %v4485_v27 }
 0x487   :  { %1127 = vmatprep.subr.bf16.mxu0 %v4488_v28  ;;  %1168 = vmatprep.subr.bf16.mxu1 %v4491_v30 }
 0x48a   :  { %1128 = vmatpush1.bf16.msra.mxu0 %v4494_v31  ;;  %1169 = vmatpush1.bf16.msra.mxu1 %v4103_v50 }
 0x48b   :  { %1129 = vmatprep.subr.bf16.mxu0 %v4099_v49  ;;  %1170 = vmatprep.subr.bf16.mxu1 %v4107_v51 }
 0x48e   :  { %1130 = vmatpush1.bf16.msra.mxu0 %v4111_v52  ;;  %1171 = vmatpush1.bf16.msra.mxu1 %v4117_v55 }
 0x48f   :  { %1131 = vmatprep.subr.bf16.mxu0 %v4114_v54  ;;  %1172 = vmatprep.subr.bf16.mxu1 %v4120_v56 }
 0x492   :  { %1132 = vmatpush1.bf16.msra.mxu0 %v4123_v57  ;;  %1173 = vmatpush1.bf16.msra.mxu1 %v4129_v58 }
 0x493   :  { %1235 = vmatprep.subr.bf16.mxu0 %v4414_v20  ;;  %1276 = vmatprep.subr.bf16.mxu1 %v4417_v21 }
 0x548   :  { %v1033_v50 = vpop.f32.mrb[32].mxu0  ;;  %v1074_v49 = vpop.f32.mrb[32].mxu1 }
 0x549   :  { %v1081_v51 = vadd.f32 %v1033_v50, %v5304_v32  ;;  %v1083_v52 = vadd.f32 %v1074_v49, %v5305_v33  ;;  %v1035_v34 = vpop.f32.mrb[33].mxu0  ;;  %v1076_v55 = vpop.f32.mrb[33].mxu1  ;;  %v4546_v50 = vld [vmem:[#allocation4 + $0xc4] ss:$16 sps:$4 sm:$0xff]   ;;  %v4549_v49 = vld [vmem:[#allocation4 + $0xcc] ss:$16 sps:$4 sm:$0xff]  }
 0x54a   :  { %v1082_v54 = vadd.f32 %v1035_v34, %v5306_v35  ;;  %v1084_v56 = vadd.f32 %v1076_v55, %v5307_v38  ;;  %v1037_v39 = vpop.f32.mrb[34].mxu0  ;;  %v1078_v57 = vpop.f32.mrb[34].mxu1  ;;  %v4552_v32 = vld [vmem:[#allocation4 + $0xc0] ss:$16 sps:$4 sm:$0xff]   ;;  %v4558_v33 = vld [vmem:[#allocation4 + $0xe4] ss:$16 sps:$4 sm:$0xff]  }
 0x54b   :  { %v3163_v41 = vmul.f32 -1.442695, %v1081_v51  ;;  %v1038_v58 = vpop.f32.mrb[35].mxu0  ;;  %v1079_v42 = vpop.f32.mrb[35].mxu1  ;;  %v4555_v51 = vld [vmem:[#allocation4 + $0xc8] ss:$16 sps:$4 sm:$0xff]  }
 0x54c   :  { %v3164_v43 = vmul.f32 -1.442695, %v1082_v54  ;;  %v3165_v44 = vmul.f32 -1.442695, %v1084_v56  ;;  %v4564_v34 = vld [vmem:[#allocation4 + $0xe0] ss:$16 sps:$4 sm:$0xff]  }
 0x54d   :  { %3528 = vpow2.f32 %v3163_v41  ;;  %v4567_v55 = vld [vmem:[#allocation4 + $0xe8] ss:$16 sps:$4 sm:$0xff]  }
 0x54e   :  { %3530 = vpow2.f32 %v3164_v43  ;;  %v5308_v38 = vld [vmem:[#allocation22_spill] sm:$0xff]  ;;  %v5310_v42 = vld [vmem:[#allocation24_spill] sm:$0xff] }
 0x54f   :  { %3532 = vpow2.f32 %v3165_v44  ;;  %v5309_v39 = vld [vmem:[#allocation26_spill] sm:$0xff]  ;;  %v5311_v44 = vld [vmem:[#allocation27_spill] sm:$0xff] }
 0x550   :  { %3534 = vtanh.f32 %v1083_v52  ;;  %v4561_v52 = vld [vmem:[#allocation4 + $0xec] ss:$16 sps:$4 sm:$0xff]  }
 0x557   :  { %v3529_v45 = vpop.eup %3528 }
 0x558   :  { %v3531_v46 = vpop.eup %3530  ;;  %v1088_v59 = vadd.f32 1.0, %v3529_v45 }
 0x559   :  { %v1094_v0 = vadd.f32 1.0, %v3531_v46  ;;  %v3533_v1 = vpop.eup %3532 }
 0x55a   :  { %3536 = vrcp.f32 %v1088_v59  ;;  %v3535_v2 = vpop.eup %3534  ;;  %v1101_v62 = vadd.f32 1.0, %v3533_v1 }
 0x55b   :  { %3538 = vrcp.f32 %v1094_v0 }
 0x55c   :  { %3540 = vrcp.f32 %v1101_v62 }
 0x564   :  { %v3537_v5 = vpop.eup %3536 }
 0x565   :  { %v3539_v6 = vpop.eup %3538  ;;  %v1105_v8 = vmul.f32 %v3537_v5, %v3535_v2 }
 0x566   :  { %v1104_v9 = vmul.f32 %v3539_v6, %v4425_v29  ;;  %v3541_v17 = vpop.eup %3540  ;;  %v4543_v29 = vld [vmem:[#allocation4 + $0xa8] ss:$16 sps:$4 sm:$0xff]  }
 0x568   :  { %v4513_v12 = vadd.f32 %v1105_v8, %v1104_v9 }
 0x56a   :  { %3542 = vtanh.f32 %v4513_v12 }
 0x574   :  { %v3543_v10 = vpop.eup %3542 }
 0x575   :  { %v4516_v15 = vmul.f32 %v3543_v10, %v3541_v17 }
 0x577   :  { %v1116_v16 = vpack.c.bf16 %v4516_v15, %v4516_v15 }
 0x579   :  { %1150 = vmatmul.mubr.bf16.vlgmr.msra.gmra.mrb[36].mxu0 %v1116_v16  ;;  %1191 = vmatmul.mubr.bf16.vlgmr.msra.gmra.mrb[36].mxu1 %v1116_v16 }
 0x57a   :  { %1236 = vmatpush1.bf16.msra.mxu0 %v4432_v13  ;;  %1277 = vmatpush1.bf16.msra.mxu1 %v4435_v26 }
 0x57b   :  { %1237 = vmatprep.subr.bf16.mxu0 %v4438_v53  ;;  %1278 = vmatprep.subr.bf16.mxu1 %v4441_v36 }
 0x57c   :  { %1267 = vmatprep.mubr.bf16.mxu0 %v5298_v40  ;;  %1308 = vmatprep.mubr.bf16.mxu1 %v5298_v40 }
 0x57e   :  { %1238 = vmatpush1.bf16.msra.mxu0 %v4446_v3  ;;  %1279 = vmatpush1.bf16.msra.mxu1 %v4449_v18 }
 0x57f   :  { %1239 = vmatprep.subr.bf16.mxu0 %v4452_v37  ;;  %1280 = vmatprep.subr.bf16.mxu1 %v4455_v47 }
 0x582   :  { %1240 = vmatpush1.bf16.msra.mxu0 %v4458_v61  ;;  %1281 = vmatpush1.bf16.msra.mxu1 %v4461_v7 }
 0x583   :  { %1241 = vmatprep.subr.bf16.mxu0 %v4464_v4  ;;  %1282 = vmatprep.subr.bf16.mxu1 %v4467_v25 }
 0x586   :  { %1242 = vmatpush1.bf16.msra.mxu0 %v4470_v63  ;;  %1283 = vmatpush1.bf16.msra.mxu1 %v4473_v60 }
 0x587   :  { %1243 = vmatprep.subr.bf16.mxu0 %v4476_v22  ;;  %1284 = vmatprep.subr.bf16.mxu1 %v4479_v23 }
 0x58a   :  { %1244 = vmatpush1.bf16.msra.mxu0 %v4482_v24  ;;  %1285 = vmatpush1.bf16.msra.mxu1 %v4485_v27 }
 0x58b   :  { %1245 = vmatprep.subr.bf16.mxu0 %v4488_v28  ;;  %1286 = vmatprep.subr.bf16.mxu1 %v4491_v30 }
 0x58e   :  { %1246 = vmatpush1.bf16.msra.mxu0 %v4494_v31  ;;  %1287 = vmatpush1.bf16.msra.mxu1 %v4543_v29 }
 0x58f   :  { %1247 = vmatprep.subr.bf16.mxu0 %v4546_v50  ;;  %1288 = vmatprep.subr.bf16.mxu1 %v4549_v49 }
 0x592   :  { %1248 = vmatpush1.bf16.msra.mxu0 %v4552_v32  ;;  %1289 = vmatpush1.bf16.msra.mxu1 %v4555_v51 }
 0x593   :  { %1249 = vmatprep.subr.bf16.mxu0 %v4558_v33  ;;  %1290 = vmatprep.subr.bf16.mxu1 %v4561_v52 }
 0x596   :  { %1250 = vmatpush1.bf16.msra.mxu0 %v4564_v34  ;;  %1291 = vmatpush1.bf16.msra.mxu1 %v4567_v55 }
 0x597   :  { %1353 = vmatprep.subr.bf16.mxu0 %v4414_v20  ;;  %1394 = vmatprep.subr.bf16.mxu1 %v4417_v21 }
 0x64c   :  { %v1151_v35 = vpop.f32.mrb[36].mxu0  ;;  %v1192_v54 = vpop.f32.mrb[36].mxu1 }
 0x64d   :  { %v1199_v56 = vadd.f32 %v1151_v35, %v5308_v38  ;;  %v1201_v57 = vadd.f32 %v1192_v54, %v5309_v39  ;;  %v1153_v41 = vpop.f32.mrb[37].mxu0  ;;  %v1194_v58 = vpop.f32.mrb[37].mxu1 }
 0x64e   :  { %v1200_v43 = vadd.f32 %v1153_v41, %v5310_v42  ;;  %v1202_v45 = vadd.f32 %v1194_v58, %v5311_v44  ;;  %v1155_v46 = vpop.f32.mrb[38].mxu0  ;;  %v1196_v59 = vpop.f32.mrb[38].mxu1 }
 0x64f   :  { %v3166_v0 = vmul.f32 -1.442695, %v1199_v56  ;;  %v1156_v1 = vpop.f32.mrb[39].mxu0  ;;  %v1197_v2 = vpop.f32.mrb[39].mxu1  ;;  %v3360_v59 = vld [vmem:[#allocation7] ss:$16 sps:$4 sm:$0xff]  }
 0x650   :  { %v3167_v20 = vmul.f32 -1.442695, %v1200_v43  ;;  %v3168_v21 = vmul.f32 -1.442695, %v1202_v45  ;;  %v3368_v2 = vld [vmem:[#allocation7 + $0x24] ss:$16 sps:$4 sm:$0xff]  }
 0x651   :  { %3544 = vpow2.f32 %v3166_v0  ;;  %v3363_v0 = vld [vmem:[#allocation7 + $0x8] ss:$16 sps:$4 sm:$0xff]  }
 0x652   :  { %3546 = vpow2.f32 %v3167_v20  ;;  %v3371_v20 = vld [vmem:[#allocation7 + $0x2c] ss:$16 sps:$4 sm:$0xff]  }
 0x653   :  { %3548 = vpow2.f32 %v3168_v21  ;;  %v3366_v21 = vld [vmem:[#allocation7 + $0x20] ss:$16 sps:$4 sm:$0xff]  }
 0x654   :  { %3550 = vtanh.f32 %v1201_v57 }
 0x65b   :  { %v3545_v5 = vpop.eup %3544 }
 0x65c   :  { %v3547_v6 = vpop.eup %3546  ;;  %v1206_v8 = vadd.f32 1.0, %v3545_v5  ;;  %v3369_v5 = vld [vmem:[#allocation7 + $0x28] ss:$16 sps:$4 sm:$0xff]  }
 0x65d   :  { %v1212_v62 = vadd.f32 1.0, %v3547_v6  ;;  %v3549_v9 = vpop.eup %3548  ;;  %v3374_v6 = vld [vmem:[#allocation7 + $0x44] ss:$16 sps:$4 sm:$0xff]  }
 0x65e   :  { %3552 = vrcp.f32 %v1206_v8  ;;  %v3551_v17 = vpop.eup %3550  ;;  %v1219_v54 = vadd.f32 1.0, %v3549_v9  ;;  %v3377_v8 = vld [vmem:[#allocation7 + $0x4c] ss:$16 sps:$4 sm:$0xff]   ;;  %v3375_v9 = vld [vmem:[#allocation7 + $0x48] ss:$16 sps:$4 sm:$0xff]  }
 0x65f   :  { %3554 = vrcp.f32 %v1212_v62  ;;  %v3372_v62 = vld [vmem:[#allocation7 + $0x40] ss:$16 sps:$4 sm:$0xff]  }
 0x660   :  { %3556 = vrcp.f32 %v1219_v54  ;;  %v3386_v54 = vld [vmem:[#allocation7 + $0x84] ss:$16 sps:$4 sm:$0xff]  }
 0x668   :  { %v3553_v10 = vpop.eup %3552 }
 0x669   :  { %v3555_v16 = vpop.eup %3554  ;;  %v1223_v35 = vmul.f32 %v3553_v10, %v3551_v17  ;;  %v3380_v17 = vld [vmem:[#allocation7 + $0x64] ss:$16 sps:$4 sm:$0xff]   ;;  %v3383_v10 = vld [vmem:[#allocation7 + $0x6c] ss:$16 sps:$4 sm:$0xff]  }
 0x66a   :  { %v1222_v38 = vmul.f32 %v3555_v16, %v4513_v12  ;;  %v3557_v39 = vpop.eup %3556  ;;  %v3378_v16 = vld [vmem:[#allocation7 + $0x60] ss:$16 sps:$4 sm:$0xff]  }
 0x66c   :  { %v4577_v56 = vadd.f32 %v1223_v35, %v1222_v38  ;;  %v3381_v35 = vld [vmem:[#allocation7 + $0x68] ss:$16 sps:$4 sm:$0xff]   ;;  %v3389_v38 = vld [vmem:[#allocation7 + $0x8c] ss:$16 sps:$4 sm:$0xff]  }
 0x66e   :  { %3558 = vtanh.f32 %v4577_v56 }
 0x678   :  { %v3559_v41 = vpop.eup %3558 }
 0x679   :  { %v4580_v58 = vmul.f32 %v3559_v41, %v3557_v39  ;;  %v3387_v39 = vld [vmem:[#allocation7 + $0x88] ss:$16 sps:$4 sm:$0xff]   ;;  %v3392_v41 = vld [vmem:[#allocation7 + $0xa4] ss:$16 sps:$4 sm:$0xff]  }
 0x67b   :  { %v1234_v57 = vpack.c.bf16 %v4580_v58, %v4580_v58 }
 0x67d   :  { %1268 = vmatmul.mubr.bf16.vlgmr.msra.gmra.mrb[40].mxu0 %v1234_v57  ;;  %1309 = vmatmul.mubr.bf16.vlgmr.msra.gmra.mrb[40].mxu1 %v1234_v57  ;;  %v3395_v57 = vld [vmem:[#allocation7 + $0xac] ss:$16 sps:$4 sm:$0xff]  }
 0x67e   :  { %1354 = vmatpush1.bf16.msra.mxu0 %v4432_v13  ;;  %1395 = vmatpush1.bf16.msra.mxu1 %v4435_v26  ;;  %v3362_v13 = vld [vmem:[#allocation7 + $0x4] ss:$16 sps:$4 sm:$0xff]   ;;  %v3365_v26 = vld [vmem:[#allocation7 + $0xc] ss:$16 sps:$4 sm:$0xff]  }
 0x67f   :  { %1355 = vmatprep.subr.bf16.mxu0 %v4438_v53  ;;  %1396 = vmatprep.subr.bf16.mxu1 %v4441_v36 }
 0x680   :  { %1385 = vmatprep.mubr.bf16.mxu0 %v5298_v40  ;;  %1426 = vmatprep.mubr.bf16.mxu1 %v5298_v40 }
 0x682   :  { %1356 = vmatpush1.bf16.msra.mxu0 %v4446_v3  ;;  %1397 = vmatpush1.bf16.msra.mxu1 %v4449_v18  ;;  %v5312_v3 = vld [vmem:[#allocation28_spill] sm:$0xff] }
 0x683   :  { %1357 = vmatprep.subr.bf16.mxu0 %v4452_v37  ;;  %1398 = vmatprep.subr.bf16.mxu1 %v4455_v47  ;;  %v5313_v37 = vld [vmem:[#allocation31_spill] sm:$0xff] }
 0x686   :  { %1358 = vmatpush1.bf16.msra.mxu0 %v4458_v61  ;;  %1399 = vmatpush1.bf16.msra.mxu1 %v4461_v7 }
 0x687   :  { %1359 = vmatprep.subr.bf16.mxu0 %v4464_v4  ;;  %1400 = vmatprep.subr.bf16.mxu1 %v4467_v25  ;;  %v5314_v4 = vld [vmem:[#allocation29_spill] sm:$0xff] }
 0x68a   :  { %1360 = vmatpush1.bf16.msra.mxu0 %v4470_v63  ;;  %1401 = vmatpush1.bf16.msra.mxu1 %v4473_v60  ;;  %v5315_v63 = vld [vmem:[#allocation33_spill] sm:$0xff] }
 0x68b   :  { %1361 = vmatprep.subr.bf16.mxu0 %v4476_v22  ;;  %1402 = vmatprep.subr.bf16.mxu1 %v4479_v23 }
 0x68e   :  { %1362 = vmatpush1.bf16.msra.mxu0 %v4482_v24  ;;  %1403 = vmatpush1.bf16.msra.mxu1 %v4485_v27 }
 0x68f   :  { %1363 = vmatprep.subr.bf16.mxu0 %v4488_v28  ;;  %1404 = vmatprep.subr.bf16.mxu1 %v4491_v30 }
 0x692   :  { %1364 = vmatpush1.bf16.msra.mxu0 %v4494_v31  ;;  %1405 = vmatpush1.bf16.msra.mxu1 %v4543_v29 }
 0x693   :  { %1365 = vmatprep.subr.bf16.mxu0 %v4546_v50  ;;  %1406 = vmatprep.subr.bf16.mxu1 %v4549_v49 }
 0x696   :  { %1366 = vmatpush1.bf16.msra.mxu0 %v4552_v32  ;;  %1407 = vmatpush1.bf16.msra.mxu1 %v4555_v51 }
 0x697   :  { %1367 = vmatprep.subr.bf16.mxu0 %v4558_v33  ;;  %1408 = vmatprep.subr.bf16.mxu1 %v4561_v52 }
 0x69a   :  { %1368 = vmatpush1.bf16.msra.mxu0 %v4564_v34  ;;  %1409 = vmatpush1.bf16.msra.mxu1 %v4567_v55 }
 0x69b   :  { %1691 = vmatprep.subr.bf16.mxu0 %v3362_v13  ;;  %1764 = vmatprep.subr.bf16.mxu1 %v3365_v26  ;;  %v3390_v13 = vld [vmem:[#allocation7 + $0xa0] ss:$16 sps:$4 sm:$0xff]   ;;  %v3393_v26 = vld [vmem:[#allocation7 + $0xa8] ss:$16 sps:$4 sm:$0xff]  }
 0x750   :  { %v1269_v53 = vpop.f32.mrb[40].mxu0  ;;  %v1310_v36 = vpop.f32.mrb[40].mxu1 }
 0x751   :  { %v1317_v18 = vadd.f32 %v1269_v53, %v5312_v3  ;;  %v1319_v47 = vadd.f32 %v1310_v36, %v5313_v37  ;;  %v1271_v61 = vpop.f32.mrb[41].mxu0  ;;  %v1312_v7 = vpop.f32.mrb[41].mxu1  ;;  %v3398_v53 = vld [vmem:[#allocation7 + $0xc4] ss:$16 sps:$4 sm:$0xff]   ;;  %v3401_v36 = vld [vmem:[#allocation7 + $0xcc] ss:$16 sps:$4 sm:$0xff]  }
 0x752   :  { %v1318_v25 = vadd.f32 %v1271_v61, %v5314_v4  ;;  %v1320_v60 = vadd.f32 %v1312_v7, %v5315_v63  ;;  %v1273_v22 = vpop.f32.mrb[42].mxu0  ;;  %v1314_v23 = vpop.f32.mrb[42].mxu1  ;;  %v3396_v3 = vld [vmem:[#allocation7 + $0xc0] ss:$16 sps:$4 sm:$0xff]   ;;  %v3404_v37 = vld [vmem:[#allocation7 + $0xe4] ss:$16 sps:$4 sm:$0xff]   ;;  %v1473_v4 = vpack.c.bf16 %v4332_v48, %v4286_v14  ;;  %v1475_v63 = vpack.c.bf16 %v4580_v58, %v4516_v15 }
 0x753   :  { %v3169_v24 = vmul.f32 -1.442695, %v1317_v18  ;;  %v1274_v27 = vpop.f32.mrb[43].mxu0  ;;  %v1315_v28 = vpop.f32.mrb[43].mxu1  ;;  %v3399_v18 = vld [vmem:[#allocation7 + $0xc8] ss:$16 sps:$4 sm:$0xff]  }
 0x754   :  { %v3170_v30 = vmul.f32 -1.442695, %v1318_v25  ;;  %v3171_v31 = vmul.f32 -1.442695, %v1320_v60  ;;  %v3402_v61 = vld [vmem:[#allocation7 + $0xe0] ss:$16 sps:$4 sm:$0xff]   ;;  %v1474_v25 = vpack.c.bf16 %v4428_v19, %v4378_v11 }
 0x755   :  { %3560 = vpow2.f32 %v3169_v24  ;;  %v3405_v7 = vld [vmem:[#allocation7 + $0xe8] ss:$16 sps:$4 sm:$0xff]   ;;  %v4642_v14 = vld [vmem:[#allocation9 + $0x4] ss:$16 sps:$4 sm:$0xff]   ;;  %v4644_v48 = vld [vmem:[#allocation9 + $0xc] ss:$16 sps:$4 sm:$0xff]  }
 0x756   :  { %3562 = vpow2.f32 %v3170_v30  ;;  %v4646_v11 = vld [vmem:[#allocation9] ss:$16 sps:$4 sm:$0xff]   ;;  %v4648_v19 = vld [vmem:[#allocation9 + $0x8] ss:$16 sps:$4 sm:$0xff]   ;;  %v4654_v15 = vld [vmem:[#allocation9 + $0x24] ss:$16 sps:$4 sm:$0xff]  }
 0x757   :  { %3564 = vpow2.f32 %v3171_v31  ;;  %v4656_v58 = vld [vmem:[#allocation9 + $0x2c] ss:$16 sps:$4 sm:$0xff]   ;;  %v4658_v60 = vld [vmem:[#allocation9 + $0x20] ss:$16 sps:$4 sm:$0xff]   ;;  %v4660_v22 = vld [vmem:[#allocation9 + $0x28] ss:$16 sps:$4 sm:$0xff]  }
 0x758   :  { %3566 = vtanh.f32 %v1319_v47  ;;  %v3407_v47 = vld [vmem:[#allocation7 + $0xec] ss:$16 sps:$4 sm:$0xff]   ;;  %v4666_v23 = vld [vmem:[#allocation9 + $0x44] ss:$16 sps:$4 sm:$0xff]   ;;  %v4670_v27 = vld [vmem:[#allocation9 + $0x40] ss:$16 sps:$4 sm:$0xff]  }
 0x759   :  { %v4668_v24 = vld [vmem:[#allocation9 + $0x4c] ss:$16 sps:$4 sm:$0xff]   ;;  %v4672_v28 = vld [vmem:[#allocation9 + $0x48] ss:$16 sps:$4 sm:$0xff]   ;;  %v4678_v30 = vld [vmem:[#allocation9 + $0x64] ss:$16 sps:$4 sm:$0xff]  }
 0x75a   :  { %v4680_v31 = vld [vmem:[#allocation9 + $0x6c] ss:$16 sps:$4 sm:$0xff]  }
 0x75f   :  { %v3561_v12 = vpop.eup %3560 }
 0x760   :  { %v3563_v29 = vpop.eup %3562  ;;  %v1324_v50 = vadd.f32 1.0, %v3561_v12  ;;  %v4682_v12 = vld [vmem:[#allocation9 + $0x60] ss:$16 sps:$4 sm:$0xff]  }
 0x761   :  { %v1330_v49 = vadd.f32 1.0, %v3563_v29  ;;  %v3565_v32 = vpop.eup %3564  ;;  %v4684_v29 = vld [vmem:[#allocation9 + $0x68] ss:$16 sps:$4 sm:$0xff]  }
 0x762   :  { %3568 = vrcp.f32 %v1324_v50  ;;  %v3567_v51 = vpop.eup %3566  ;;  %v1337_v55 = vadd.f32 1.0, %v3565_v32  ;;  %v4690_v50 = vld [vmem:[#allocation9 + $0x84] ss:$16 sps:$4 sm:$0xff]   ;;  %v4694_v32 = vld [vmem:[#allocation9 + $0x80] ss:$16 sps:$4 sm:$0xff]  }
 0x763   :  { %3570 = vrcp.f32 %v1330_v49  ;;  %v4692_v49 = vld [vmem:[#allocation9 + $0x8c] ss:$16 sps:$4 sm:$0xff]  }
 0x764   :  { %3572 = vrcp.f32 %v1337_v55  ;;  %v4708_v55 = vld [vmem:[#allocation9 + $0xa8] ss:$16 sps:$4 sm:$0xff]  }
 0x76c   :  { %v3569_v33 = vpop.eup %3568 }
 0x76d   :  { %v3571_v52 = vpop.eup %3570  ;;  %v1341_v34 = vmul.f32 %v3569_v33, %v3567_v51  ;;  %v4696_v51 = vld [vmem:[#allocation9 + $0x88] ss:$16 sps:$4 sm:$0xff]   ;;  %v4702_v33 = vld [vmem:[#allocation9 + $0xa4] ss:$16 sps:$4 sm:$0xff]  }
 0x76e   :  { %v1340_v42 = vmul.f32 %v3571_v52, %v4577_v56  ;;  %v3573_v44 = vpop.eup %3572  ;;  %v3384_v56 = vld [vmem:[#allocation7 + $0x80] ss:$16 sps:$4 sm:$0xff]   ;;  %v4704_v52 = vld [vmem:[#allocation9 + $0xac] ss:$16 sps:$4 sm:$0xff]  }
 0x770   :  { %v4621_v43 = vadd.f32 %v1341_v34, %v1340_v42  ;;  %v4706_v34 = vld [vmem:[#allocation9 + $0xa0] ss:$16 sps:$4 sm:$0xff]   ;;  %v4714_v42 = vld [vmem:[#allocation9 + $0xc4] ss:$16 sps:$4 sm:$0xff]  }
 0x772   :  { %3574 = vtanh.f32 %v4621_v43 }
 0x77c   :  { %v3575_v45 = vpop.eup %3574 }
 0x77d   :  { %v4624_v46 = vmul.f32 %v3575_v45, %v3573_v44  ;;  %v4716_v44 = vld [vmem:[#allocation9 + $0xcc] ss:$16 sps:$4 sm:$0xff]   ;;  %v4718_v45 = vld [vmem:[#allocation9 + $0xc0] ss:$16 sps:$4 sm:$0xff]  }
 0x77f   :  { %v1352_v1 = vpack.c.bf16 %v4624_v46, %v4624_v46 }
 0x781   :  { %1386 = vmatmul.mubr.bf16.vlgmr.msra.gmra.mrb[44].mxu0 %v1352_v1  ;;  %1427 = vmatmul.mubr.bf16.vlgmr.msra.gmra.mrb[44].mxu1 %v1352_v1  ;;  %v4728_v1 = vld [vmem:[#allocation9 + $0xec] ss:$16 sps:$4 sm:$0xff]  }
 0x782   :  { %1692 = vmatpush1.bf16.msra.mxu0 %v3360_v59  ;;  %1765 = vmatpush1.bf16.msra.mxu1 %v3363_v0  ;;  %v4720_v59 = vld [vmem:[#allocation9 + $0xc8] ss:$16 sps:$4 sm:$0xff]   ;;  %v4726_v0 = vld [vmem:[#allocation9 + $0xe4] ss:$16 sps:$4 sm:$0xff]  }
 0x783   :  { %1693 = vmatprep.subr.bf16.mxu0 %v3368_v2  ;;  %1766 = vmatprep.subr.bf16.mxu1 %v3371_v20  ;;  %v4730_v2 = vld [vmem:[#allocation9 + $0xe0] ss:$16 sps:$4 sm:$0xff]   ;;  %v4732_v20 = vld [vmem:[#allocation9 + $0xe8] ss:$16 sps:$4 sm:$0xff]  }
 0x784   :  { %1723 = vmatprep.mubr.bf16.mxu0 %v5298_v40  ;;  %1796 = vmatprep.mubr.bf16.mxu1 %v5298_v40 }
 0x786   :  { %1694 = vmatpush1.bf16.msra.mxu0 %v3366_v21  ;;  %1767 = vmatpush1.bf16.msra.mxu1 %v3369_v5 }
 0x787   :  { %1695 = vmatprep.subr.bf16.mxu0 %v3374_v6  ;;  %1768 = vmatprep.subr.bf16.mxu1 %v3377_v8  ;;  %v5316_v6 = vld [vmem:[#allocation30_spill] sm:$0xff] }
 0x78a   :  { %1696 = vmatpush1.bf16.msra.mxu0 %v3372_v62  ;;  %1769 = vmatpush1.bf16.msra.mxu1 %v3375_v9  ;;  %v5317_v62 = vld [vmem:[#allocation34_spill] sm:$0xff] }
 0x78b   :  { %1697 = vmatprep.subr.bf16.mxu0 %v3380_v17  ;;  %1770 = vmatprep.subr.bf16.mxu1 %v3383_v10 }
 0x78e   :  { %1698 = vmatpush1.bf16.msra.mxu0 %v3378_v16  ;;  %1771 = vmatpush1.bf16.msra.mxu1 %v3381_v35  ;;  %v5318_v16 = vld [vmem:[#allocation32_spill] sm:$0xff] }
 0x78f   :  { %1699 = vmatprep.subr.bf16.mxu0 %v3386_v54  ;;  %1772 = vmatprep.subr.bf16.mxu1 %v3389_v38  ;;  %v5319_v54 = vld [vmem:[#allocation35_spill] sm:$0xff] }
 0x792   :  { %1700 = vmatpush1.bf16.msra.mxu0 %v3384_v56  ;;  %1773 = vmatpush1.bf16.msra.mxu1 %v3387_v39 }
 0x793   :  { %1701 = vmatprep.subr.bf16.mxu0 %v3392_v41  ;;  %1774 = vmatprep.subr.bf16.mxu1 %v3395_v57 }
 0x796   :  { %1702 = vmatpush1.bf16.msra.mxu0 %v3390_v13  ;;  %1775 = vmatpush1.bf16.msra.mxu1 %v3393_v26 }
 0x797   :  { %1703 = vmatprep.subr.bf16.mxu0 %v3398_v53  ;;  %1776 = vmatprep.subr.bf16.mxu1 %v3401_v36 }
 0x79a   :  { %1704 = vmatpush1.bf16.msra.mxu0 %v3396_v3  ;;  %1777 = vmatpush1.bf16.msra.mxu1 %v3399_v18 }
 0x79b   :  { %1705 = vmatprep.subr.bf16.mxu0 %v3404_v37  ;;  %1778 = vmatprep.subr.bf16.mxu1 %v3407_v47 }
 0x79e   :  { %1706 = vmatpush1.bf16.msra.mxu0 %v3402_v61  ;;  %1779 = vmatpush1.bf16.msra.mxu1 %v3405_v7 }
 0x79f   :  { %2065 = vmatprep.subr.bf16.mxu0 %v4642_v14  ;;  %2106 = vmatprep.subr.bf16.mxu1 %v4644_v48 }
 0x7a1   :  { %1724 = vmatmul.mubr.bf16.vlgmr.msra.gmra.mrb[48].mxu0 %v1473_v4  ;;  %1797 = vmatmul.mubr.bf16.vlgmr.msra.gmra.mrb[48].mxu1 %v1473_v4 }
 0x7a2   :  { %1733 = vmatprep.mubr.bf16.mxu0 %v5298_v40  ;;  %1806 = vmatprep.mubr.bf16.mxu1 %v5298_v40 }
 0x7a3   :  { %2066 = vmatpush1.bf16.msra.mxu0 %v4646_v11  ;;  %2107 = vmatpush1.bf16.msra.mxu1 %v4648_v19 }
 0x7a4   :  { %2067 = vmatprep.subr.bf16.mxu0 %v4654_v15  ;;  %2108 = vmatprep.subr.bf16.mxu1 %v4656_v58 }
 0x7a7   :  { %2068 = vmatpush1.bf16.msra.mxu0 %v4658_v60  ;;  %2109 = vmatpush1.bf16.msra.mxu1 %v4660_v22 }
 0x7a8   :  { %2069 = vmatprep.subr.bf16.mxu0 %v4666_v23  ;;  %2110 = vmatprep.subr.bf16.mxu1 %v4668_v24 }
 0x7a9   :  { %1734 = vmatmul.mubr.bf16.gmra.mrb[52].mxu0 %v1474_v25  ;;  %1807 = vmatmul.mubr.bf16.gmra.mrb[52].mxu1 %v1474_v25 }
 0x7aa   :  { %1743 = vmatprep.mubr.bf16.mxu0 %v5298_v40  ;;  %1816 = vmatprep.mubr.bf16.mxu1 %v5298_v40 }
 0x7ab   :  { %2070 = vmatpush1.bf16.msra.mxu0 %v4670_v27  ;;  %2111 = vmatpush1.bf16.msra.mxu1 %v4672_v28 }
 0x7ac   :  { %2071 = vmatprep.subr.bf16.mxu0 %v4678_v30  ;;  %2112 = vmatprep.subr.bf16.mxu1 %v4680_v31 }
 0x7af   :  { %2072 = vmatpush1.bf16.msra.mxu0 %v4682_v12  ;;  %2113 = vmatpush1.bf16.msra.mxu1 %v4684_v29 }
 0x7b0   :  { %2073 = vmatprep.subr.bf16.mxu0 %v4690_v50  ;;  %2114 = vmatprep.subr.bf16.mxu1 %v4692_v49 }
 0x7b1   :  { %1744 = vmatmul.mubr.bf16.gmra.mrb[56].mxu0 %v1475_v63  ;;  %1817 = vmatmul.mubr.bf16.gmra.mrb[56].mxu1 %v1475_v63 }
 0x7b2   :  { %1753 = vmatprep.mubr.bf16.mxu0 %v5298_v40  ;;  %1826 = vmatprep.mubr.bf16.mxu1 %v5298_v40 }
 0x7b3   :  { %2074 = vmatpush1.bf16.msra.mxu0 %v4694_v32  ;;  %2115 = vmatpush1.bf16.msra.mxu1 %v4696_v51 }
 0x7b4   :  { %2075 = vmatprep.subr.bf16.mxu0 %v4702_v33  ;;  %2116 = vmatprep.subr.bf16.mxu1 %v4704_v52 }
 0x7b7   :  { %2076 = vmatpush1.bf16.msra.mxu0 %v4706_v34  ;;  %2117 = vmatpush1.bf16.msra.mxu1 %v4708_v55 }
 0x7b8   :  { %2077 = vmatprep.subr.bf16.mxu0 %v4714_v42  ;;  %2118 = vmatprep.subr.bf16.mxu1 %v4716_v44 }
 0x7bb   :  { %2078 = vmatpush1.bf16.msra.mxu0 %v4718_v45  ;;  %2119 = vmatpush1.bf16.msra.mxu1 %v4720_v59 }
 0x7bc   :  { %2079 = vmatprep.subr.bf16.mxu0 %v4726_v0  ;;  %2120 = vmatprep.subr.bf16.mxu1 %v4728_v1 }
 0x7bf   :  { %2080 = vmatpush1.bf16.msra.mxu0 %v4730_v2  ;;  %2121 = vmatpush1.bf16.msra.mxu1 %v4732_v20 }
 0x7c0   :  { %2180 = vmatprep.subr.bf16.mxu0 %v4642_v14  ;;  %2221 = vmatprep.subr.bf16.mxu1 %v4644_v48 }
 0x854   :  { %v1387_v21 = vpop.f32.mrb[44].mxu0  ;;  %v1428_v5 = vpop.f32.mrb[44].mxu1 }
 0x855   :  { %v1435_v8 = vadd.f32 %v1387_v21, %v5316_v6  ;;  %v1437_v9 = vadd.f32 %v1428_v5, %v5317_v62  ;;  %v1389_v17 = vpop.f32.mrb[45].mxu0  ;;  %v1430_v10 = vpop.f32.mrb[45].mxu1 }
 0x856   :  { %v1436_v35 = vadd.f32 %v1389_v17, %v5318_v16  ;;  %v1438_v38 = vadd.f32 %v1430_v10, %v5319_v54  ;;  %v1391_v56 = vpop.f32.mrb[46].mxu0  ;;  %v1432_v39 = vpop.f32.mrb[46].mxu1 }
 0x857   :  { %v3172_v41 = vmul.f32 -1.442695, %v1435_v8  ;;  %v1392_v57 = vpop.f32.mrb[47].mxu0  ;;  %v1433_v13 = vpop.f32.mrb[47].mxu1 }
 0x858   :  { %v3173_v26 = vmul.f32 -1.442695, %v1436_v35  ;;  %v3174_v53 = vmul.f32 -1.442695, %v1438_v38 }
 0x859   :  { %3576 = vpow2.f32 %v3172_v41 }
 0x85a   :  { %3578 = vpow2.f32 %v3173_v26 }
 0x85b   :  { %3580 = vpow2.f32 %v3174_v53 }
 0x85c   :  { %3582 = vtanh.f32 %v1437_v9 }
 0x863   :  { %v3577_v36 = vpop.eup %3576 }
 0x864   :  { %v3579_v3 = vpop.eup %3578  ;;  %v1442_v18 = vadd.f32 1.0, %v3577_v36 }
 0x865   :  { %v1448_v37 = vadd.f32 1.0, %v3579_v3  ;;  %v3581_v47 = vpop.eup %3580 }
 0x866   :  { %3584 = vrcp.f32 %v1442_v18  ;;  %v3583_v61 = vpop.eup %3582  ;;  %v1455_v63 = vadd.f32 1.0, %v3581_v47 }
 0x867   :  { %3586 = vrcp.f32 %v1448_v37 }
 0x868   :  { %3588 = vrcp.f32 %v1455_v63  ;;  %v1509_v63 = vld [vmem:[%s5264_s6] sm:$0xf] }
 0x870   :  { %v3585_v7 = vpop.eup %3584 }
 0x871   :  { %v3587_v4 = vpop.eup %3586  ;;  %v1459_v25 = vmul.f32 %v3585_v7, %v3583_v61 }
 0x872   :  { %v1458_v21 = vmul.f32 %v3587_v4, %v4621_v43  ;;  %v3589_v57 = vpop.eup %3588 }
 0x874   :  { %v4745_v5 = vpop.f32.mrb[48].mxu0  ;;  %v4747_v6 = vpop.f32.mrb[48].mxu1  ;;  %v1460_v8 = vadd.f32 %v1459_v25, %v1458_v21 }
 0x875   :  { %v4749_v62 = vpop.f32.mrb[49].mxu0  ;;  %v4751_v9 = vpop.f32.mrb[49].mxu1 }
 0x876   :  { %v4753_v17 = vpop.f32.mrb[50].mxu0  ;;  %v4755_v10 = vpop.f32.mrb[50].mxu1  ;;  %3590 = vtanh.f32 %v1460_v8 }
 0x877   :  { %v4757_v16 = vpop.f32.mrb[51].mxu0  ;;  %v4759_v35 = vpop.f32.mrb[51].mxu1 }
 0x87c   :  { %v4761_v43 = vpop.f32.mrb[52].mxu0  ;;  %v4763_v54 = vpop.f32.mrb[52].mxu1 }
 0x87d   :  { %5320 = vst [vmem:[#allocation17_spill] sm:$0xff] %v4763_v54  ;;  %v4765_v38 = vpop.f32.mrb[53].mxu0  ;;  %v4767_v56 = vpop.f32.mrb[53].mxu1 }
 0x87e   :  { %5321 = vst [vmem:[#allocation15_spill] sm:$0xff] %v4765_v38  ;;  %5322 = vst [vmem:[#allocation18_spill] sm:$0xff] %v4767_v56  ;;  %v4769_v39 = vpop.f32.mrb[54].mxu0  ;;  %v4771_v41 = vpop.f32.mrb[54].mxu1 }
 0x87f   :  { %5323 = vst [vmem:[#allocation16_spill] sm:$0xff] %v4769_v39  ;;  %5324 = vst [vmem:[#allocation19_spill] sm:$0xff] %v4771_v41  ;;  %v4773_v13 = vpop.f32.mrb[55].mxu0  ;;  %v4775_v26 = vpop.f32.mrb[55].mxu1 }
 0x880   :  { %5325 = vst [vmem:[#allocation20_spill] sm:$0xff] %v4773_v13  ;;  %5326 = vst [vmem:[#allocation23_spill] sm:$0xff] %v4775_v26  ;;  %v3591_v53 = vpop.eup %3590 }
 0x881   :  { %v1462_v36 = vmul.f32 %v3591_v53, %v3589_v57 }
 0x883   :  { %v1476_v3 = vpack.c.bf16 %v1462_v36, %v4624_v46 }
 0x884   :  { %v4778_v18 = vpop.f32.mrb[56].mxu0  ;;  %v4780_v37 = vpop.f32.mrb[56].mxu1 }
 0x885   :  { %5327 = vst [vmem:[#allocation21_spill] sm:$0xff] %v4778_v18  ;;  %5328 = vst [vmem:[#allocation25_spill] sm:$0xff] %v4780_v37  ;;  %v4782_v47 = vpop.f32.mrb[57].mxu0  ;;  %v4784_v61 = vpop.f32.mrb[57].mxu1  ;;  %1754 = vmatmul.mubr.bf16.gmra.mrb[60].mxu0 %v1476_v3  ;;  %1827 = vmatmul.mubr.bf16.gmra.mrb[60].mxu1 %v1476_v3 }
 0x886   :  { %5329 = vst [vmem:[#allocation22_spill] sm:$0xff] %v4782_v47  ;;  %5330 = vst [vmem:[#allocation26_spill] sm:$0xff] %v4784_v61  ;;  %v4786_v7 = vpop.f32.mrb[58].mxu0  ;;  %v4788_v4 = vpop.f32.mrb[58].mxu1  ;;  %2097 = vmatprep.mubr.bf16.mxu0 %v5298_v40  ;;  %2138 = vmatprep.mubr.bf16.mxu1 %v5298_v40 }
 0x887   :  { %5331 = vst [vmem:[#allocation24_spill] sm:$0xff] %v4786_v7  ;;  %5332 = vst [vmem:[#allocation27_spill] sm:$0xff] %v4788_v4  ;;  %v4792_v25 = vpop.f32.mrb[59].mxu0  ;;  %v4794_v46 = vpop.f32.mrb[59].mxu1 }
 0x888   :  { %5333 = vst [vmem:[#allocation28_spill] sm:$0xff] %v4792_v25  ;;  %5334 = vst [vmem:[#allocation31_spill] sm:$0xff] %v4794_v46  ;;  %v5341_v46 = vld [vmem:[#allocation14_spill] sm:$0xff] }
 0x889   :  { %v5342_v25 = vsub.s32 0, %v5341_v46  ;;  %v5343_v7 = vsub.s32 2, %v5341_v46 }
 0x88b   :  { %v4849_v4 = vrot.slane %v1509_v63, %v5342_v25  ;;  %v4853_v61 = vrot.slane %v1509_v63, %v5343_v7 }
 0x88d   :  { %2098 = vmatmul.mubr.bf16.vlgmr.msra.gmra.mrb[64].mxu0 %v5298_v40  ;;  %2139 = vmatmul.mubr.bf16.vlgmr.msra.gmra.mrb[64].mxu1 %v5298_v40  ;;  %v1726_v25 = vadd.f32 %v4745_v5, %v4849_v4 }
 0x88e   :  { %2181 = vmatpush1.bf16.msra.mxu0 %v4646_v11  ;;  %2222 = vmatpush1.bf16.msra.mxu1 %v4648_v19 }
 0x88f   :  { %2182 = vmatprep.subr.bf16.mxu0 %v4654_v15  ;;  %2223 = vmatprep.subr.bf16.mxu1 %v4656_v58 }
 0x890   :  { %2212 = vmatprep.mubr.bf16.mxu0 %v5298_v40  ;;  %2253 = vmatprep.mubr.bf16.mxu1 %v5298_v40 }
 0x892   :  { %2183 = vmatpush1.bf16.msra.mxu0 %v4658_v60  ;;  %2224 = vmatpush1.bf16.msra.mxu1 %v4660_v22 }
 0x893   :  { %2184 = vmatprep.subr.bf16.mxu0 %v4666_v23  ;;  %2225 = vmatprep.subr.bf16.mxu1 %v4668_v24 }
 0x896   :  { %2185 = vmatpush1.bf16.msra.mxu0 %v4670_v27  ;;  %2226 = vmatpush1.bf16.msra.mxu1 %v4672_v28 }
 0x897   :  { %2186 = vmatprep.subr.bf16.mxu0 %v4678_v30  ;;  %2227 = vmatprep.subr.bf16.mxu1 %v4680_v31 }
 0x89a   :  { %2187 = vmatpush1.bf16.msra.mxu0 %v4682_v12  ;;  %2228 = vmatpush1.bf16.msra.mxu1 %v4684_v29 }
 0x89b   :  { %2188 = vmatprep.subr.bf16.mxu0 %v4690_v50  ;;  %2229 = vmatprep.subr.bf16.mxu1 %v4692_v49 }
 0x89e   :  { %2189 = vmatpush1.bf16.msra.mxu0 %v4694_v32  ;;  %2230 = vmatpush1.bf16.msra.mxu1 %v4696_v51 }
 0x89f   :  { %2190 = vmatprep.subr.bf16.mxu0 %v4702_v33  ;;  %2231 = vmatprep.subr.bf16.mxu1 %v4704_v52 }
 0x8a2   :  { %2191 = vmatpush1.bf16.msra.mxu0 %v4706_v34  ;;  %2232 = vmatpush1.bf16.msra.mxu1 %v4708_v55 }
 0x8a3   :  { %2192 = vmatprep.subr.bf16.mxu0 %v4714_v42  ;;  %2233 = vmatprep.subr.bf16.mxu1 %v4716_v44 }
 0x8a6   :  { %2193 = vmatpush1.bf16.msra.mxu0 %v4718_v45  ;;  %2234 = vmatpush1.bf16.msra.mxu1 %v4720_v59 }
 0x8a7   :  { %2194 = vmatprep.subr.bf16.mxu0 %v4726_v0  ;;  %2235 = vmatprep.subr.bf16.mxu1 %v4728_v1 }
 0x8aa   :  { %2195 = vmatpush1.bf16.msra.mxu0 %v4730_v2  ;;  %2236 = vmatpush1.bf16.msra.mxu1 %v4732_v20 }
 0x8ab   :  { %2295 = vmatprep.subr.bf16.mxu0 %v4642_v14  ;;  %2336 = vmatprep.subr.bf16.mxu1 %v4644_v48 }
 0x958   :  { %v4835_v21 = vpop.f32.mrb[60].mxu0  ;;  %v4837_v8 = vpop.f32.mrb[60].mxu1 }
 0x959   :  { %5335 = vst [vmem:[#allocation29_spill] sm:$0xff] %v4835_v21  ;;  %5336 = vst [vmem:[#allocation33_spill] sm:$0xff] %v4837_v8  ;;  %v4839_v57 = vpop.f32.mrb[61].mxu0  ;;  %v4841_v53 = vpop.f32.mrb[61].mxu1 }
 0x95a   :  { %5337 = vst [vmem:[#allocation30_spill] sm:$0xff] %v4839_v57  ;;  %5338 = vst [vmem:[#allocation34_spill] sm:$0xff] %v4841_v53  ;;  %v4843_v36 = vpop.f32.mrb[62].mxu0  ;;  %v4845_v3 = vpop.f32.mrb[62].mxu1  ;;  %v5346_v57 = vsub.s32 1, %v5341_v46 }
 0x95b   :  { %5339 = vst [vmem:[#allocation32_spill] sm:$0xff] %v4843_v36  ;;  %5340 = vst [vmem:[#allocation35_spill] sm:$0xff] %v4845_v3  ;;  %v4855_v47 = vpop.f32.mrb[63].mxu0  ;;  %v4857_v21 = vpop.f32.mrb[63].mxu1  ;;  %v5347_v36 = vsub.s32 3, %v5341_v46  ;;  %v1799_v3 = vadd.f32 %v4747_v6, %v4853_v61 }
 0x95c   :  { %5344 = vst [vmem:[#allocation14_spill] sm:$0xff] %v4855_v47  ;;  %5345 = vst [vmem:[#allocation36_spill] sm:$0xff] %v4857_v21  ;;  %v4861_v8 = vrot.slane %v1509_v63, %v5346_v57 }
 0x95d   :  { %v4865_v53 = vrot.slane %v1509_v63, %v5347_v36 }
 0x95e   :  { %v1728_v7 = vadd.f32 %v4749_v62, %v4861_v8 }
 0x95f   :  { %v1801_v21 = vadd.f32 %v4751_v9, %v4865_v53 }
 0x960   :  { %v2099_v47 = vpop.f32.mrb[64].mxu0  ;;  %v2140_v37 = vpop.f32.mrb[64].mxu1 }
 0x961   :  { %v2147_v57 = vadd.f32 %v2099_v47, %v1726_v25  ;;  %v2149_v18 = vadd.f32 %v2140_v37, %v1799_v3  ;;  %v2101_v26 = vpop.f32.mrb[65].mxu0  ;;  %v2142_v46 = vpop.f32.mrb[65].mxu1 }
 0x962   :  { %v2148_v63 = vadd.f32 %v2101_v26, %v1728_v7  ;;  %v2150_v36 = vadd.f32 %v2142_v46, %v1801_v21  ;;  %v2103_v13 = vpop.f32.mrb[66].mxu0  ;;  %v2144_v41 = vpop.f32.mrb[66].mxu1  ;;  %v1732_v46 = vadd.f32 %v4757_v16, %v4861_v8 }
 0x963   :  { %v3239_v5 = vmul.f32 -1.442695, %v2147_v57  ;;  %v2104_v39 = vpop.f32.mrb[67].mxu0  ;;  %v2145_v56 = vpop.f32.mrb[67].mxu1 }
 0x964   :  { %v3240_v6 = vmul.f32 -1.442695, %v2148_v63  ;;  %v3241_v62 = vmul.f32 -1.442695, %v2150_v36  ;;  %v1805_v63 = vadd.f32 %v4759_v35, %v4865_v53 }
 0x965   :  { %3592 = vpow2.f32 %v3239_v5 }
 0x966   :  { %3594 = vpow2.f32 %v3240_v6 }
 0x967   :  { %3596 = vpow2.f32 %v3241_v62 }
 0x968   :  { %3598 = vtanh.f32 %v2149_v18  ;;  %v1803_v18 = vadd.f32 %v4755_v10, %v4853_v61 }
 0x96f   :  { %v3593_v38 = vpop.eup %3592 }
 0x970   :  { %v3595_v54 = vpop.eup %3594  ;;  %v2154_v9 = vadd.f32 1.0, %v3593_v38 }
 0x971   :  { %v2160_v47 = vadd.f32 1.0, %v3595_v54  ;;  %v3597_v37 = vpop.eup %3596  ;;  %v1730_v54 = vadd.f32 %v4753_v17, %v4849_v4 }
 0x972   :  { %3600 = vrcp.f32 %v2154_v9  ;;  %v3599_v26 = vpop.eup %3598  ;;  %v2167_v3 = vadd.f32 1.0, %v3597_v37 }
 0x973   :  { %3602 = vrcp.f32 %v2160_v47 }
 0x974   :  { %3604 = vrcp.f32 %v2167_v3 }
 0x97c   :  { %v3601_v21 = vpop.eup %3600 }
 0x97d   :  { %v3603_v13 = vpop.eup %3602  ;;  %v2171_v41 = vmul.f32 %v3601_v21, %v3599_v26 }
 0x97e   :  { %v2170_v39 = vmul.f32 0.0, %v3603_v13  ;;  %v3605_v25 = vpop.eup %3604 }
 0x980   :  { %v4875_v56 = vadd.f32 %v2171_v41, %v2170_v39 }
 0x982   :  { %3606 = vtanh.f32 %v4875_v56 }
 0x98c   :  { %v3607_v7 = vpop.eup %3606 }
 0x98d   :  { %v2174_v38 = vmul.f32 %v3607_v7, %v3605_v25 }
 0x98f   :  { %v2179_v57 = vpack.c.bf16 %v2174_v38, %v2174_v38 }
 0x991   :  { %2213 = vmatmul.mubr.bf16.vlgmr.msra.gmra.mrb[68].mxu0 %v2179_v57  ;;  %2254 = vmatmul.mubr.bf16.vlgmr.msra.gmra.mrb[68].mxu1 %v2179_v57 }
 0x992   :  { %2296 = vmatpush1.bf16.msra.mxu0 %v4646_v11  ;;  %2337 = vmatpush1.bf16.msra.mxu1 %v4648_v19 }
 0x993   :  { %2297 = vmatprep.subr.bf16.mxu0 %v4654_v15  ;;  %2338 = vmatprep.subr.bf16.mxu1 %v4656_v58 }
 0x994   :  { %2327 = vmatprep.mubr.bf16.mxu0 %v5298_v40  ;;  %2368 = vmatprep.mubr.bf16.mxu1 %v5298_v40 }
 0x996   :  { %2298 = vmatpush1.bf16.msra.mxu0 %v4658_v60  ;;  %2339 = vmatpush1.bf16.msra.mxu1 %v4660_v22 }
 0x997   :  { %2299 = vmatprep.subr.bf16.mxu0 %v4666_v23  ;;  %2340 = vmatprep.subr.bf16.mxu1 %v4668_v24 }
 0x99a   :  { %2300 = vmatpush1.bf16.msra.mxu0 %v4670_v27  ;;  %2341 = vmatpush1.bf16.msra.mxu1 %v4672_v28 }
 0x99b   :  { %2301 = vmatprep.subr.bf16.mxu0 %v4678_v30  ;;  %2342 = vmatprep.subr.bf16.mxu1 %v4680_v31 }
 0x99e   :  { %2302 = vmatpush1.bf16.msra.mxu0 %v4682_v12  ;;  %2343 = vmatpush1.bf16.msra.mxu1 %v4684_v29 }
 0x99f   :  { %2303 = vmatprep.subr.bf16.mxu0 %v4690_v50  ;;  %2344 = vmatprep.subr.bf16.mxu1 %v4692_v49 }
 0x9a2   :  { %2304 = vmatpush1.bf16.msra.mxu0 %v4694_v32  ;;  %2345 = vmatpush1.bf16.msra.mxu1 %v4696_v51 }
 0x9a3   :  { %2305 = vmatprep.subr.bf16.mxu0 %v4702_v33  ;;  %2346 = vmatprep.subr.bf16.mxu1 %v4704_v52 }
 0x9a6   :  { %2306 = vmatpush1.bf16.msra.mxu0 %v4706_v34  ;;  %2347 = vmatpush1.bf16.msra.mxu1 %v4708_v55 }
 0x9a7   :  { %2307 = vmatprep.subr.bf16.mxu0 %v4714_v42  ;;  %2348 = vmatprep.subr.bf16.mxu1 %v4716_v44 }
 0x9aa   :  { %2308 = vmatpush1.bf16.msra.mxu0 %v4718_v45  ;;  %2349 = vmatpush1.bf16.msra.mxu1 %v4720_v59 }
 0x9ab   :  { %2309 = vmatprep.subr.bf16.mxu0 %v4726_v0  ;;  %2350 = vmatprep.subr.bf16.mxu1 %v4728_v1 }
 0x9ae   :  { %2310 = vmatpush1.bf16.msra.mxu0 %v4730_v2  ;;  %2351 = vmatpush1.bf16.msra.mxu1 %v4732_v20 }
 0x9af   :  { %2410 = vmatprep.subr.bf16.mxu0 %v4642_v14  ;;  %2451 = vmatprep.subr.bf16.mxu1 %v4644_v48 }
 0xa64   :  { %v2214_v36 = vpop.f32.mrb[68].mxu0  ;;  %v2255_v5 = vpop.f32.mrb[68].mxu1 }
 0xa65   :  { %v2262_v6 = vadd.f32 %v2214_v36, %v1730_v54  ;;  %v2264_v62 = vadd.f32 %v2255_v5, %v1803_v18  ;;  %v2216_v9 = vpop.f32.mrb[69].mxu0  ;;  %v2257_v47 = vpop.f32.mrb[69].mxu1 }
 0xa66   :  { %v2263_v37 = vadd.f32 %v2216_v9, %v1732_v46  ;;  %v2265_v26 = vadd.f32 %v2257_v47, %v1805_v63  ;;  %v2218_v21 = vpop.f32.mrb[70].mxu0  ;;  %v2259_v13 = vpop.f32.mrb[70].mxu1 }
 0xa67   :  { %v3242_v17 = vmul.f32 -1.442695, %v2262_v6  ;;  %v2219_v41 = vpop.f32.mrb[71].mxu0  ;;  %v2260_v3 = vpop.f32.mrb[71].mxu1  ;;  %v5349_v21 = vld [vmem:[#allocation15_spill] sm:$0xff] }
 0xa68   :  { %v3243_v10 = vmul.f32 -1.442695, %v2263_v37  ;;  %v3244_v16 = vmul.f32 -1.442695, %v2265_v26  ;;  %v5348_v37 = vld [vmem:[#allocation17_spill] sm:$0xff]  ;;  %v1738_v13 = vadd.f32 %v5349_v21, %v4861_v8 }
 0xa69   :  { %3608 = vpow2.f32 %v3242_v17  ;;  %v1809_v26 = vadd.f32 %v5348_v37, %v4853_v61  ;;  %v5350_v17 = vld [vmem:[#allocation18_spill] sm:$0xff] }
 0xa6a   :  { %3610 = vpow2.f32 %v3243_v10  ;;  %v1811_v41 = vadd.f32 %v5350_v17, %v4865_v53 }
 0xa6b   :  { %3612 = vpow2.f32 %v3244_v16 }
 0xa6c   :  { %3614 = vtanh.f32 %v2264_v62 }
 0xa73   :  { %v3609_v39 = vpop.eup %3608 }
 0xa74   :  { %v3611_v25 = vpop.eup %3610  ;;  %v2269_v35 = vadd.f32 1.0, %v3609_v39 }
 0xa75   :  { %v2275_v7 = vadd.f32 1.0, %v3611_v25  ;;  %v3613_v38 = vpop.eup %3612 }
 0xa76   :  { %3616 = vrcp.f32 %v2269_v35  ;;  %v3615_v57 = vpop.eup %3614  ;;  %v2282_v63 = vadd.f32 1.0, %v3613_v38 }
 0xa77   :  { %3618 = vrcp.f32 %v2275_v7 }
 0xa78   :  { %3620 = vrcp.f32 %v2282_v63 }
 0xa80   :  { %v3617_v54 = vpop.eup %3616 }
 0xa81   :  { %v3619_v18 = vpop.eup %3618  ;;  %v2286_v46 = vmul.f32 %v3617_v54, %v3615_v57 }
 0xa82   :  { %v2285_v36 = vmul.f32 %v3619_v18, %v4875_v56  ;;  %v3621_v6 = vpop.eup %3620  ;;  %v1736_v56 = vadd.f32 %v4761_v43, %v4849_v4 }
 0xa84   :  { %v4921_v5 = vadd.f32 %v2286_v46, %v2285_v36 }
 0xa86   :  { %3622 = vtanh.f32 %v4921_v5 }
 0xa90   :  { %v3623_v9 = vpop.eup %3622 }
 0xa91   :  { %v2289_v47 = vmul.f32 %v3623_v9, %v3621_v6 }
 0xa93   :  { %v2294_v62 = vpack.c.bf16 %v2289_v47, %v2289_v47 }
 0xa95   :  { %2328 = vmatmul.mubr.bf16.vlgmr.msra.gmra.mrb[72].mxu0 %v2294_v62  ;;  %2369 = vmatmul.mubr.bf16.vlgmr.msra.gmra.mrb[72].mxu1 %v2294_v62 }
 0xa96   :  { %2411 = vmatpush1.bf16.msra.mxu0 %v4646_v11  ;;  %2452 = vmatpush1.bf16.msra.mxu1 %v4648_v19 }
 0xa97   :  { %2412 = vmatprep.subr.bf16.mxu0 %v4654_v15  ;;  %2453 = vmatprep.subr.bf16.mxu1 %v4656_v58 }
 0xa98   :  { %2442 = vmatprep.mubr.bf16.mxu0 %v5298_v40  ;;  %2483 = vmatprep.mubr.bf16.mxu1 %v5298_v40 }
 0xa9a   :  { %2413 = vmatpush1.bf16.msra.mxu0 %v4658_v60  ;;  %2454 = vmatpush1.bf16.msra.mxu1 %v4660_v22 }
 0xa9b   :  { %2414 = vmatprep.subr.bf16.mxu0 %v4666_v23  ;;  %2455 = vmatprep.subr.bf16.mxu1 %v4668_v24 }
 0xa9e   :  { %2415 = vmatpush1.bf16.msra.mxu0 %v4670_v27  ;;  %2456 = vmatpush1.bf16.msra.mxu1 %v4672_v28 }
 0xa9f   :  { %2416 = vmatprep.subr.bf16.mxu0 %v4678_v30  ;;  %2457 = vmatprep.subr.bf16.mxu1 %v4680_v31 }
 0xaa2   :  { %2417 = vmatpush1.bf16.msra.mxu0 %v4682_v12  ;;  %2458 = vmatpush1.bf16.msra.mxu1 %v4684_v29 }
 0xaa3   :  { %2418 = vmatprep.subr.bf16.mxu0 %v4690_v50  ;;  %2459 = vmatprep.subr.bf16.mxu1 %v4692_v49 }
 0xaa6   :  { %2419 = vmatpush1.bf16.msra.mxu0 %v4694_v32  ;;  %2460 = vmatpush1.bf16.msra.mxu1 %v4696_v51 }
 0xaa7   :  { %2420 = vmatprep.subr.bf16.mxu0 %v4702_v33  ;;  %2461 = vmatprep.subr.bf16.mxu1 %v4704_v52 }
 0xaaa   :  { %2421 = vmatpush1.bf16.msra.mxu0 %v4706_v34  ;;  %2462 = vmatpush1.bf16.msra.mxu1 %v4708_v55 }
 0xaab   :  { %2422 = vmatprep.subr.bf16.mxu0 %v4714_v42  ;;  %2463 = vmatprep.subr.bf16.mxu1 %v4716_v44 }
 0xaae   :  { %2423 = vmatpush1.bf16.msra.mxu0 %v4718_v45  ;;  %2464 = vmatpush1.bf16.msra.mxu1 %v4720_v59 }
 0xaaf   :  { %2424 = vmatprep.subr.bf16.mxu0 %v4726_v0  ;;  %2465 = vmatprep.subr.bf16.mxu1 %v4728_v1 }
 0xab2   :  { %2425 = vmatpush1.bf16.msra.mxu0 %v4730_v2  ;;  %2466 = vmatpush1.bf16.msra.mxu1 %v4732_v20 }
 0xab3   :  { %2525 = vmatprep.subr.bf16.mxu0 %v4642_v14  ;;  %2566 = vmatprep.subr.bf16.mxu1 %v4644_v48 }
 0xb68   :  { %v2329_v3 = vpop.f32.mrb[72].mxu0  ;;  %v2370_v10 = vpop.f32.mrb[72].mxu1 }
 0xb69   :  { %v2377_v16 = vadd.f32 %v2329_v3, %v1736_v56  ;;  %v2379_v39 = vadd.f32 %v2370_v10, %v1809_v26  ;;  %v2331_v25 = vpop.f32.mrb[73].mxu0  ;;  %v2372_v35 = vpop.f32.mrb[73].mxu1 }
 0xb6a   :  { %v2378_v7 = vadd.f32 %v2331_v25, %v1738_v13  ;;  %v2380_v38 = vadd.f32 %v2372_v35, %v1811_v41  ;;  %v2333_v57 = vpop.f32.mrb[74].mxu0  ;;  %v2374_v54 = vpop.f32.mrb[74].mxu1 }
 0xb6b   :  { %v3245_v43 = vmul.f32 -1.442695, %v2377_v16  ;;  %v2334_v18 = vpop.f32.mrb[75].mxu0  ;;  %v2375_v46 = vpop.f32.mrb[75].mxu1  ;;  %v5353_v57 = vld [vmem:[#allocation20_spill] sm:$0xff] }
 0xb6c   :  { %v3246_v63 = vmul.f32 -1.442695, %v2378_v7  ;;  %v3247_v36 = vmul.f32 -1.442695, %v2380_v38  ;;  %v5352_v7 = vld [vmem:[#allocation19_spill] sm:$0xff]  ;;  %v1742_v54 = vadd.f32 %v5353_v57, %v4861_v8 }
 0xb6d   :  { %3624 = vpow2.f32 %v3245_v43  ;;  %v1813_v38 = vadd.f32 %v5352_v7, %v4853_v61  ;;  %v5354_v43 = vld [vmem:[#allocation23_spill] sm:$0xff] }
 0xb6e   :  { %3626 = vpow2.f32 %v3246_v63  ;;  %v1815_v18 = vadd.f32 %v5354_v43, %v4865_v53 }
 0xb6f   :  { %3628 = vpow2.f32 %v3247_v36 }
 0xb70   :  { %3630 = vtanh.f32 %v2379_v39 }
 0xb77   :  { %v3625_v6 = vpop.eup %3624 }
 0xb78   :  { %v3627_v9 = vpop.eup %3626  ;;  %v2384_v47 = vadd.f32 1.0, %v3625_v6 }
 0xb79   :  { %v2390_v62 = vadd.f32 1.0, %v3627_v9  ;;  %v3629_v56 = vpop.eup %3628 }
 0xb7a   :  { %3632 = vrcp.f32 %v2384_v47  ;;  %v3631_v37 = vpop.eup %3630  ;;  %v2397_v17 = vadd.f32 1.0, %v3629_v56 }
 0xb7b   :  { %3634 = vrcp.f32 %v2390_v62 }
 0xb7c   :  { %3636 = vrcp.f32 %v2397_v17 }
 0xb84   :  { %v3633_v26 = vpop.eup %3632 }
 0xb85   :  { %v3635_v21 = vpop.eup %3634  ;;  %v2401_v13 = vmul.f32 %v3633_v26, %v3631_v37 }
 0xb86   :  { %v2400_v41 = vmul.f32 %v3635_v21, %v4921_v5  ;;  %v3637_v10 = vpop.eup %3636  ;;  %v5351_v5 = vld [vmem:[#allocation16_spill] sm:$0xff] }
 0xb87   :  { %v1740_v35 = vadd.f32 %v5351_v5, %v4849_v4 }
 0xb88   :  { %v4967_v3 = vadd.f32 %v2401_v13, %v2400_v41 }
 0xb8a   :  { %3638 = vtanh.f32 %v4967_v3 }
 0xb94   :  { %v3639_v16 = vpop.eup %3638 }
 0xb95   :  { %v2404_v25 = vmul.f32 %v3639_v16, %v3637_v10 }
 0xb97   :  { %v2409_v39 = vpack.c.bf16 %v2404_v25, %v2404_v25 }
 0xb99   :  { %2443 = vmatmul.mubr.bf16.vlgmr.msra.gmra.mrb[76].mxu0 %v2409_v39  ;;  %2484 = vmatmul.mubr.bf16.vlgmr.msra.gmra.mrb[76].mxu1 %v2409_v39 }
 0xb9a   :  { %2526 = vmatpush1.bf16.msra.mxu0 %v4646_v11  ;;  %2567 = vmatpush1.bf16.msra.mxu1 %v4648_v19 }
 0xb9b   :  { %2527 = vmatprep.subr.bf16.mxu0 %v4654_v15  ;;  %2568 = vmatprep.subr.bf16.mxu1 %v4656_v58 }
 0xb9c   :  { %2557 = vmatprep.mubr.bf16.mxu0 %v5298_v40  ;;  %2598 = vmatprep.mubr.bf16.mxu1 %v5298_v40 }
 0xb9e   :  { %2528 = vmatpush1.bf16.msra.mxu0 %v4658_v60  ;;  %2569 = vmatpush1.bf16.msra.mxu1 %v4660_v22 }
 0xb9f   :  { %2529 = vmatprep.subr.bf16.mxu0 %v4666_v23  ;;  %2570 = vmatprep.subr.bf16.mxu1 %v4668_v24 }
 0xba2   :  { %2530 = vmatpush1.bf16.msra.mxu0 %v4670_v27  ;;  %2571 = vmatpush1.bf16.msra.mxu1 %v4672_v28 }
 0xba3   :  { %2531 = vmatprep.subr.bf16.mxu0 %v4678_v30  ;;  %2572 = vmatprep.subr.bf16.mxu1 %v4680_v31 }
 0xba6   :  { %2532 = vmatpush1.bf16.msra.mxu0 %v4682_v12  ;;  %2573 = vmatpush1.bf16.msra.mxu1 %v4684_v29 }
 0xba7   :  { %2533 = vmatprep.subr.bf16.mxu0 %v4690_v50  ;;  %2574 = vmatprep.subr.bf16.mxu1 %v4692_v49 }
 0xbaa   :  { %2534 = vmatpush1.bf16.msra.mxu0 %v4694_v32  ;;  %2575 = vmatpush1.bf16.msra.mxu1 %v4696_v51 }
 0xbab   :  { %2535 = vmatprep.subr.bf16.mxu0 %v4702_v33  ;;  %2576 = vmatprep.subr.bf16.mxu1 %v4704_v52 }
 0xbae   :  { %2536 = vmatpush1.bf16.msra.mxu0 %v4706_v34  ;;  %2577 = vmatpush1.bf16.msra.mxu1 %v4708_v55 }
 0xbaf   :  { %2537 = vmatprep.subr.bf16.mxu0 %v4714_v42  ;;  %2578 = vmatprep.subr.bf16.mxu1 %v4716_v44 }
 0xbb2   :  { %2538 = vmatpush1.bf16.msra.mxu0 %v4718_v45  ;;  %2579 = vmatpush1.bf16.msra.mxu1 %v4720_v59 }
 0xbb3   :  { %2539 = vmatprep.subr.bf16.mxu0 %v4726_v0  ;;  %2580 = vmatprep.subr.bf16.mxu1 %v4728_v1 }
 0xbb6   :  { %2540 = vmatpush1.bf16.msra.mxu0 %v4730_v2  ;;  %2581 = vmatpush1.bf16.msra.mxu1 %v4732_v20 }
 0xbb7   :  { %2640 = vmatprep.subr.bf16.mxu0 %v4642_v14  ;;  %2681 = vmatprep.subr.bf16.mxu1 %v4644_v48 }
 0xc6c   :  { %v2444_v46 = vpop.f32.mrb[76].mxu0  ;;  %v2485_v63 = vpop.f32.mrb[76].mxu1 }
 0xc6d   :  { %v2492_v36 = vadd.f32 %v2444_v46, %v1740_v35  ;;  %v2494_v6 = vadd.f32 %v2485_v63, %v1813_v38  ;;  %v2446_v9 = vpop.f32.mrb[77].mxu0  ;;  %v2487_v47 = vpop.f32.mrb[77].mxu1 }
 0xc6e   :  { %v2493_v62 = vadd.f32 %v2446_v9, %v1742_v54  ;;  %v2495_v56 = vadd.f32 %v2487_v47, %v1815_v18  ;;  %v2448_v37 = vpop.f32.mrb[78].mxu0  ;;  %v2489_v26 = vpop.f32.mrb[78].mxu1 }
 0xc6f   :  { %v3248_v21 = vmul.f32 -1.442695, %v2492_v36  ;;  %v2449_v13 = vpop.f32.mrb[79].mxu0  ;;  %v2490_v17 = vpop.f32.mrb[79].mxu1 }
 0xc70   :  { %v3249_v41 = vmul.f32 -1.442695, %v2493_v62  ;;  %v3250_v10 = vmul.f32 -1.442695, %v2495_v56  ;;  %v5062_v13 = vld [vmem:[#allocation9] ss:$16 sps:$4 sm:$0xff]  }
 0xc71   :  { %3640 = vpow2.f32 %v3248_v21  ;;  %v5065_v17 = vld [vmem:[#allocation9 + $0x8] ss:$16 sps:$4 sm:$0xff]  }
 0xc72   :  { %3642 = vpow2.f32 %v3249_v41  ;;  %v5068_v41 = vld [vmem:[#allocation9 + $0x24] ss:$16 sps:$4 sm:$0xff]  }
 0xc73   :  { %3644 = vpow2.f32 %v3250_v10  ;;  %v5071_v10 = vld [vmem:[#allocation9 + $0x2c] ss:$16 sps:$4 sm:$0xff]  }
 0xc74   :  { %3646 = vtanh.f32 %v2494_v6 }
 0xc7b   :  { %v3641_v16 = vpop.eup %3640 }
 0xc7c   :  { %v3643_v25 = vpop.eup %3642  ;;  %v2499_v39 = vadd.f32 1.0, %v3641_v16  ;;  %v5076_v16 = vld [vmem:[#allocation9 + $0x20] ss:$16 sps:$4 sm:$0xff]  }
 0xc7d   :  { %v2505_v5 = vadd.f32 1.0, %v3643_v25  ;;  %v3645_v35 = vpop.eup %3644  ;;  %v5079_v25 = vld [vmem:[#allocation9 + $0x28] ss:$16 sps:$4 sm:$0xff]  }
 0xc7e   :  { %3648 = vrcp.f32 %v2499_v39  ;;  %v3647_v7 = vpop.eup %3646  ;;  %v2512_v43 = vadd.f32 1.0, %v3645_v35  ;;  %v5082_v39 = vld [vmem:[#allocation9 + $0x44] ss:$16 sps:$4 sm:$0xff]   ;;  %v5088_v35 = vld [vmem:[#allocation9 + $0x40] ss:$16 sps:$4 sm:$0xff]  }
 0xc7f   :  { %3650 = vrcp.f32 %v2505_v5  ;;  %v5085_v5 = vld [vmem:[#allocation9 + $0x4c] ss:$16 sps:$4 sm:$0xff]  }
 0xc80   :  { %3652 = vrcp.f32 %v2512_v43  ;;  %v5103_v43 = vld [vmem:[#allocation9 + $0x68] ss:$16 sps:$4 sm:$0xff]  }
 0xc88   :  { %v3649_v38 = vpop.eup %3648 }
 0xc89   :  { %v3651_v57 = vpop.eup %3650  ;;  %v2516_v54 = vmul.f32 %v3649_v38, %v3647_v7  ;;  %v5091_v7 = vld [vmem:[#allocation9 + $0x48] ss:$16 sps:$4 sm:$0xff]   ;;  %v5094_v38 = vld [vmem:[#allocation9 + $0x64] ss:$16 sps:$4 sm:$0xff]  }
 0xc8a   :  { %v2515_v18 = vmul.f32 %v3651_v57, %v4967_v3  ;;  %v3653_v63 = vpop.eup %3652  ;;  %v5097_v57 = vld [vmem:[#allocation9 + $0x6c] ss:$16 sps:$4 sm:$0xff]  }
 0xc8c   :  { %v5013_v46 = vadd.f32 %v2516_v54, %v2515_v18  ;;  %v5100_v54 = vld [vmem:[#allocation9 + $0x60] ss:$16 sps:$4 sm:$0xff]   ;;  %v5106_v18 = vld [vmem:[#allocation9 + $0x84] ss:$16 sps:$4 sm:$0xff]  }
 0xc8e   :  { %3654 = vtanh.f32 %v5013_v46 }
 0xc98   :  { %v3655_v36 = vpop.eup %3654 }
 0xc99   :  { %v2519_v9 = vmul.f32 %v3655_v36, %v3653_v63  ;;  %v5112_v63 = vld [vmem:[#allocation9 + $0x80] ss:$16 sps:$4 sm:$0xff]   ;;  %v5115_v36 = vld [vmem:[#allocation9 + $0x88] ss:$16 sps:$4 sm:$0xff]  }
 0xc9b   :  { %v2524_v6 = vpack.c.bf16 %v2519_v9, %v2519_v9  ;;  %v5118_v9 = vld [vmem:[#allocation9 + $0xa4] ss:$16 sps:$4 sm:$0xff]  }
 0xc9d   :  { %2558 = vmatmul.mubr.bf16.vlgmr.msra.gmra.mrb[80].mxu0 %v2524_v6  ;;  %2599 = vmatmul.mubr.bf16.vlgmr.msra.gmra.mrb[80].mxu1 %v2524_v6  ;;  %v5121_v6 = vld [vmem:[#allocation9 + $0xac] ss:$16 sps:$4 sm:$0xff]  }
 0xc9e   :  { %2641 = vmatpush1.bf16.msra.mxu0 %v4646_v11  ;;  %2682 = vmatpush1.bf16.msra.mxu1 %v4648_v19  ;;  %v5355_v11 = vld [vmem:[#allocation21_spill] sm:$0xff] }
 0xc9f   :  { %2642 = vmatprep.subr.bf16.mxu0 %v4654_v15  ;;  %2683 = vmatprep.subr.bf16.mxu1 %v4656_v58  ;;  %v1746_v19 = vadd.f32 %v5355_v11, %v4849_v4  ;;  %v5356_v15 = vld [vmem:[#allocation25_spill] sm:$0xff] }
 0xca0   :  { %2672 = vmatprep.mubr.bf16.mxu0 %v5298_v40  ;;  %2713 = vmatprep.mubr.bf16.mxu1 %v5298_v40  ;;  %v1819_v58 = vadd.f32 %v5356_v15, %v4853_v61  ;;  %v5124_v11 = vld [vmem:[#allocation9 + $0xa0] ss:$16 sps:$4 sm:$0xff]   ;;  %v5130_v15 = vld [vmem:[#allocation9 + $0xc4] ss:$16 sps:$4 sm:$0xff]  }
 0xca2   :  { %2643 = vmatpush1.bf16.msra.mxu0 %v4658_v60  ;;  %2684 = vmatpush1.bf16.msra.mxu1 %v4660_v22  ;;  %v5357_v60 = vld [vmem:[#allocation22_spill] sm:$0xff] }
 0xca3   :  { %2644 = vmatprep.subr.bf16.mxu0 %v4666_v23  ;;  %2685 = vmatprep.subr.bf16.mxu1 %v4668_v24  ;;  %v1748_v22 = vadd.f32 %v5357_v60, %v4861_v8  ;;  %v5358_v23 = vld [vmem:[#allocation26_spill] sm:$0xff]  ;;  %v5136_v60 = vld [vmem:[#allocation9 + $0xc0] ss:$16 sps:$4 sm:$0xff]  }
 0xca4   :  { %v1821_v24 = vadd.f32 %v5358_v23, %v4865_v53  ;;  %v5142_v23 = vld [vmem:[#allocation9 + $0xe4] ss:$16 sps:$4 sm:$0xff]  }
 0xca6   :  { %2645 = vmatpush1.bf16.msra.mxu0 %v4670_v27  ;;  %2686 = vmatpush1.bf16.msra.mxu1 %v4672_v28 }
 0xca7   :  { %2646 = vmatprep.subr.bf16.mxu0 %v4678_v30  ;;  %2687 = vmatprep.subr.bf16.mxu1 %v4680_v31 }
 0xcaa   :  { %2647 = vmatpush1.bf16.msra.mxu0 %v4682_v12  ;;  %2688 = vmatpush1.bf16.msra.mxu1 %v4684_v29 }
 0xcab   :  { %2648 = vmatprep.subr.bf16.mxu0 %v4690_v50  ;;  %2689 = vmatprep.subr.bf16.mxu1 %v4692_v49 }
 0xcae   :  { %2649 = vmatpush1.bf16.msra.mxu0 %v4694_v32  ;;  %2690 = vmatpush1.bf16.msra.mxu1 %v4696_v51 }
 0xcaf   :  { %2650 = vmatprep.subr.bf16.mxu0 %v4702_v33  ;;  %2691 = vmatprep.subr.bf16.mxu1 %v4704_v52 }
 0xcb2   :  { %2651 = vmatpush1.bf16.msra.mxu0 %v4706_v34  ;;  %2692 = vmatpush1.bf16.msra.mxu1 %v4708_v55 }
 0xcb3   :  { %2652 = vmatprep.subr.bf16.mxu0 %v4714_v42  ;;  %2693 = vmatprep.subr.bf16.mxu1 %v4716_v44 }
 0xcb6   :  { %2653 = vmatpush1.bf16.msra.mxu0 %v4718_v45  ;;  %2694 = vmatpush1.bf16.msra.mxu1 %v4720_v59 }
 0xcb7   :  { %2654 = vmatprep.subr.bf16.mxu0 %v4726_v0  ;;  %2695 = vmatprep.subr.bf16.mxu1 %v4728_v1 }
 0xcba   :  { %2655 = vmatpush1.bf16.msra.mxu0 %v4730_v2  ;;  %2696 = vmatpush1.bf16.msra.mxu1 %v4732_v20 }
 0xcbb   :  { %2755 = vmatprep.subr.bf16.mxu0 %v4642_v14  ;;  %2796 = vmatprep.subr.bf16.mxu1 %v4644_v48 }
 0xd70   :  { %v2559_v27 = vpop.f32.mrb[80].mxu0  ;;  %v2600_v28 = vpop.f32.mrb[80].mxu1 }
 0xd71   :  { %v2607_v30 = vadd.f32 %v2559_v27, %v1746_v19  ;;  %v2609_v31 = vadd.f32 %v2600_v28, %v1819_v58  ;;  %v2561_v12 = vpop.f32.mrb[81].mxu0  ;;  %v2602_v14 = vpop.f32.mrb[81].mxu1  ;;  %v5127_v19 = vld [vmem:[#allocation9 + $0xa8] ss:$16 sps:$4 sm:$0xff]   ;;  %v5133_v58 = vld [vmem:[#allocation9 + $0xcc] ss:$16 sps:$4 sm:$0xff]  }
 0xd72   :  { %v2608_v29 = vadd.f32 %v2561_v12, %v1748_v22  ;;  %v2610_v48 = vadd.f32 %v2602_v14, %v1821_v24  ;;  %v2563_v50 = vpop.f32.mrb[82].mxu0  ;;  %v2604_v49 = vpop.f32.mrb[82].mxu1  ;;  %v5139_v22 = vld [vmem:[#allocation9 + $0xc8] ss:$16 sps:$4 sm:$0xff]   ;;  %v5145_v24 = vld [vmem:[#allocation9 + $0xec] ss:$16 sps:$4 sm:$0xff]  }
 0xd73   :  { %v3251_v32 = vmul.f32 -1.442695, %v2607_v30  ;;  %v2564_v51 = vpop.f32.mrb[83].mxu0  ;;  %v2605_v33 = vpop.f32.mrb[83].mxu1  ;;  %v5148_v27 = vld [vmem:[#allocation9 + $0xe0] ss:$16 sps:$4 sm:$0xff]  }
 0xd74   :  { %v3252_v52 = vmul.f32 -1.442695, %v2608_v29  ;;  %v3253_v34 = vmul.f32 -1.442695, %v2610_v48  ;;  %v5151_v28 = vld [vmem:[#allocation9 + $0xe8] ss:$16 sps:$4 sm:$0xff]  }
 0xd75   :  { %3656 = vpow2.f32 %v3251_v32  ;;  %v3782_v30 = vld [vmem:[#allocation9 + $0x4] ss:$16 sps:$4 sm:$0xff]   ;;  %v5359_v12 = vld [vmem:[#allocation24_spill] sm:$0xff] }
 0xd76   :  { %3658 = vpow2.f32 %v3252_v52  ;;  %v1750_v14 = vadd.f32 %v5359_v12, %v4849_v4  ;;  %v5360_v29 = vld [vmem:[#allocation27_spill] sm:$0xff]  ;;  %v5361_v50 = vld [vmem:[#allocation28_spill] sm:$0xff] }
 0xd77   :  { %3660 = vpow2.f32 %v3253_v34  ;;  %v1823_v48 = vadd.f32 %v5360_v29, %v4853_v61  ;;  %v1752_v49 = vadd.f32 %v5361_v50, %v4861_v8  ;;  %v5362_v32 = vld [vmem:[#allocation31_spill] sm:$0xff] }
 0xd78   :  { %3662 = vtanh.f32 %v2609_v31  ;;  %v3783_v31 = vld [vmem:[#allocation9 + $0xc] ss:$16 sps:$4 sm:$0xff]   ;;  %v1825_v51 = vadd.f32 %v5362_v32, %v4865_v53 }
 0xd7f   :  { %v3657_v55 = vpop.eup %3656 }
 0xd80   :  { %v3659_v42 = vpop.eup %3658  ;;  %v2614_v44 = vadd.f32 1.0, %v3657_v55 }
 0xd81   :  { %v2620_v45 = vadd.f32 1.0, %v3659_v42  ;;  %v3661_v59 = vpop.eup %3660 }
 0xd82   :  { %3664 = vrcp.f32 %v2614_v44  ;;  %v3663_v0 = vpop.eup %3662  ;;  %v2627_v3 = vadd.f32 1.0, %v3661_v59 }
 0xd83   :  { %3666 = vrcp.f32 %v2620_v45 }
 0xd84   :  { %3668 = vrcp.f32 %v2627_v3 }
 0xd8c   :  { %v3665_v1 = vpop.eup %3664 }
 0xd8d   :  { %v3667_v2 = vpop.eup %3666  ;;  %v2631_v20 = vmul.f32 %v3665_v1, %v3663_v0 }
 0xd8e   :  { %v2630_v47 = vmul.f32 %v3667_v2, %v5013_v46  ;;  %v3669_v56 = vpop.eup %3668  ;;  %v5109_v46 = vld [vmem:[#allocation9 + $0x8c] ss:$16 sps:$4 sm:$0xff]  }
 0xd90   :  { %v5059_v62 = vadd.f32 %v2631_v20, %v2630_v47 }
 0xd92   :  { %3670 = vtanh.f32 %v5059_v62 }
 0xd9c   :  { %v3671_v37 = vpop.eup %3670 }
 0xd9d   :  { %v2634_v26 = vmul.f32 %v3671_v37, %v3669_v56 }
 0xd9f   :  { %v2639_v21 = vpack.c.bf16 %v2634_v26, %v2634_v26 }
 0xda1   :  { %2673 = vmatmul.mubr.bf16.vlgmr.msra.gmra.mrb[84].mxu0 %v2639_v21  ;;  %2714 = vmatmul.mubr.bf16.vlgmr.msra.gmra.mrb[84].mxu1 %v2639_v21 }
 0xda2   :  { %2756 = vmatpush1.bf16.msra.mxu0 %v5062_v13  ;;  %2797 = vmatpush1.bf16.msra.mxu1 %v5065_v17 }
 0xda3   :  { %2757 = vmatprep.subr.bf16.mxu0 %v5068_v41  ;;  %2798 = vmatprep.subr.bf16.mxu1 %v5071_v10 }
 0xda4   :  { %2787 = vmatprep.mubr.bf16.mxu0 %v5298_v40  ;;  %2828 = vmatprep.mubr.bf16.mxu1 %v5298_v40 }
 0xda6   :  { %2758 = vmatpush1.bf16.msra.mxu0 %v5076_v16  ;;  %2799 = vmatpush1.bf16.msra.mxu1 %v5079_v25 }
 0xda7   :  { %2759 = vmatprep.subr.bf16.mxu0 %v5082_v39  ;;  %2800 = vmatprep.subr.bf16.mxu1 %v5085_v5 }
 0xdaa   :  { %2760 = vmatpush1.bf16.msra.mxu0 %v5088_v35  ;;  %2801 = vmatpush1.bf16.msra.mxu1 %v5091_v7 }
 0xdab   :  { %2761 = vmatprep.subr.bf16.mxu0 %v5094_v38  ;;  %2802 = vmatprep.subr.bf16.mxu1 %v5097_v57 }
 0xdae   :  { %2762 = vmatpush1.bf16.msra.mxu0 %v5100_v54  ;;  %2803 = vmatpush1.bf16.msra.mxu1 %v5103_v43 }
 0xdaf   :  { %2763 = vmatprep.subr.bf16.mxu0 %v5106_v18  ;;  %2804 = vmatprep.subr.bf16.mxu1 %v5109_v46 }
 0xdb2   :  { %2764 = vmatpush1.bf16.msra.mxu0 %v5112_v63  ;;  %2805 = vmatpush1.bf16.msra.mxu1 %v5115_v36 }
 0xdb3   :  { %2765 = vmatprep.subr.bf16.mxu0 %v5118_v9  ;;  %2806 = vmatprep.subr.bf16.mxu1 %v5121_v6 }
 0xdb6   :  { %2766 = vmatpush1.bf16.msra.mxu0 %v5124_v11  ;;  %2807 = vmatpush1.bf16.msra.mxu1 %v5127_v19 }
 0xdb7   :  { %2767 = vmatprep.subr.bf16.mxu0 %v5130_v15  ;;  %2808 = vmatprep.subr.bf16.mxu1 %v5133_v58 }
 0xdba   :  { %2768 = vmatpush1.bf16.msra.mxu0 %v5136_v60  ;;  %2809 = vmatpush1.bf16.msra.mxu1 %v5139_v22 }
 0xdbb   :  { %2769 = vmatprep.subr.bf16.mxu0 %v5142_v23  ;;  %2810 = vmatprep.subr.bf16.mxu1 %v5145_v24 }
 0xdbe   :  { %2770 = vmatpush1.bf16.msra.mxu0 %v5148_v27  ;;  %2811 = vmatpush1.bf16.msra.mxu1 %v5151_v28 }
 0xdbf   :  { %2870 = vmatprep.subr.bf16.mxu0 %v3782_v30  ;;  %2911 = vmatprep.subr.bf16.mxu1 %v3783_v31 }
 0xe74   :  { %v2674_v33 = vpop.f32.mrb[84].mxu0  ;;  %v2715_v52 = vpop.f32.mrb[84].mxu1 }
 0xe75   :  { %v2722_v34 = vadd.f32 %v2674_v33, %v1750_v14  ;;  %v2724_v55 = vadd.f32 %v2715_v52, %v1823_v48  ;;  %v2676_v42 = vpop.f32.mrb[85].mxu0  ;;  %v2717_v44 = vpop.f32.mrb[85].mxu1 }
 0xe76   :  { %v2723_v45 = vadd.f32 %v2676_v42, %v1752_v49  ;;  %v2725_v59 = vadd.f32 %v2717_v44, %v1825_v51  ;;  %v2678_v0 = vpop.f32.mrb[86].mxu0  ;;  %v2719_v1 = vpop.f32.mrb[86].mxu1 }
 0xe77   :  { %v3254_v2 = vmul.f32 -1.442695, %v2722_v34  ;;  %v2679_v20 = vpop.f32.mrb[87].mxu0  ;;  %v2720_v3 = vpop.f32.mrb[87].mxu1 }
 0xe78   :  { %v3255_v47 = vmul.f32 -1.442695, %v2723_v45  ;;  %v3256_v56 = vmul.f32 -1.442695, %v2725_v59  ;;  %v3885_v20 = vmov 0.0   ;;  %v3457_v3 = vld [vmem:[%s5265_s7 + $0x8] sm:$0xff]  }
 0xe79   :  { %3672 = vpow2.f32 %v3254_v2  ;;  %v3456_v2 = vld [vmem:[%s5265_s7] sm:$0xff]  }
 0xe7a   :  { %3674 = vpow2.f32 %v3255_v47  ;;  %v3458_v47 = vld [vmem:[%s5265_s7 + $0x10] sm:$0xff]  }
 0xe7b   :  { %3676 = vpow2.f32 %v3256_v56  ;;  %v3459_v56 = vld [vmem:[%s5265_s7 + $0x18] sm:$0xff]  }
 0xe7c   :  { %3678 = vtanh.f32 %v2724_v55 }
 0xe83   :  { %v3673_v37 = vpop.eup %3672 }
 0xe84   :  { %v3675_v26 = vpop.eup %3674  ;;  %v2729_v21 = vadd.f32 1.0, %v3673_v37  ;;  %v3460_v37 = vld [vmem:[%s5265_s7 + $0x20] sm:$0xff]  }
 0xe85   :  { %v2735_v30 = vadd.f32 1.0, %v3675_v26  ;;  %v3677_v31 = vpop.eup %3676  ;;  %v3461_v26 = vld [vmem:[%s5265_s7 + $0x28] sm:$0xff]  }
 0xe86   :  { %3680 = vrcp.f32 %v2729_v21  ;;  %v3679_v12 = vpop.eup %3678  ;;  %v2742_v50 = vadd.f32 1.0, %v3677_v31  ;;  %v3462_v21 = vld [vmem:[%s5265_s7 + $0x30] sm:$0xff]   ;;  %v5367_v31 = vld [vmem:[#allocation32_spill] sm:$0xff] }
 0xe87   :  { %3682 = vrcp.f32 %v2735_v30  ;;  %v3463_v30 = vld [vmem:[%s5265_s7 + $0x38] sm:$0xff]  }
 0xe88   :  { %3684 = vrcp.f32 %v2742_v50 }
 0xe90   :  { %v3681_v14 = vpop.eup %3680 }
 0xe91   :  { %v3683_v29 = vpop.eup %3682  ;;  %v2746_v48 = vmul.f32 %v3681_v14, %v3679_v12  ;;  %v1760_v12 = vadd.f32 %v5367_v31, %v4849_v4  ;;  %v5368_v14 = vld [vmem:[#allocation35_spill] sm:$0xff] }
 0xe92   :  { %v2745_v49 = vmul.f32 %v3683_v29, %v5059_v62  ;;  %v3685_v51 = vpop.eup %3684  ;;  %v1833_v29 = vadd.f32 %v5368_v14, %v4853_v61 }
 0xe94   :  { %v5163_v32 = vadd.f32 %v2746_v48, %v2745_v49  ;;  %v5369_v48 = vld [vmem:[#allocation14_spill] sm:$0xff]  ;;  %v5370_v49 = vld [vmem:[#allocation36_spill] sm:$0xff] }
 0xe95   :  { %v1762_v50 = vadd.f32 %v5369_v48, %v4861_v8 }
 0xe96   :  { %3686 = vtanh.f32 %v5163_v32 }
 0xea0   :  { %v3687_v33 = vpop.eup %3686 }
 0xea1   :  { %v2749_v52 = vmul.f32 %v3687_v33, %v3685_v51 }
 0xea3   :  { %v2754_v34 = vpack.c.bf16 %v2749_v52, %v2749_v52 }
 0xea5   :  { %2788 = vmatmul.mubr.bf16.vlgmr.msra.gmra.mrb[88].mxu0 %v2754_v34  ;;  %2829 = vmatmul.mubr.bf16.vlgmr.msra.gmra.mrb[88].mxu1 %v2754_v34 }
 0xea6   :  { %2871 = vmatpush1.bf16.msra.mxu0 %v5062_v13  ;;  %2912 = vmatpush1.bf16.msra.mxu1 %v5065_v17  ;;  %v5364_v13 = vld [vmem:[#allocation33_spill] sm:$0xff] }
 0xea7   :  { %2872 = vmatprep.subr.bf16.mxu0 %v5068_v41  ;;  %2913 = vmatprep.subr.bf16.mxu1 %v5071_v10  ;;  %v1829_v17 = vadd.f32 %v5364_v13, %v4853_v61  ;;  %v5365_v41 = vld [vmem:[#allocation30_spill] sm:$0xff] }
 0xea8   :  { %2902 = vmatprep.mubr.bf16.mxu0 %v5298_v40  ;;  %2943 = vmatprep.mubr.bf16.mxu1 %v5298_v40  ;;  %v5363_v40 = vld [vmem:[#allocation29_spill] sm:$0xff]  ;;  %v1758_v10 = vadd.f32 %v5365_v41, %v4861_v8 }
 0xea9   :  { %v1756_v62 = vadd.f32 %v5363_v40, %v4849_v4 }
 0xeaa   :  { %2873 = vmatpush1.bf16.msra.mxu0 %v5076_v16  ;;  %2914 = vmatpush1.bf16.msra.mxu1 %v5079_v25  ;;  %v5366_v16 = vld [vmem:[#allocation34_spill] sm:$0xff] }
 0xeab   :  { %2874 = vmatprep.subr.bf16.mxu0 %v5082_v39  ;;  %2915 = vmatprep.subr.bf16.mxu1 %v5085_v5  ;;  %v1831_v25 = vadd.f32 %v5366_v16, %v4865_v53 }
 0xeae   :  { %2875 = vmatpush1.bf16.msra.mxu0 %v5088_v35  ;;  %2916 = vmatpush1.bf16.msra.mxu1 %v5091_v7 }
 0xeaf   :  { %2876 = vmatprep.subr.bf16.mxu0 %v5094_v38  ;;  %2917 = vmatprep.subr.bf16.mxu1 %v5097_v57 }
 0xeb2   :  { %2877 = vmatpush1.bf16.msra.mxu0 %v5100_v54  ;;  %2918 = vmatpush1.bf16.msra.mxu1 %v5103_v43 }
 0xeb3   :  { %2878 = vmatprep.subr.bf16.mxu0 %v5106_v18  ;;  %2919 = vmatprep.subr.bf16.mxu1 %v5109_v46 }
 0xeb6   :  { %2879 = vmatpush1.bf16.msra.mxu0 %v5112_v63  ;;  %2920 = vmatpush1.bf16.msra.mxu1 %v5115_v36 }
 0xeb7   :  { %2880 = vmatprep.subr.bf16.mxu0 %v5118_v9  ;;  %2921 = vmatprep.subr.bf16.mxu1 %v5121_v6 }
 0xeba   :  { %2881 = vmatpush1.bf16.msra.mxu0 %v5124_v11  ;;  %2922 = vmatpush1.bf16.msra.mxu1 %v5127_v19 }
 0xebb   :  { %2882 = vmatprep.subr.bf16.mxu0 %v5130_v15  ;;  %2923 = vmatprep.subr.bf16.mxu1 %v5133_v58 }
 0xebe   :  { %2883 = vmatpush1.bf16.msra.mxu0 %v5136_v60  ;;  %2924 = vmatpush1.bf16.msra.mxu1 %v5139_v22 }
 0xebf   :  { %2884 = vmatprep.subr.bf16.mxu0 %v5142_v23  ;;  %2925 = vmatprep.subr.bf16.mxu1 %v5145_v24 }
 0xec2   :  { %2885 = vmatpush1.bf16.msra.mxu0 %v5148_v27  ;;  %2926 = vmatpush1.bf16.msra.mxu1 %v5151_v28 }
 0xec3   :  { %3281 = vmatprep.subr.bf16.mxu0 %v3885_v20 }
 0xf78   :  { %v2789_v39 = vpop.f32.mrb[88].mxu0  ;;  %v2830_v5 = vpop.f32.mrb[88].mxu1 }
 0xf79   :  { %v2837_v35 = vadd.f32 %v2789_v39, %v1756_v62  ;;  %v2839_v7 = vadd.f32 %v2830_v5, %v1829_v17  ;;  %v2791_v38 = vpop.f32.mrb[89].mxu0  ;;  %v2832_v57 = vpop.f32.mrb[89].mxu1 }
 0xf7a   :  { %v2838_v54 = vadd.f32 %v2791_v38, %v1758_v10  ;;  %v2840_v43 = vadd.f32 %v2832_v57, %v1831_v25  ;;  %v2793_v18 = vpop.f32.mrb[90].mxu0  ;;  %v2834_v46 = vpop.f32.mrb[90].mxu1 }
 0xf7b   :  { %v3257_v63 = vmul.f32 -1.442695, %v2837_v35  ;;  %v2794_v36 = vpop.f32.mrb[91].mxu0  ;;  %v2835_v9 = vpop.f32.mrb[91].mxu1 }
 0xf7c   :  { %v3258_v6 = vmul.f32 -1.442695, %v2838_v54  ;;  %v3259_v11 = vmul.f32 -1.442695, %v2840_v43 }
 0xf7d   :  { %3688 = vpow2.f32 %v3257_v63 }
 0xf7e   :  { %3690 = vpow2.f32 %v3258_v6 }
 0xf7f   :  { %3692 = vpow2.f32 %v3259_v11 }
 0xf80   :  { %3694 = vtanh.f32 %v2839_v7 }
 0xf87   :  { %v3689_v19 = vpop.eup %3688 }
 0xf88   :  { %v3691_v15 = vpop.eup %3690  ;;  %v2844_v58 = vadd.f32 1.0, %v3689_v19  ;;  %v3263_v19 = vld [vmem:[%s5266_s8] ss:$0 sm:$0xff] }
 0xf89   :  { %v2850_v60 = vadd.f32 1.0, %v3691_v15  ;;  %v3693_v22 = vpop.eup %3692 }
 0xf8a   :  { %3696 = vrcp.f32 %v2844_v58  ;;  %v3695_v23 = vpop.eup %3694  ;;  %v2857_v55 = vadd.f32 1.0, %v3693_v22 }
 0xf8b   :  { %3698 = vrcp.f32 %v2850_v60 }
 0xf8c   :  { %3700 = vrcp.f32 %v2857_v55 }
 0xf94   :  { %v3697_v24 = vpop.eup %3696 }
 0xf95   :  { %v3699_v27 = vpop.eup %3698  ;;  %v2861_v28 = vmul.f32 %v3697_v24, %v3695_v23 }
 0xf96   :  { %v2860_v42 = vmul.f32 %v3699_v27, %v5163_v32  ;;  %v3701_v45 = vpop.eup %3700  ;;  %v1835_v32 = vadd.f32 %v5370_v49, %v4865_v53 }
 0xf98   :  { %v5207_v44 = vadd.f32 %v2861_v28, %v2860_v42 }
 0xf9a   :  { %3702 = vtanh.f32 %v5207_v44 }
 0xfa4   :  { %v3703_v59 = vpop.eup %3702 }
 0xfa5   :  { %v2864_v0 = vmul.f32 %v3703_v59, %v3701_v45 }
 0xfa7   :  { %v2869_v1 = vpack.c.bf16 %v2864_v0, %v2864_v0 }
 0xfa9   :  { %2903 = vmatmul.mubr.bf16.vlgmr.msra.gmra.mrb[92].mxu0 %v2869_v1  ;;  %2944 = vmatmul.mubr.bf16.vlgmr.msra.gmra.mrb[92].mxu1 %v2869_v1 }
 0xfaa   :  { %3282 = vmatpush3.bf16.msra.mxu0 %v3456_v2  ;;  %3297 = vmatprep.mubr.msk.bf16.mxu0 %vm3886_vm2, %v3885_v20 }
 0xfab   :  { %3283 = vmatprep.subr.bf16.mxu0 %v3885_v20 }
 0xfae   :  { %3284 = vmatpush3.bf16.msra.mxu0 %v3457_v3 }
 0xfaf   :  { %3285 = vmatprep.subr.bf16.mxu0 %v3885_v20 }
 0xfb2   :  { %3286 = vmatpush3.bf16.msra.mxu0 %v3458_v47 }
 0xfb3   :  { %3287 = vmatprep.subr.bf16.mxu0 %v3885_v20 }
 0xfb6   :  { %3288 = vmatpush3.bf16.msra.mxu0 %v3459_v56 }
 0xfb7   :  { %3289 = vmatprep.subr.bf16.mxu0 %v3885_v20 }
 0xfba   :  { %3290 = vmatpush3.bf16.msra.mxu0 %v3460_v37 }
 0xfbb   :  { %3291 = vmatprep.subr.bf16.mxu0 %v3885_v20 }
 0xfbe   :  { %3292 = vmatpush3.bf16.msra.mxu0 %v3461_v26 }
 0xfbf   :  { %3293 = vmatprep.subr.bf16.mxu0 %v3885_v20 }
 0xfc2   :  { %3294 = vmatpush3.bf16.msra.mxu0 %v3462_v21 }
 0xfc3   :  { %3295 = vmatprep.subr.bf16.mxu0 %v3885_v20 }
 0xfc6   :  { %3296 = vmatpush3.bf16.msra.mxu0 %v3463_v30 }
0x107c   :  { %v2904_v51 = vpop.f32.mrb[92].mxu0  ;;  %v2945_v33 = vpop.f32.mrb[92].mxu1 }
0x107d   :  { %v2952_v52 = vadd.f32 %v2904_v51, %v1760_v12  ;;  %v2954_v34 = vadd.f32 %v2945_v33, %v1833_v29  ;;  %v2906_v40 = vpop.f32.mrb[93].mxu0  ;;  %v2947_v62 = vpop.f32.mrb[93].mxu1 }
0x107e   :  { %v2953_v13 = vadd.f32 %v2906_v40, %v1762_v50  ;;  %v2955_v17 = vadd.f32 %v2947_v62, %v1835_v32  ;;  %v2908_v41 = vpop.f32.mrb[94].mxu0  ;;  %v2949_v10 = vpop.f32.mrb[94].mxu1 }
0x107f   :  { %v3260_v4 = vmul.f32 -1.442695, %v2952_v52  ;;  %v2909_v16 = vpop.f32.mrb[95].mxu0  ;;  %v2950_v25 = vpop.f32.mrb[95].mxu1 }
0x1080   :  { %v3261_v61 = vmul.f32 -1.442695, %v2953_v13  ;;  %v3262_v8 = vmul.f32 -1.442695, %v2955_v17 }
0x1081   :  { %3704 = vpow2.f32 %v3260_v4 }
0x1082   :  { %3706 = vpow2.f32 %v3261_v61 }
0x1083   :  { %3708 = vpow2.f32 %v3262_v8 }
0x1084   :  { %3710 = vtanh.f32 %v2954_v34 }
0x108b   :  { %v3705_v39 = vpop.eup %3704 }
0x108c   :  { %v3707_v5 = vpop.eup %3706  ;;  %v2959_v53 = vadd.f32 1.0, %v3705_v39 }
0x108d   :  { %v2965_v35 = vadd.f32 1.0, %v3707_v5  ;;  %v3709_v7 = vpop.eup %3708 }
0x108e   :  { %3712 = vrcp.f32 %v2959_v53  ;;  %v3711_v38 = vpop.eup %3710  ;;  %v2972_v18 = vadd.f32 1.0, %v3709_v7 }
0x108f   :  { %3714 = vrcp.f32 %v2965_v35 }
0x1090   :  { %3716 = vrcp.f32 %v2972_v18 }
0x1098   :  { %v3713_v57 = vpop.eup %3712 }
0x1099   :  { %v3715_v54 = vpop.eup %3714  ;;  %v2976_v43 = vmul.f32 %v3713_v57, %v3711_v38 }
0x109a   :  { %v2975_v46 = vmul.f32 %v3715_v54, %v5207_v44  ;;  %v3717_v36 = vpop.eup %3716 }
0x109c   :  { %v2977_v63 = vadd.f32 %v2976_v43, %v2975_v46 }
0x109e   :  { %3718 = vtanh.f32 %v2977_v63 }
0x10a8   :  { %v3719_v9 = vpop.eup %3718 }
0x10a9   :  { %v2979_v6 = vmul.f32 %v3719_v9, %v3717_v36 }
0x10ab   :  { %v2980_v11 = vpack.c.bf16 %v2979_v6, %v2979_v6 }
0x10ad   :  { %3298 = vmatmul.mubr.bf16.vlgmr.msra.gmra.mrb[96].mxu0 %v2980_v11 }
0x1180   :  { %v3086_v15 = vpop.f32.mrb[96].mxu0 }
0x1181   :  { %v3087_v58 = vadd.f32 %v3263_v19, %v3086_v15  ;;  %v3299_v60 = vpop.f32.mrb[97].mxu0 }
0x1182   :  { %v3089_v22 = vpop.f32.mrb[98].mxu0 }
0x1183   :  { %3092 = vst [vmem:[#allocation10] sm:$0xff] %v3087_v58  ;;  %v3300_v23 = vpop.f32.mrb[99].mxu0 }
0x1184   :  { %3861 = shalt.err (!%p3858_p0)
}
0x1185   :  { %s3862_s8 = scalar_lea.hbm %s5267_s9, 128 }
0x1186   :  { %p3863_p1 = scmp.ne.s32.totalorder %s5267_s9, %s3862_s8  ;;  %p3866_p2 = scmp.lt.u32.totalorder %s3862_s8, %s5267_s9 }
0x1188   :  { %p3868_p3 = pnand %p3866_p2, %p3863_p1 }
0x118a   :  { %3871 = shalt.err (!%p3868_p3)
}
0x118b   :  { %3102 = dma.vmem_to_hbm [thread:$0]  %s3100_s10, 128, %s5267_s9, [#allocation6]  }
0x118c   :  { %3876 = dma.done.wait [#allocation6], 128  }
0x118d   :  { %3877 = vsyncadd [#allocation6], 4294967168 }
0x118e   :  { %3106 = vsyncpa [#allocation5], 1 }
0x118f   :  { %3107 = vsyncpa [#allocation8], 1 }
0x1190   :  { %3108 = vsyncpa [#allocation6], 1 }

</bundles_post_ra>
